<compile_context>
chip_gen: v6e
topology: v6e:2x2x1
jax: 0.10.0
libtpu: 0.0.40
codegen_flags: <defaults>
</compile_context>

<pallas_src>
import functools
import math

import numpy as np
import jax
import jax.numpy as jnp
from jax import lax
from jax.experimental import pallas as pl
from jax.experimental.pallas import tpu as pltpu

EPS = 1e-5  # PyTorch BatchNorm2d default eps


# ------------------------- host-side static tables ---------------------------

def _upsample_matrix(n, h_in, w_in, h_out, w_out):
    """Exact 0/1 nearest-neighbour gather matrix; src = floor(dst * in / out)."""
    m_in, m_out = n * h_in * w_in, n * h_out * w_out
    dst = np.arange(m_out)
    img, rem = np.divmod(dst, h_out * w_out)
    yo, xo = np.divmod(rem, w_out)
    src = img * (h_in * w_in) + (yo * h_in // h_out) * w_in + (xo * w_in // w_out)
    g = np.zeros((m_in, m_out), np.float32)
    g[src, dst] = 1.0
    return g


def _tap_masks(n, c, h, w):
    """(9, C, n*h*w) 0/1 masks zeroing 3x3 taps outside the SAME padding."""
    m = n * h * w
    pos = np.arange(m) % (h * w)
    y, x = np.divmod(pos, w)
    masks = np.empty((9, m), np.float32)
    t = 0
    for oy in (-1, 0, 1):
        ym = np.ones(m, bool) if oy == 0 else (y >= 1 if oy < 0 else y <= h - 2)
        for ox in (-1, 0, 1):
            xm = np.ones(m, bool) if ox == 0 else (x >= 1 if ox < 0 else x <= w - 2)
            masks[t] = (ym & xm).astype(np.float32)
            t += 1
    return np.broadcast_to(masks[:, None, :], (9, c, m)).copy()


# ------------------------------ fused kernel ---------------------------------

def _fused_forward_kernel(*refs, n, c, stage_hw, n_up, mask_idx, n_masks):
    # refs layout:
    #   x        : (C, N*H0*W0)        lane-dense activations
    #   wconv    : (NB, 9, C, C)       per-tap (Cout, Cin) 3x3 weights
    #   prm      : (NB, C, 3)          [:, :, 0]=conv bias, 1=gamma, 2=beta
    #   wout     : (Cout, C)           1x1 conv weights  (scale_out folded in)
    #   bout     : (Cout, 1)           1x1 conv bias     (scale_out folded in)
    #   g_0..    : upsample gather matrices (one per upsample stage)
    #   mask_0.. : (9, C, M) tap masks (deduped per spatial size)
    #   o        : (Cout, N*Hf*Wf)     lane-dense output slab
    f32 = jnp.float32
    x_ref, wconv_ref, prm_ref, wout_ref, bout_ref = refs[:5]
    g_refs = refs[5:5 + n_up]
    mask_refs = refs[5 + n_up:5 + n_up + n_masks]
    o_ref = refs[5 + n_up + n_masks]

    x = x_ref[...]                                            # (C, M0)
    for l, (h, w) in enumerate(stage_hw):
        if l < n_up:
            # nearest upsample as one exact 0/1 gather-matrix matmul
            x = jnp.dot(x, g_refs[l][...], preferred_element_type=f32)
        m = n * h * w
        masks = mask_refs[mask_idx[l]]                        # (9, C, m) ref

        # 3x3 SAME conv: zero-extend once so every tap is a static lane slice;
        # 9 masked taps, each a tiny (C,C)@(C,m) matmul accumulated in f32.
        pad = jnp.zeros((c, w + 1), f32)
        z = jnp.concatenate([pad, x, pad], axis=1)            # (C, m + 2w + 2)
        acc = None
        t = 0
        for oy in (-1, 0, 1):
            for ox in (-1, 0, 1):
                start = oy * w + ox + w + 1
                tap = z[:, start:start + m]                   # = x[:, j + oy*w+ox]
                if oy != 0 or ox != 0:
                    tap = tap * masks[t]                      # zero padded taps
                d = jnp.dot(wconv_ref[l, t], tap, preferred_element_type=f32)
                acc = d if acc is None else acc + d
                t += 1

        prm = prm_ref[l]                                      # (C, 3)
        acc = jnp.maximum(acc + prm[:, 0:1], 0.0)             # conv bias + ReLU

        # training-mode BatchNorm2d: fused sum / sum-of-squares reduction over
        # the stacked (2C, m) = (8, m) block (one full sublane tile).
        s = jnp.sum(jnp.concatenate([acc, acc * acc], axis=0),
                    axis=1, keepdims=True)                    # (2C, 1)
        inv_m = 1.0 / m
        mean = s[:c] * inv_m
        var = s[c:] * inv_m - mean * mean
        x = (acc - mean) * lax.rsqrt(var + EPS) * prm[:, 1:2] + prm[:, 2:3]

    # final 1x1 conv (scale_out pre-folded); single lane-dense store
    o_ref[...] = (jnp.dot(wout_ref[...], x, preferred_element_type=f32)
                  + bout_ref[...])


# -------------------------------- wrapper -------------------------------------

def conv_model_forward(x_nchw, blocks, out_params, hidden_sizes, scale_out=1.0):
    n, c, h0, w0 = x_nchw.shape
    hf, wf = hidden_sizes[-1]
    w_out, b_out = out_params
    c_out = w_out.shape[1]
    nb = len(blocks)
    n_up = len(hidden_sizes)

    # spatial size each conv block operates at
    stage_hw = [tuple(hidden_sizes[min(l, n_up - 1)]) for l in range(nb)]

    # pack 3x3 weights (kh,kw,Cin,Cout) -> (9, Cout, Cin), stacked over blocks
    wconv = jnp.stack([jnp.transpose(w, (0, 1, 3, 2)).reshape(9, c, c)
                       for (w, _, _, _) in blocks])           # (NB, 9, C, C)
    # pack (conv bias, bn gamma, bn beta) per block as (NB, C, 3)
    prm = jnp.stack([jnp.stack([b, g, be], axis=1)
                     for (_, b, g, be) in blocks])

    # fold scale_out into the 1x1 conv (removes SMEM operand + final multiply)
    scale = jnp.float32(scale_out)
    wout = (w_out.T * scale).astype(jnp.float32)              # (Cout, C)
    bout = (b_out.reshape(c_out, 1) * scale).astype(jnp.float32)

    # precomputed upsample gather matrices (exact 0/1, static shapes)
    gmats = []
    h, w = h0, w0
    for (ho, wo) in hidden_sizes:
        gmats.append(jnp.asarray(_upsample_matrix(n, h, w, ho, wo)))
        h, w = ho, wo

    # precomputed per-tap boundary masks, deduplicated by spatial size
    mask_arrays, mask_index, mask_idx = [], {}, []
    for hw in stage_hw:
        if hw not in mask_index:
            mask_index[hw] = len(mask_arrays)
            mask_arrays.append(jnp.asarray(_tap_masks(n, c, hw[0], hw[1])))
        mask_idx.append(mask_index[hw])

    kernel = functools.partial(
        _fused_forward_kernel, n=n, c=c, stage_hw=tuple(stage_hw),
        n_up=n_up, mask_idx=tuple(mask_idx), n_masks=len(mask_arrays))

    # lane-dense (C, N*H0*W0) input layout done by XLA outside the kernel
    x_flat = jnp.transpose(x_nchw, (1, 0, 2, 3)).reshape(
        c, n * h0 * w0).astype(jnp.float32)

    n_in = 5 + n_up + len(mask_arrays)
    out = pl.pallas_call(
        kernel,
        out_shape=jax.ShapeDtypeStruct((c_out, n * hf * wf), jnp.float32),
        in_specs=[pl.BlockSpec(memory_space=pltpu.MemorySpace.VMEM)] * n_in,
        out_specs=pl.BlockSpec(memory_space=pltpu.MemorySpace.VMEM),
    )(x_flat, wconv, prm, wout, bout, *gmats, *mask_arrays)

    # (Cout, N*Hf*Wf) lane-dense slab -> NCHW (cheap XLA transpose)
    return jnp.transpose(out.reshape(c_out, n, hf, wf), (1, 0, 2, 3))


# ------------------------------ model helpers ---------------------------------

def compute_hidden_sizes(num_layers, in_size, out_size):
    scale_x = (out_size[0] / in_size[0]) ** (1.0 / (num_layers - 1))
    scale_y = (out_size[1] / in_size[1]) ** (1.0 / (num_layers - 1))
    return [(int(math.ceil(scale_x ** n * in_size[0])),
             int(math.ceil(scale_y ** n * in_size[1])))
            for n in range(1, num_layers - 1)] + [tuple(out_size)]


def init_params(key, num_layers, num_channels, num_output_channels):
    # num_layers-1 upsample blocks + 1 extra conv/relu/bn block, then 1x1 conv.
    blocks = []
    for _ in range(num_layers):
        key, k1, k2, k3, k4 = jax.random.split(key, 5)
        w = 0.2 * jax.random.normal(k1, (3, 3, num_channels, num_channels),
                                    jnp.float32)
        b = 0.1 * jax.random.normal(k2, (num_channels,), jnp.float32)
        gamma = 1.0 + 0.1 * jax.random.normal(k3, (num_channels,), jnp.float32)
        beta = 0.1 * jax.random.normal(k4, (num_channels,), jnp.float32)
        blocks.append((w, b, gamma, beta))
    key, k1, k2 = jax.random.split(key, 3)
    w_out = 0.2 * jax.random.normal(k1, (num_channels, num_output_channels),
                                    jnp.float32)
    b_out = 0.1 * jax.random.normal(k2, (num_output_channels,), jnp.float32)
    return blocks, (w_out, b_out)


# --------------------------- pure-JAX reference --------------------------------

def upsample_nearest(x, size):
    # nn.Upsample(size=..., mode='nearest'): src_idx = floor(dst_idx * in/out)
    N, H, W, C = x.shape
    Ho, Wo = size
    hi = (jnp.arange(Ho) * H) // Ho
    wi = (jnp.arange(Wo) * W) // Wo
    return x[:, hi][:, :, wi]


def _ref_forward(x_nchw, blocks, out_params, hidden_sizes, scale_out=1.0):
    x = jnp.transpose(x_nchw, (0, 2, 3, 1))

    def conv_block(x, w, b, g, be):
        y = jax.lax.conv_general_dilated(
            x, w, (1, 1), 'SAME',
            dimension_numbers=('NHWC', 'HWIO', 'NHWC'),
            precision=jax.lax.Precision.HIGHEST) + b
        y = jnp.maximum(y, 0.0)
        mean = jnp.mean(y, axis=(0, 1, 2), keepdims=True)
        var = jnp.mean((y - mean) ** 2, axis=(0, 1, 2), keepdims=True)
        return (y - mean) * jax.lax.rsqrt(var + EPS) * g + be

    n_up = len(hidden_sizes)
    for i in range(n_up):
        x = upsample_nearest(x, hidden_sizes[i])
        x = conv_block(x, *blocks[i])
    x = conv_block(x, *blocks[n_up])
    w_out, b_out = out_params
    x = (jnp.einsum('nhwc,co->nhwo', x, w_out,
                    precision=jax.lax.Precision.HIGHEST) + b_out) * scale_out
    return jnp.transpose(x, (0, 3, 1, 2))


# ---------------------------------- main ---------------------------------------

if __name__ == "__main__":
    num_layers = 3
    num_channels = 4
    num_output_channels = 3
    in_size = (8, 8)
    out_size = (16, 16)
    hidden_sizes = compute_hidden_sizes(num_layers, in_size, out_size)

    key = jax.random.PRNGKey(0)
    key, pkey, xkey = jax.random.split(key, 3)
    blocks, out_params = init_params(pkey, num_layers, num_channels,
                                     num_output_channels)
    x = jax.random.normal(xkey, (2, num_channels, in_size[0], in_size[1]),
                          jnp.float32)

    fwd = jax.jit(lambda xin: conv_model_forward(xin, blocks, out_params,
                                                 hidden_sizes, 1.0))
    out = jax.block_until_ready(fwd(x))

    ref = _ref_forward(x, blocks, out_params, hidden_sizes, 1.0)
    assert out.shape == (2, num_output_channels, out_size[0], out_size[1]), \
        out.shape
    err = float(jnp.max(jnp.abs(out - ref)))
    assert jnp.allclose(out, ref, atol=2e-3, rtol=2e-3), err

    print("KERNEL_OK")
</pallas_src>

<mosaic_0001>
module attributes {stable_mosaic.version = 11 : i64} {
  func.func @_fused_forward_kernel(%arg0: memref<4x128xf32, #tpu.memory_space<vmem>>, %arg1: memref<3x9x4x4xf32, #tpu.memory_space<vmem>>, %arg2: memref<3x4x3xf32, #tpu.memory_space<vmem>>, %arg3: memref<3x4xf32, #tpu.memory_space<vmem>>, %arg4: memref<3x1xf32, #tpu.memory_space<vmem>>, %arg5: memref<128x288xf32, #tpu.memory_space<vmem>>, %arg6: memref<288x512xf32, #tpu.memory_space<vmem>>, %arg7: memref<9x4x288xf32, #tpu.memory_space<vmem>>, %arg8: memref<9x4x512xf32, #tpu.memory_space<vmem>>, %arg9: memref<3x512xf32, #tpu.memory_space<vmem>>) attributes {dimension_semantics = [], scalar_prefetch = 0 : i64, scratch_operands = 0 : i64, tpu.core_type = #tpu.core_type<tc>} {
    %c0 = arith.constant 0 : index
    %c0_0 = arith.constant 0 : index
    %0 = vector.load %arg0[%c0, %c0_0] : memref<4x128xf32, #tpu.memory_space<vmem>>, vector<4x128xf32>
    %c0_1 = arith.constant 0 : index
    %c0_2 = arith.constant 0 : index
    %1 = vector.load %arg5[%c0_1, %c0_2] : memref<128x288xf32, #tpu.memory_space<vmem>>, vector<128x288xf32>
    %cst = arith.constant dense<0.000000e+00> : vector<4x288xf32>
    %2 = tpu.matmul %0, %1, %cst {dimension_numbers = #tpu.dot_dimension_numbers<[1], [0], [0], [1], [0, 0, 1, 1], [], []>} : vector<4x128xf32>, vector<128x288xf32>, vector<4x288xf32> -> vector<4x288xf32>
    %cst_3 = arith.constant 0.000000e+00 : f32
    %3 = vector.broadcast %cst_3 : f32 to vector<4x13xf32>
    %4 = tpu.concatenate %3, %2, %3 in 1 : vector<4x13xf32>, vector<4x288xf32>, vector<4x13xf32> -> vector<4x314xf32>
    %5 = vector.extract_strided_slice %4 {offsets = [0, 0], sizes = [4, 288], strides = [1, 1]} : vector<4x314xf32> to vector<4x288xf32>
    %c0_4 = arith.constant 0 : index
    %c0_5 = arith.constant 0 : index
    %c0_6 = arith.constant 0 : index
    %6 = vector.load %arg7[%c0_4, %c0_5, %c0_6] : memref<9x4x288xf32, #tpu.memory_space<vmem>>, vector<1x4x288xf32>
    %7 = vector.shape_cast %6 : vector<1x4x288xf32> to vector<4x288xf32>
    %8 = arith.mulf %5, %7 : vector<4x288xf32>
    %c0_7 = arith.constant 0 : index
    %c0_8 = arith.constant 0 : index
    %c0_9 = arith.constant 0 : index
    %c0_10 = arith.constant 0 : index
    %9 = vector.load %arg1[%c0_7, %c0_8, %c0_9, %c0_10] : memref<3x9x4x4xf32, #tpu.memory_space<vmem>>, vector<1x1x4x4xf32>
    %10 = vector.shape_cast %9 : vector<1x1x4x4xf32> to vector<4x4xf32>
    %cst_11 = arith.constant dense<0.000000e+00> : vector<4x288xf32>
    %11 = tpu.matmul %10, %8, %cst_11 {dimension_numbers = #tpu.dot_dimension_numbers<[1], [0], [0], [1], [0, 0, 1, 1], [], []>} : vector<4x4xf32>, vector<4x288xf32>, vector<4x288xf32> -> vector<4x288xf32>
    %12 = vector.extract_strided_slice %4 {offsets = [0, 1], sizes = [4, 288], strides = [1, 1]} : vector<4x314xf32> to vector<4x288xf32>
    %c1 = arith.constant 1 : index
    %c0_12 = arith.constant 0 : index
    %c0_13 = arith.constant 0 : index
    %13 = vector.load %arg7[%c1, %c0_12, %c0_13] : memref<9x4x288xf32, #tpu.memory_space<vmem>>, vector<1x4x288xf32>
    %14 = vector.shape_cast %13 : vector<1x4x288xf32> to vector<4x288xf32>
    %15 = arith.mulf %12, %14 : vector<4x288xf32>
    %c0_14 = arith.constant 0 : index
    %c1_15 = arith.constant 1 : index
    %c0_16 = arith.constant 0 : index
    %c0_17 = arith.constant 0 : index
    %16 = vector.load %arg1[%c0_14, %c1_15, %c0_16, %c0_17] : memref<3x9x4x4xf32, #tpu.memory_space<vmem>>, vector<1x1x4x4xf32>
    %17 = vector.shape_cast %16 : vector<1x1x4x4xf32> to vector<4x4xf32>
    %cst_18 = arith.constant dense<0.000000e+00> : vector<4x288xf32>
    %18 = tpu.matmul %17, %15, %cst_18 {dimension_numbers = #tpu.dot_dimension_numbers<[1], [0], [0], [1], [0, 0, 1, 1], [], []>} : vector<4x4xf32>, vector<4x288xf32>, vector<4x288xf32> -> vector<4x288xf32>
    %19 = arith.addf %11, %18 : vector<4x288xf32>
    %20 = vector.extract_strided_slice %4 {offsets = [0, 2], sizes = [4, 288], strides = [1, 1]} : vector<4x314xf32> to vector<4x288xf32>
    %c2 = arith.constant 2 : index
    %c0_19 = arith.constant 0 : index
    %c0_20 = arith.constant 0 : index
    %21 = vector.load %arg7[%c2, %c0_19, %c0_20] : memref<9x4x288xf32, #tpu.memory_space<vmem>>, vector<1x4x288xf32>
    %22 = vector.shape_cast %21 : vector<1x4x288xf32> to vector<4x288xf32>
    %23 = arith.mulf %20, %22 : vector<4x288xf32>
    %c0_21 = arith.constant 0 : index
    %c2_22 = arith.constant 2 : index
    %c0_23 = arith.constant 0 : index
    %c0_24 = arith.constant 0 : index
    %24 = vector.load %arg1[%c0_21, %c2_22, %c0_23, %c0_24] : memref<3x9x4x4xf32, #tpu.memory_space<vmem>>, vector<1x1x4x4xf32>
    %25 = vector.shape_cast %24 : vector<1x1x4x4xf32> to vector<4x4xf32>
    %cst_25 = arith.constant dense<0.000000e+00> : vector<4x288xf32>
    %26 = tpu.matmul %25, %23, %cst_25 {dimension_numbers = #tpu.dot_dimension_numbers<[1], [0], [0], [1], [0, 0, 1, 1], [], []>} : vector<4x4xf32>, vector<4x288xf32>, vector<4x288xf32> -> vector<4x288xf32>
    %27 = arith.addf %19, %26 : vector<4x288xf32>
    %28 = vector.extract_strided_slice %4 {offsets = [0, 12], sizes = [4, 288], strides = [1, 1]} : vector<4x314xf32> to vector<4x288xf32>
    %c3 = arith.constant 3 : index
    %c0_26 = arith.constant 0 : index
    %c0_27 = arith.constant 0 : index
    %29 = vector.load %arg7[%c3, %c0_26, %c0_27] : memref<9x4x288xf32, #tpu.memory_space<vmem>>, vector<1x4x288xf32>
    %30 = vector.shape_cast %29 : vector<1x4x288xf32> to vector<4x288xf32>
    %31 = arith.mulf %28, %30 : vector<4x288xf32>
    %c0_28 = arith.constant 0 : index
    %c3_29 = arith.constant 3 : index
    %c0_30 = arith.constant 0 : index
    %c0_31 = arith.constant 0 : index
    %32 = vector.load %arg1[%c0_28, %c3_29, %c0_30, %c0_31] : memref<3x9x4x4xf32, #tpu.memory_space<vmem>>, vector<1x1x4x4xf32>
    %33 = vector.shape_cast %32 : vector<1x1x4x4xf32> to vector<4x4xf32>
    %cst_32 = arith.constant dense<0.000000e+00> : vector<4x288xf32>
    %34 = tpu.matmul %33, %31, %cst_32 {dimension_numbers = #tpu.dot_dimension_numbers<[1], [0], [0], [1], [0, 0, 1, 1], [], []>} : vector<4x4xf32>, vector<4x288xf32>, vector<4x288xf32> -> vector<4x288xf32>
    %35 = arith.addf %27, %34 : vector<4x288xf32>
    %36 = vector.extract_strided_slice %4 {offsets = [0, 13], sizes = [4, 288], strides = [1, 1]} : vector<4x314xf32> to vector<4x288xf32>
    %c0_33 = arith.constant 0 : index
    %c4 = arith.constant 4 : index
    %c0_34 = arith.constant 0 : index
    %c0_35 = arith.constant 0 : index
    %37 = vector.load %arg1[%c0_33, %c4, %c0_34, %c0_35] : memref<3x9x4x4xf32, #tpu.memory_space<vmem>>, vector<1x1x4x4xf32>
    %38 = vector.shape_cast %37 : vector<1x1x4x4xf32> to vector<4x4xf32>
    %cst_36 = arith.constant dense<0.000000e+00> : vector<4x288xf32>
    %39 = tpu.matmul %38, %36, %cst_36 {dimension_numbers = #tpu.dot_dimension_numbers<[1], [0], [0], [1], [0, 0, 1, 1], [], []>} : vector<4x4xf32>, vector<4x288xf32>, vector<4x288xf32> -> vector<4x288xf32>
    %40 = arith.addf %35, %39 : vector<4x288xf32>
    %41 = vector.extract_strided_slice %4 {offsets = [0, 14], sizes = [4, 288], strides = [1, 1]} : vector<4x314xf32> to vector<4x288xf32>
    %c5 = arith.constant 5 : index
    %c0_37 = arith.constant 0 : index
    %c0_38 = arith.constant 0 : index
    %42 = vector.load %arg7[%c5, %c0_37, %c0_38] : memref<9x4x288xf32, #tpu.memory_space<vmem>>, vector<1x4x288xf32>
    %43 = vector.shape_cast %42 : vector<1x4x288xf32> to vector<4x288xf32>
    %44 = arith.mulf %41, %43 : vector<4x288xf32>
    %c0_39 = arith.constant 0 : index
    %c5_40 = arith.constant 5 : index
    %c0_41 = arith.constant 0 : index
    %c0_42 = arith.constant 0 : index
    %45 = vector.load %arg1[%c0_39, %c5_40, %c0_41, %c0_42] : memref<3x9x4x4xf32, #tpu.memory_space<vmem>>, vector<1x1x4x4xf32>
    %46 = vector.shape_cast %45 : vector<1x1x4x4xf32> to vector<4x4xf32>
    %cst_43 = arith.constant dense<0.000000e+00> : vector<4x288xf32>
    %47 = tpu.matmul %46, %44, %cst_43 {dimension_numbers = #tpu.dot_dimension_numbers<[1], [0], [0], [1], [0, 0, 1, 1], [], []>} : vector<4x4xf32>, vector<4x288xf32>, vector<4x288xf32> -> vector<4x288xf32>
    %48 = arith.addf %40, %47 : vector<4x288xf32>
    %49 = vector.extract_strided_slice %4 {offsets = [0, 24], sizes = [4, 288], strides = [1, 1]} : vector<4x314xf32> to vector<4x288xf32>
    %c6 = arith.constant 6 : index
    %c0_44 = arith.constant 0 : index
    %c0_45 = arith.constant 0 : index
    %50 = vector.load %arg7[%c6, %c0_44, %c0_45] : memref<9x4x288xf32, #tpu.memory_space<vmem>>, vector<1x4x288xf32>
    %51 = vector.shape_cast %50 : vector<1x4x288xf32> to vector<4x288xf32>
    %52 = arith.mulf %49, %51 : vector<4x288xf32>
    %c0_46 = arith.constant 0 : index
    %c6_47 = arith.constant 6 : index
    %c0_48 = arith.constant 0 : index
    %c0_49 = arith.constant 0 : index
    %53 = vector.load %arg1[%c0_46, %c6_47, %c0_48, %c0_49] : memref<3x9x4x4xf32, #tpu.memory_space<vmem>>, vector<1x1x4x4xf32>
    %54 = vector.shape_cast %53 : vector<1x1x4x4xf32> to vector<4x4xf32>
    %cst_50 = arith.constant dense<0.000000e+00> : vector<4x288xf32>
    %55 = tpu.matmul %54, %52, %cst_50 {dimension_numbers = #tpu.dot_dimension_numbers<[1], [0], [0], [1], [0, 0, 1, 1], [], []>} : vector<4x4xf32>, vector<4x288xf32>, vector<4x288xf32> -> vector<4x288xf32>
    %56 = arith.addf %48, %55 : vector<4x288xf32>
    %57 = vector.extract_strided_slice %4 {offsets = [0, 25], sizes = [4, 288], strides = [1, 1]} : vector<4x314xf32> to vector<4x288xf32>
    %c7 = arith.constant 7 : index
    %c0_51 = arith.constant 0 : index
    %c0_52 = arith.constant 0 : index
    %58 = vector.load %arg7[%c7, %c0_51, %c0_52] : memref<9x4x288xf32, #tpu.memory_space<vmem>>, vector<1x4x288xf32>
    %59 = vector.shape_cast %58 : vector<1x4x288xf32> to vector<4x288xf32>
    %60 = arith.mulf %57, %59 : vector<4x288xf32>
    %c0_53 = arith.constant 0 : index
    %c7_54 = arith.constant 7 : index
    %c0_55 = arith.constant 0 : index
    %c0_56 = arith.constant 0 : index
    %61 = vector.load %arg1[%c0_53, %c7_54, %c0_55, %c0_56] : memref<3x9x4x4xf32, #tpu.memory_space<vmem>>, vector<1x1x4x4xf32>
    %62 = vector.shape_cast %61 : vector<1x1x4x4xf32> to vector<4x4xf32>
    %cst_57 = arith.constant dense<0.000000e+00> : vector<4x288xf32>
    %63 = tpu.matmul %62, %60, %cst_57 {dimension_numbers = #tpu.dot_dimension_numbers<[1], [0], [0], [1], [0, 0, 1, 1], [], []>} : vector<4x4xf32>, vector<4x288xf32>, vector<4x288xf32> -> vector<4x288xf32>
    %64 = arith.addf %56, %63 : vector<4x288xf32>
    %65 = vector.extract_strided_slice %4 {offsets = [0, 26], sizes = [4, 288], strides = [1, 1]} : vector<4x314xf32> to vector<4x288xf32>
    %c8 = arith.constant 8 : index
    %c0_58 = arith.constant 0 : index
    %c0_59 = arith.constant 0 : index
    %66 = vector.load %arg7[%c8, %c0_58, %c0_59] : memref<9x4x288xf32, #tpu.memory_space<vmem>>, vector<1x4x288xf32>
    %67 = vector.shape_cast %66 : vector<1x4x288xf32> to vector<4x288xf32>
    %68 = arith.mulf %65, %67 : vector<4x288xf32>
    %c0_60 = arith.constant 0 : index
    %c8_61 = arith.constant 8 : index
    %c0_62 = arith.constant 0 : index
    %c0_63 = arith.constant 0 : index
    %69 = vector.load %arg1[%c0_60, %c8_61, %c0_62, %c0_63] : memref<3x9x4x4xf32, #tpu.memory_space<vmem>>, vector<1x1x4x4xf32>
    %70 = vector.shape_cast %69 : vector<1x1x4x4xf32> to vector<4x4xf32>
    %cst_64 = arith.constant dense<0.000000e+00> : vector<4x288xf32>
    %71 = tpu.matmul %70, %68, %cst_64 {dimension_numbers = #tpu.dot_dimension_numbers<[1], [0], [0], [1], [0, 0, 1, 1], [], []>} : vector<4x4xf32>, vector<4x288xf32>, vector<4x288xf32> -> vector<4x288xf32>
    %72 = arith.addf %64, %71 : vector<4x288xf32>
    %c0_65 = arith.constant 0 : index
    %c0_66 = arith.constant 0 : index
    %c0_67 = arith.constant 0 : index
    %73 = vector.load %arg2[%c0_65, %c0_66, %c0_67] : memref<3x4x3xf32, #tpu.memory_space<vmem>>, vector<1x4x3xf32>
    %74 = vector.shape_cast %73 : vector<1x4x3xf32> to vector<4x3xf32>
    %75 = vector.extract_strided_slice %74 {offsets = [0, 0], sizes = [4, 1], strides = [1, 1]} : vector<4x3xf32> to vector<4x1xf32>
    %76 = vector.broadcast %75 : vector<4x1xf32> to vector<4x288xf32>
    %77 = arith.addf %72, %76 : vector<4x288xf32>
    %cst_68 = arith.constant 0.000000e+00 : f32
    %78 = vector.broadcast %cst_68 : f32 to vector<4x288xf32>
    %79 = arith.maximumf %77, %78 : vector<4x288xf32>
    %80 = arith.mulf %79, %79 : vector<4x288xf32>
    %81 = tpu.concatenate %79, %80 in 0 : vector<4x288xf32>, vector<4x288xf32> -> vector<8x288xf32>
    %cst_69 = arith.constant dense<0.000000e+00> : vector<8xf32>
    %82 = vector.multi_reduction <add>, %81, %cst_69 [1] : vector<8x288xf32> to vector<8xf32>
    %83 = vector.shape_cast %82 : vector<8xf32> to vector<8x1xf32>
    %84 = vector.extract_strided_slice %83 {offsets = [0, 0], sizes = [4, 1], strides = [1, 1]} : vector<8x1xf32> to vector<4x1xf32>
    %cst_70 = arith.constant 0.00347222225 : f32
    %85 = vector.broadcast %cst_70 : f32 to vector<4x1xf32>
    %86 = arith.mulf %84, %85 : vector<4x1xf32>
    %87 = vector.extract_strided_slice %83 {offsets = [4, 0], sizes = [4, 1], strides = [1, 1]} : vector<8x1xf32> to vector<4x1xf32>
    %cst_71 = arith.constant 0.00347222225 : f32
    %88 = vector.broadcast %cst_71 : f32 to vector<4x1xf32>
    %89 = arith.mulf %87, %88 : vector<4x1xf32>
    %90 = arith.mulf %86, %86 : vector<4x1xf32>
    %91 = arith.subf %89, %90 : vector<4x1xf32>
    %92 = vector.broadcast %86 : vector<4x1xf32> to vector<4x288xf32>
    %93 = arith.subf %79, %92 : vector<4x288xf32>
    %cst_72 = arith.constant 9.99999974E-6 : f32
    %94 = vector.broadcast %cst_72 : f32 to vector<4x1xf32>
    %95 = arith.addf %91, %94 : vector<4x1xf32>
    %96 = math.rsqrt %95 : vector<4x1xf32>
    %97 = vector.broadcast %96 : vector<4x1xf32> to vector<4x288xf32>
    %98 = arith.mulf %93, %97 : vector<4x288xf32>
    %99 = vector.extract_strided_slice %74 {offsets = [0, 1], sizes = [4, 1], strides = [1, 1]} : vector<4x3xf32> to vector<4x1xf32>
    %100 = vector.broadcast %99 : vector<4x1xf32> to vector<4x288xf32>
    %101 = arith.mulf %98, %100 : vector<4x288xf32>
    %102 = vector.extract_strided_slice %74 {offsets = [0, 2], sizes = [4, 1], strides = [1, 1]} : vector<4x3xf32> to vector<4x1xf32>
    %103 = vector.broadcast %102 : vector<4x1xf32> to vector<4x288xf32>
    %104 = arith.addf %101, %103 : vector<4x288xf32>
    %c0_73 = arith.constant 0 : index
    %c0_74 = arith.constant 0 : index
    %105 = vector.load %arg6[%c0_73, %c0_74] : memref<288x512xf32, #tpu.memory_space<vmem>>, vector<288x512xf32>
    %cst_75 = arith.constant dense<0.000000e+00> : vector<4x512xf32>
    %106 = tpu.matmul %104, %105, %cst_75 {dimension_numbers = #tpu.dot_dimension_numbers<[1], [0], [0], [1], [0, 0, 1, 1], [], []>} : vector<4x288xf32>, vector<288x512xf32>, vector<4x512xf32> -> vector<4x512xf32>
    %cst_76 = arith.constant 0.000000e+00 : f32
    %107 = vector.broadcast %cst_76 : f32 to vector<4x17xf32>
    %108 = tpu.concatenate %107, %106, %107 in 1 : vector<4x17xf32>, vector<4x512xf32>, vector<4x17xf32> -> vector<4x546xf32>
    %109 = vector.extract_strided_slice %108 {offsets = [0, 0], sizes = [4, 512], strides = [1, 1]} : vector<4x546xf32> to vector<4x512xf32>
    %c0_77 = arith.constant 0 : index
    %c0_78 = arith.constant 0 : index
    %c0_79 = arith.constant 0 : index
    %110 = vector.load %arg8[%c0_77, %c0_78, %c0_79] : memref<9x4x512xf32, #tpu.memory_space<vmem>>, vector<1x4x512xf32>
    %111 = vector.shape_cast %110 : vector<1x4x512xf32> to vector<4x512xf32>
    %112 = arith.mulf %109, %111 : vector<4x512xf32>
    %c1_80 = arith.constant 1 : index
    %c0_81 = arith.constant 0 : index
    %c0_82 = arith.constant 0 : index
    %c0_83 = arith.constant 0 : index
    %113 = vector.load %arg1[%c1_80, %c0_81, %c0_82, %c0_83] : memref<3x9x4x4xf32, #tpu.memory_space<vmem>>, vector<1x1x4x4xf32>
    %114 = vector.shape_cast %113 : vector<1x1x4x4xf32> to vector<4x4xf32>
    %cst_84 = arith.constant dense<0.000000e+00> : vector<4x512xf32>
    %115 = tpu.matmul %114, %112, %cst_84 {dimension_numbers = #tpu.dot_dimension_numbers<[1], [0], [0], [1], [0, 0, 1, 1], [], []>} : vector<4x4xf32>, vector<4x512xf32>, vector<4x512xf32> -> vector<4x512xf32>
    %116 = vector.extract_strided_slice %108 {offsets = [0, 1], sizes = [4, 512], strides = [1, 1]} : vector<4x546xf32> to vector<4x512xf32>
    %c1_85 = arith.constant 1 : index
    %c0_86 = arith.constant 0 : index
    %c0_87 = arith.constant 0 : index
    %117 = vector.load %arg8[%c1_85, %c0_86, %c0_87] : memref<9x4x512xf32, #tpu.memory_space<vmem>>, vector<1x4x512xf32>
    %118 = vector.shape_cast %117 : vector<1x4x512xf32> to vector<4x512xf32>
    %119 = arith.mulf %116, %118 : vector<4x512xf32>
    %c1_88 = arith.constant 1 : index
    %c1_89 = arith.constant 1 : index
    %c0_90 = arith.constant 0 : index
    %c0_91 = arith.constant 0 : index
    %120 = vector.load %arg1[%c1_88, %c1_89, %c0_90, %c0_91] : memref<3x9x4x4xf32, #tpu.memory_space<vmem>>, vector<1x1x4x4xf32>
    %121 = vector.shape_cast %120 : vector<1x1x4x4xf32> to vector<4x4xf32>
    %cst_92 = arith.constant dense<0.000000e+00> : vector<4x512xf32>
    %122 = tpu.matmul %121, %119, %cst_92 {dimension_numbers = #tpu.dot_dimension_numbers<[1], [0], [0], [1], [0, 0, 1, 1], [], []>} : vector<4x4xf32>, vector<4x512xf32>, vector<4x512xf32> -> vector<4x512xf32>
    %123 = arith.addf %115, %122 : vector<4x512xf32>
    %124 = vector.extract_strided_slice %108 {offsets = [0, 2], sizes = [4, 512], strides = [1, 1]} : vector<4x546xf32> to vector<4x512xf32>
    %c2_93 = arith.constant 2 : index
    %c0_94 = arith.constant 0 : index
    %c0_95 = arith.constant 0 : index
    %125 = vector.load %arg8[%c2_93, %c0_94, %c0_95] : memref<9x4x512xf32, #tpu.memory_space<vmem>>, vector<1x4x512xf32>
    %126 = vector.shape_cast %125 : vector<1x4x512xf32> to vector<4x512xf32>
    %127 = arith.mulf %124, %126 : vector<4x512xf32>
    %c1_96 = arith.constant 1 : index
    %c2_97 = arith.constant 2 : index
    %c0_98 = arith.constant 0 : index
    %c0_99 = arith.constant 0 : index
    %128 = vector.load %arg1[%c1_96, %c2_97, %c0_98, %c0_99] : memref<3x9x4x4xf32, #tpu.memory_space<vmem>>, vector<1x1x4x4xf32>
    %129 = vector.shape_cast %128 : vector<1x1x4x4xf32> to vector<4x4xf32>
    %cst_100 = arith.constant dense<0.000000e+00> : vector<4x512xf32>
    %130 = tpu.matmul %129, %127, %cst_100 {dimension_numbers = #tpu.dot_dimension_numbers<[1], [0], [0], [1], [0, 0, 1, 1], [], []>} : vector<4x4xf32>, vector<4x512xf32>, vector<4x512xf32> -> vector<4x512xf32>
    %131 = arith.addf %123, %130 : vector<4x512xf32>
    %132 = vector.extract_strided_slice %108 {offsets = [0, 16], sizes = [4, 512], strides = [1, 1]} : vector<4x546xf32> to vector<4x512xf32>
    %c3_101 = arith.constant 3 : index
    %c0_102 = arith.constant 0 : index
    %c0_103 = arith.constant 0 : index
    %133 = vector.load %arg8[%c3_101, %c0_102, %c0_103] : memref<9x4x512xf32, #tpu.memory_space<vmem>>, vector<1x4x512xf32>
    %134 = vector.shape_cast %133 : vector<1x4x512xf32> to vector<4x512xf32>
    %135 = arith.mulf %132, %134 : vector<4x512xf32>
    %c1_104 = arith.constant 1 : index
    %c3_105 = arith.constant 3 : index
    %c0_106 = arith.constant 0 : index
    %c0_107 = arith.constant 0 : index
    %136 = vector.load %arg1[%c1_104, %c3_105, %c0_106, %c0_107] : memref<3x9x4x4xf32, #tpu.memory_space<vmem>>, vector<1x1x4x4xf32>
    %137 = vector.shape_cast %136 : vector<1x1x4x4xf32> to vector<4x4xf32>
    %cst_108 = arith.constant dense<0.000000e+00> : vector<4x512xf32>
    %138 = tpu.matmul %137, %135, %cst_108 {dimension_numbers = #tpu.dot_dimension_numbers<[1], [0], [0], [1], [0, 0, 1, 1], [], []>} : vector<4x4xf32>, vector<4x512xf32>, vector<4x512xf32> -> vector<4x512xf32>
    %139 = arith.addf %131, %138 : vector<4x512xf32>
    %140 = vector.extract_strided_slice %108 {offsets = [0, 17], sizes = [4, 512], strides = [1, 1]} : vector<4x546xf32> to vector<4x512xf32>
    %c1_109 = arith.constant 1 : index
    %c4_110 = arith.constant 4 : index
    %c0_111 = arith.constant 0 : index
    %c0_112 = arith.constant 0 : index
    %141 = vector.load %arg1[%c1_109, %c4_110, %c0_111, %c0_112] : memref<3x9x4x4xf32, #tpu.memory_space<vmem>>, vector<1x1x4x4xf32>
    %142 = vector.shape_cast %141 : vector<1x1x4x4xf32> to vector<4x4xf32>
    %cst_113 = arith.constant dense<0.000000e+00> : vector<4x512xf32>
    %143 = tpu.matmul %142, %140, %cst_113 {dimension_numbers = #tpu.dot_dimension_numbers<[1], [0], [0], [1], [0, 0, 1, 1], [], []>} : vector<4x4xf32>, vector<4x512xf32>, vector<4x512xf32> -> vector<4x512xf32>
    %144 = arith.addf %139, %143 : vector<4x512xf32>
    %145 = vector.extract_strided_slice %108 {offsets = [0, 18], sizes = [4, 512], strides = [1, 1]} : vector<4x546xf32> to vector<4x512xf32>
    %c5_114 = arith.constant 5 : index
    %c0_115 = arith.constant 0 : index
    %c0_116 = arith.constant 0 : index
    %146 = vector.load %arg8[%c5_114, %c0_115, %c0_116] : memref<9x4x512xf32, #tpu.memory_space<vmem>>, vector<1x4x512xf32>
    %147 = vector.shape_cast %146 : vector<1x4x512xf32> to vector<4x512xf32>
    %148 = arith.mulf %145, %147 : vector<4x512xf32>
    %c1_117 = arith.constant 1 : index
    %c5_118 = arith.constant 5 : index
    %c0_119 = arith.constant 0 : index
    %c0_120 = arith.constant 0 : index
    %149 = vector.load %arg1[%c1_117, %c5_118, %c0_119, %c0_120] : memref<3x9x4x4xf32, #tpu.memory_space<vmem>>, vector<1x1x4x4xf32>
    %150 = vector.shape_cast %149 : vector<1x1x4x4xf32> to vector<4x4xf32>
    %cst_121 = arith.constant dense<0.000000e+00> : vector<4x512xf32>
    %151 = tpu.matmul %150, %148, %cst_121 {dimension_numbers = #tpu.dot_dimension_numbers<[1], [0], [0], [1], [0, 0, 1, 1], [], []>} : vector<4x4xf32>, vector<4x512xf32>, vector<4x512xf32> -> vector<4x512xf32>
    %152 = arith.addf %144, %151 : vector<4x512xf32>
    %153 = vector.extract_strided_slice %108 {offsets = [0, 32], sizes = [4, 512], strides = [1, 1]} : vector<4x546xf32> to vector<4x512xf32>
    %c6_122 = arith.constant 6 : index
    %c0_123 = arith.constant 0 : index
    %c0_124 = arith.constant 0 : index
    %154 = vector.load %arg8[%c6_122, %c0_123, %c0_124] : memref<9x4x512xf32, #tpu.memory_space<vmem>>, vector<1x4x512xf32>
    %155 = vector.shape_cast %154 : vector<1x4x512xf32> to vector<4x512xf32>
    %156 = arith.mulf %153, %155 : vector<4x512xf32>
    %c1_125 = arith.constant 1 : index
    %c6_126 = arith.constant 6 : index
    %c0_127 = arith.constant 0 : index
    %c0_128 = arith.constant 0 : index
    %157 = vector.load %arg1[%c1_125, %c6_126, %c0_127, %c0_128] : memref<3x9x4x4xf32, #tpu.memory_space<vmem>>, vector<1x1x4x4xf32>
    %158 = vector.shape_cast %157 : vector<1x1x4x4xf32> to vector<4x4xf32>
    %cst_129 = arith.constant dense<0.000000e+00> : vector<4x512xf32>
    %159 = tpu.matmul %158, %156, %cst_129 {dimension_numbers = #tpu.dot_dimension_numbers<[1], [0], [0], [1], [0, 0, 1, 1], [], []>} : vector<4x4xf32>, vector<4x512xf32>, vector<4x512xf32> -> vector<4x512xf32>
    %160 = arith.addf %152, %159 : vector<4x512xf32>
    %161 = vector.extract_strided_slice %108 {offsets = [0, 33], sizes = [4, 512], strides = [1, 1]} : vector<4x546xf32> to vector<4x512xf32>
    %c7_130 = arith.constant 7 : index
    %c0_131 = arith.constant 0 : index
    %c0_132 = arith.constant 0 : index
    %162 = vector.load %arg8[%c7_130, %c0_131, %c0_132] : memref<9x4x512xf32, #tpu.memory_space<vmem>>, vector<1x4x512xf32>
    %163 = vector.shape_cast %162 : vector<1x4x512xf32> to vector<4x512xf32>
    %164 = arith.mulf %161, %163 : vector<4x512xf32>
    %c1_133 = arith.constant 1 : index
    %c7_134 = arith.constant 7 : index
    %c0_135 = arith.constant 0 : index
    %c0_136 = arith.constant 0 : index
    %165 = vector.load %arg1[%c1_133, %c7_134, %c0_135, %c0_136] : memref<3x9x4x4xf32, #tpu.memory_space<vmem>>, vector<1x1x4x4xf32>
    %166 = vector.shape_cast %165 : vector<1x1x4x4xf32> to vector<4x4xf32>
    %cst_137 = arith.constant dense<0.000000e+00> : vector<4x512xf32>
    %167 = tpu.matmul %166, %164, %cst_137 {dimension_numbers = #tpu.dot_dimension_numbers<[1], [0], [0], [1], [0, 0, 1, 1], [], []>} : vector<4x4xf32>, vector<4x512xf32>, vector<4x512xf32> -> vector<4x512xf32>
    %168 = arith.addf %160, %167 : vector<4x512xf32>
    %169 = vector.extract_strided_slice %108 {offsets = [0, 34], sizes = [4, 512], strides = [1, 1]} : vector<4x546xf32> to vector<4x512xf32>
    %c8_138 = arith.constant 8 : index
    %c0_139 = arith.constant 0 : index
    %c0_140 = arith.constant 0 : index
    %170 = vector.load %arg8[%c8_138, %c0_139, %c0_140] : memref<9x4x512xf32, #tpu.memory_space<vmem>>, vector<1x4x512xf32>
    %171 = vector.shape_cast %170 : vector<1x4x512xf32> to vector<4x512xf32>
    %172 = arith.mulf %169, %171 : vector<4x512xf32>
    %c1_141 = arith.constant 1 : index
    %c8_142 = arith.constant 8 : index
    %c0_143 = arith.constant 0 : index
    %c0_144 = arith.constant 0 : index
    %173 = vector.load %arg1[%c1_141, %c8_142, %c0_143, %c0_144] : memref<3x9x4x4xf32, #tpu.memory_space<vmem>>, vector<1x1x4x4xf32>
    %174 = vector.shape_cast %173 : vector<1x1x4x4xf32> to vector<4x4xf32>
    %cst_145 = arith.constant dense<0.000000e+00> : vector<4x512xf32>
    %175 = tpu.matmul %174, %172, %cst_145 {dimension_numbers = #tpu.dot_dimension_numbers<[1], [0], [0], [1], [0, 0, 1, 1], [], []>} : vector<4x4xf32>, vector<4x512xf32>, vector<4x512xf32> -> vector<4x512xf32>
    %176 = arith.addf %168, %175 : vector<4x512xf32>
    %c1_146 = arith.constant 1 : index
    %c0_147 = arith.constant 0 : index
    %c0_148 = arith.constant 0 : index
    %177 = vector.load %arg2[%c1_146, %c0_147, %c0_148] : memref<3x4x3xf32, #tpu.memory_space<vmem>>, vector<1x4x3xf32>
    %178 = vector.shape_cast %177 : vector<1x4x3xf32> to vector<4x3xf32>
    %179 = vector.extract_strided_slice %178 {offsets = [0, 0], sizes = [4, 1], strides = [1, 1]} : vector<4x3xf32> to vector<4x1xf32>
    %180 = vector.broadcast %179 : vector<4x1xf32> to vector<4x512xf32>
    %181 = arith.addf %176, %180 : vector<4x512xf32>
    %cst_149 = arith.constant 0.000000e+00 : f32
    %182 = vector.broadcast %cst_149 : f32 to vector<4x512xf32>
    %183 = arith.maximumf %181, %182 : vector<4x512xf32>
    %184 = arith.mulf %183, %183 : vector<4x512xf32>
    %185 = tpu.concatenate %183, %184 in 0 : vector<4x512xf32>, vector<4x512xf32> -> vector<8x512xf32>
    %cst_150 = arith.constant dense<0.000000e+00> : vector<8xf32>
    %186 = vector.multi_reduction <add>, %185, %cst_150 [1] : vector<8x512xf32> to vector<8xf32>
    %187 = vector.shape_cast %186 : vector<8xf32> to vector<8x1xf32>
    %188 = vector.extract_strided_slice %187 {offsets = [0, 0], sizes = [4, 1], strides = [1, 1]} : vector<8x1xf32> to vector<4x1xf32>
    %cst_151 = arith.constant 0.001953125 : f32
    %189 = vector.broadcast %cst_151 : f32 to vector<4x1xf32>
    %190 = arith.mulf %188, %189 : vector<4x1xf32>
    %191 = vector.extract_strided_slice %187 {offsets = [4, 0], sizes = [4, 1], strides = [1, 1]} : vector<8x1xf32> to vector<4x1xf32>
    %cst_152 = arith.constant 0.001953125 : f32
    %192 = vector.broadcast %cst_152 : f32 to vector<4x1xf32>
    %193 = arith.mulf %191, %192 : vector<4x1xf32>
    %194 = arith.mulf %190, %190 : vector<4x1xf32>
    %195 = arith.subf %193, %194 : vector<4x1xf32>
    %196 = vector.broadcast %190 : vector<4x1xf32> to vector<4x512xf32>
    %197 = arith.subf %183, %196 : vector<4x512xf32>
    %cst_153 = arith.constant 9.99999974E-6 : f32
    %198 = vector.broadcast %cst_153 : f32 to vector<4x1xf32>
    %199 = arith.addf %195, %198 : vector<4x1xf32>
    %200 = math.rsqrt %199 : vector<4x1xf32>
    %201 = vector.broadcast %200 : vector<4x1xf32> to vector<4x512xf32>
    %202 = arith.mulf %197, %201 : vector<4x512xf32>
    %203 = vector.extract_strided_slice %178 {offsets = [0, 1], sizes = [4, 1], strides = [1, 1]} : vector<4x3xf32> to vector<4x1xf32>
    %204 = vector.broadcast %203 : vector<4x1xf32> to vector<4x512xf32>
    %205 = arith.mulf %202, %204 : vector<4x512xf32>
    %206 = vector.extract_strided_slice %178 {offsets = [0, 2], sizes = [4, 1], strides = [1, 1]} : vector<4x3xf32> to vector<4x1xf32>
    %207 = vector.broadcast %206 : vector<4x1xf32> to vector<4x512xf32>
    %208 = arith.addf %205, %207 : vector<4x512xf32>
    %cst_154 = arith.constant 0.000000e+00 : f32
    %209 = vector.broadcast %cst_154 : f32 to vector<4x17xf32>
    %210 = tpu.concatenate %209, %208, %209 in 1 : vector<4x17xf32>, vector<4x512xf32>, vector<4x17xf32> -> vector<4x546xf32>
    %211 = vector.extract_strided_slice %210 {offsets = [0, 0], sizes = [4, 512], strides = [1, 1]} : vector<4x546xf32> to vector<4x512xf32>
    %c0_155 = arith.constant 0 : index
    %c0_156 = arith.constant 0 : index
    %c0_157 = arith.constant 0 : index
    %212 = vector.load %arg8[%c0_155, %c0_156, %c0_157] : memref<9x4x512xf32, #tpu.memory_space<vmem>>, vector<1x4x512xf32>
    %213 = vector.shape_cast %212 : vector<1x4x512xf32> to vector<4x512xf32>
    %214 = arith.mulf %211, %213 : vector<4x512xf32>
    %c2_158 = arith.constant 2 : index
    %c0_159 = arith.constant 0 : index
    %c0_160 = arith.constant 0 : index
    %c0_161 = arith.constant 0 : index
    %215 = vector.load %arg1[%c2_158, %c0_159, %c0_160, %c0_161] : memref<3x9x4x4xf32, #tpu.memory_space<vmem>>, vector<1x1x4x4xf32>
    %216 = vector.shape_cast %215 : vector<1x1x4x4xf32> to vector<4x4xf32>
    %cst_162 = arith.constant dense<0.000000e+00> : vector<4x512xf32>
    %217 = tpu.matmul %216, %214, %cst_162 {dimension_numbers = #tpu.dot_dimension_numbers<[1], [0], [0], [1], [0, 0, 1, 1], [], []>} : vector<4x4xf32>, vector<4x512xf32>, vector<4x512xf32> -> vector<4x512xf32>
    %218 = vector.extract_strided_slice %210 {offsets = [0, 1], sizes = [4, 512], strides = [1, 1]} : vector<4x546xf32> to vector<4x512xf32>
    %c1_163 = arith.constant 1 : index
    %c0_164 = arith.constant 0 : index
    %c0_165 = arith.constant 0 : index
    %219 = vector.load %arg8[%c1_163, %c0_164, %c0_165] : memref<9x4x512xf32, #tpu.memory_space<vmem>>, vector<1x4x512xf32>
    %220 = vector.shape_cast %219 : vector<1x4x512xf32> to vector<4x512xf32>
    %221 = arith.mulf %218, %220 : vector<4x512xf32>
    %c2_166 = arith.constant 2 : index
    %c1_167 = arith.constant 1 : index
    %c0_168 = arith.constant 0 : index
    %c0_169 = arith.constant 0 : index
    %222 = vector.load %arg1[%c2_166, %c1_167, %c0_168, %c0_169] : memref<3x9x4x4xf32, #tpu.memory_space<vmem>>, vector<1x1x4x4xf32>
    %223 = vector.shape_cast %222 : vector<1x1x4x4xf32> to vector<4x4xf32>
    %cst_170 = arith.constant dense<0.000000e+00> : vector<4x512xf32>
    %224 = tpu.matmul %223, %221, %cst_170 {dimension_numbers = #tpu.dot_dimension_numbers<[1], [0], [0], [1], [0, 0, 1, 1], [], []>} : vector<4x4xf32>, vector<4x512xf32>, vector<4x512xf32> -> vector<4x512xf32>
    %225 = arith.addf %217, %224 : vector<4x512xf32>
    %226 = vector.extract_strided_slice %210 {offsets = [0, 2], sizes = [4, 512], strides = [1, 1]} : vector<4x546xf32> to vector<4x512xf32>
    %c2_171 = arith.constant 2 : index
    %c0_172 = arith.constant 0 : index
    %c0_173 = arith.constant 0 : index
    %227 = vector.load %arg8[%c2_171, %c0_172, %c0_173] : memref<9x4x512xf32, #tpu.memory_space<vmem>>, vector<1x4x512xf32>
    %228 = vector.shape_cast %227 : vector<1x4x512xf32> to vector<4x512xf32>
    %229 = arith.mulf %226, %228 : vector<4x512xf32>
    %c2_174 = arith.constant 2 : index
    %c2_175 = arith.constant 2 : index
    %c0_176 = arith.constant 0 : index
    %c0_177 = arith.constant 0 : index
    %230 = vector.load %arg1[%c2_174, %c2_175, %c0_176, %c0_177] : memref<3x9x4x4xf32, #tpu.memory_space<vmem>>, vector<1x1x4x4xf32>
    %231 = vector.shape_cast %230 : vector<1x1x4x4xf32> to vector<4x4xf32>
    %cst_178 = arith.constant dense<0.000000e+00> : vector<4x512xf32>
    %232 = tpu.matmul %231, %229, %cst_178 {dimension_numbers = #tpu.dot_dimension_numbers<[1], [0], [0], [1], [0, 0, 1, 1], [], []>} : vector<4x4xf32>, vector<4x512xf32>, vector<4x512xf32> -> vector<4x512xf32>
    %233 = arith.addf %225, %232 : vector<4x512xf32>
    %234 = vector.extract_strided_slice %210 {offsets = [0, 16], sizes = [4, 512], strides = [1, 1]} : vector<4x546xf32> to vector<4x512xf32>
    %c3_179 = arith.constant 3 : index
    %c0_180 = arith.constant 0 : index
    %c0_181 = arith.constant 0 : index
    %235 = vector.load %arg8[%c3_179, %c0_180, %c0_181] : memref<9x4x512xf32, #tpu.memory_space<vmem>>, vector<1x4x512xf32>
    %236 = vector.shape_cast %235 : vector<1x4x512xf32> to vector<4x512xf32>
    %237 = arith.mulf %234, %236 : vector<4x512xf32>
    %c2_182 = arith.constant 2 : index
    %c3_183 = arith.constant 3 : index
    %c0_184 = arith.constant 0 : index
    %c0_185 = arith.constant 0 : index
    %238 = vector.load %arg1[%c2_182, %c3_183, %c0_184, %c0_185] : memref<3x9x4x4xf32, #tpu.memory_space<vmem>>, vector<1x1x4x4xf32>
    %239 = vector.shape_cast %238 : vector<1x1x4x4xf32> to vector<4x4xf32>
    %cst_186 = arith.constant dense<0.000000e+00> : vector<4x512xf32>
    %240 = tpu.matmul %239, %237, %cst_186 {dimension_numbers = #tpu.dot_dimension_numbers<[1], [0], [0], [1], [0, 0, 1, 1], [], []>} : vector<4x4xf32>, vector<4x512xf32>, vector<4x512xf32> -> vector<4x512xf32>
    %241 = arith.addf %233, %240 : vector<4x512xf32>
    %242 = vector.extract_strided_slice %210 {offsets = [0, 17], sizes = [4, 512], strides = [1, 1]} : vector<4x546xf32> to vector<4x512xf32>
    %c2_187 = arith.constant 2 : index
    %c4_188 = arith.constant 4 : index
    %c0_189 = arith.constant 0 : index
    %c0_190 = arith.constant 0 : index
    %243 = vector.load %arg1[%c2_187, %c4_188, %c0_189, %c0_190] : memref<3x9x4x4xf32, #tpu.memory_space<vmem>>, vector<1x1x4x4xf32>
    %244 = vector.shape_cast %243 : vector<1x1x4x4xf32> to vector<4x4xf32>
    %cst_191 = arith.constant dense<0.000000e+00> : vector<4x512xf32>
    %245 = tpu.matmul %244, %242, %cst_191 {dimension_numbers = #tpu.dot_dimension_numbers<[1], [0], [0], [1], [0, 0, 1, 1], [], []>} : vector<4x4xf32>, vector<4x512xf32>, vector<4x512xf32> -> vector<4x512xf32>
    %246 = arith.addf %241, %245 : vector<4x512xf32>
    %247 = vector.extract_strided_slice %210 {offsets = [0, 18], sizes = [4, 512], strides = [1, 1]} : vector<4x546xf32> to vector<4x512xf32>
    %c5_192 = arith.constant 5 : index
    %c0_193 = arith.constant 0 : index
    %c0_194 = arith.constant 0 : index
    %248 = vector.load %arg8[%c5_192, %c0_193, %c0_194] : memref<9x4x512xf32, #tpu.memory_space<vmem>>, vector<1x4x512xf32>
    %249 = vector.shape_cast %248 : vector<1x4x512xf32> to vector<4x512xf32>
    %250 = arith.mulf %247, %249 : vector<4x512xf32>
    %c2_195 = arith.constant 2 : index
    %c5_196 = arith.constant 5 : index
    %c0_197 = arith.constant 0 : index
    %c0_198 = arith.constant 0 : index
    %251 = vector.load %arg1[%c2_195, %c5_196, %c0_197, %c0_198] : memref<3x9x4x4xf32, #tpu.memory_space<vmem>>, vector<1x1x4x4xf32>
    %252 = vector.shape_cast %251 : vector<1x1x4x4xf32> to vector<4x4xf32>
    %cst_199 = arith.constant dense<0.000000e+00> : vector<4x512xf32>
    %253 = tpu.matmul %252, %250, %cst_199 {dimension_numbers = #tpu.dot_dimension_numbers<[1], [0], [0], [1], [0, 0, 1, 1], [], []>} : vector<4x4xf32>, vector<4x512xf32>, vector<4x512xf32> -> vector<4x512xf32>
    %254 = arith.addf %246, %253 : vector<4x512xf32>
    %255 = vector.extract_strided_slice %210 {offsets = [0, 32], sizes = [4, 512], strides = [1, 1]} : vector<4x546xf32> to vector<4x512xf32>
    %c6_200 = arith.constant 6 : index
    %c0_201 = arith.constant 0 : index
    %c0_202 = arith.constant 0 : index
    %256 = vector.load %arg8[%c6_200, %c0_201, %c0_202] : memref<9x4x512xf32, #tpu.memory_space<vmem>>, vector<1x4x512xf32>
    %257 = vector.shape_cast %256 : vector<1x4x512xf32> to vector<4x512xf32>
    %258 = arith.mulf %255, %257 : vector<4x512xf32>
    %c2_203 = arith.constant 2 : index
    %c6_204 = arith.constant 6 : index
    %c0_205 = arith.constant 0 : index
    %c0_206 = arith.constant 0 : index
    %259 = vector.load %arg1[%c2_203, %c6_204, %c0_205, %c0_206] : memref<3x9x4x4xf32, #tpu.memory_space<vmem>>, vector<1x1x4x4xf32>
    %260 = vector.shape_cast %259 : vector<1x1x4x4xf32> to vector<4x4xf32>
    %cst_207 = arith.constant dense<0.000000e+00> : vector<4x512xf32>
    %261 = tpu.matmul %260, %258, %cst_207 {dimension_numbers = #tpu.dot_dimension_numbers<[1], [0], [0], [1], [0, 0, 1, 1], [], []>} : vector<4x4xf32>, vector<4x512xf32>, vector<4x512xf32> -> vector<4x512xf32>
    %262 = arith.addf %254, %261 : vector<4x512xf32>
    %263 = vector.extract_strided_slice %210 {offsets = [0, 33], sizes = [4, 512], strides = [1, 1]} : vector<4x546xf32> to vector<4x512xf32>
    %c7_208 = arith.constant 7 : index
    %c0_209 = arith.constant 0 : index
    %c0_210 = arith.constant 0 : index
    %264 = vector.load %arg8[%c7_208, %c0_209, %c0_210] : memref<9x4x512xf32, #tpu.memory_space<vmem>>, vector<1x4x512xf32>
    %265 = vector.shape_cast %264 : vector<1x4x512xf32> to vector<4x512xf32>
    %266 = arith.mulf %263, %265 : vector<4x512xf32>
    %c2_211 = arith.constant 2 : index
    %c7_212 = arith.constant 7 : index
    %c0_213 = arith.constant 0 : index
    %c0_214 = arith.constant 0 : index
    %267 = vector.load %arg1[%c2_211, %c7_212, %c0_213, %c0_214] : memref<3x9x4x4xf32, #tpu.memory_space<vmem>>, vector<1x1x4x4xf32>
    %268 = vector.shape_cast %267 : vector<1x1x4x4xf32> to vector<4x4xf32>
    %cst_215 = arith.constant dense<0.000000e+00> : vector<4x512xf32>
    %269 = tpu.matmul %268, %266, %cst_215 {dimension_numbers = #tpu.dot_dimension_numbers<[1], [0], [0], [1], [0, 0, 1, 1], [], []>} : vector<4x4xf32>, vector<4x512xf32>, vector<4x512xf32> -> vector<4x512xf32>
    %270 = arith.addf %262, %269 : vector<4x512xf32>
    %271 = vector.extract_strided_slice %210 {offsets = [0, 34], sizes = [4, 512], strides = [1, 1]} : vector<4x546xf32> to vector<4x512xf32>
    %c8_216 = arith.constant 8 : index
    %c0_217 = arith.constant 0 : index
    %c0_218 = arith.constant 0 : index
    %272 = vector.load %arg8[%c8_216, %c0_217, %c0_218] : memref<9x4x512xf32, #tpu.memory_space<vmem>>, vector<1x4x512xf32>
    %273 = vector.shape_cast %272 : vector<1x4x512xf32> to vector<4x512xf32>
    %274 = arith.mulf %271, %273 : vector<4x512xf32>
    %c2_219 = arith.constant 2 : index
    %c8_220 = arith.constant 8 : index
    %c0_221 = arith.constant 0 : index
    %c0_222 = arith.constant 0 : index
    %275 = vector.load %arg1[%c2_219, %c8_220, %c0_221, %c0_222] : memref<3x9x4x4xf32, #tpu.memory_space<vmem>>, vector<1x1x4x4xf32>
    %276 = vector.shape_cast %275 : vector<1x1x4x4xf32> to vector<4x4xf32>
    %cst_223 = arith.constant dense<0.000000e+00> : vector<4x512xf32>
    %277 = tpu.matmul %276, %274, %cst_223 {dimension_numbers = #tpu.dot_dimension_numbers<[1], [0], [0], [1], [0, 0, 1, 1], [], []>} : vector<4x4xf32>, vector<4x512xf32>, vector<4x512xf32> -> vector<4x512xf32>
    %278 = arith.addf %270, %277 : vector<4x512xf32>
    %c2_224 = arith.constant 2 : index
    %c0_225 = arith.constant 0 : index
    %c0_226 = arith.constant 0 : index
    %279 = vector.load %arg2[%c2_224, %c0_225, %c0_226] : memref<3x4x3xf32, #tpu.memory_space<vmem>>, vector<1x4x3xf32>
    %280 = vector.shape_cast %279 : vector<1x4x3xf32> to vector<4x3xf32>
    %281 = vector.extract_strided_slice %280 {offsets = [0, 0], sizes = [4, 1], strides = [1, 1]} : vector<4x3xf32> to vector<4x1xf32>
    %282 = vector.broadcast %281 : vector<4x1xf32> to vector<4x512xf32>
    %283 = arith.addf %278, %282 : vector<4x512xf32>
    %cst_227 = arith.constant 0.000000e+00 : f32
    %284 = vector.broadcast %cst_227 : f32 to vector<4x512xf32>
    %285 = arith.maximumf %283, %284 : vector<4x512xf32>
    %286 = arith.mulf %285, %285 : vector<4x512xf32>
    %287 = tpu.concatenate %285, %286 in 0 : vector<4x512xf32>, vector<4x512xf32> -> vector<8x512xf32>
    %cst_228 = arith.constant dense<0.000000e+00> : vector<8xf32>
    %288 = vector.multi_reduction <add>, %287, %cst_228 [1] : vector<8x512xf32> to vector<8xf32>
    %289 = vector.shape_cast %288 : vector<8xf32> to vector<8x1xf32>
    %290 = vector.extract_strided_slice %289 {offsets = [0, 0], sizes = [4, 1], strides = [1, 1]} : vector<8x1xf32> to vector<4x1xf32>
    %cst_229 = arith.constant 0.001953125 : f32
    %291 = vector.broadcast %cst_229 : f32 to vector<4x1xf32>
    %292 = arith.mulf %290, %291 : vector<4x1xf32>
    %293 = vector.extract_strided_slice %289 {offsets = [4, 0], sizes = [4, 1], strides = [1, 1]} : vector<8x1xf32> to vector<4x1xf32>
    %cst_230 = arith.constant 0.001953125 : f32
    %294 = vector.broadcast %cst_230 : f32 to vector<4x1xf32>
    %295 = arith.mulf %293, %294 : vector<4x1xf32>
    %296 = arith.mulf %292, %292 : vector<4x1xf32>
    %297 = arith.subf %295, %296 : vector<4x1xf32>
    %298 = vector.broadcast %292 : vector<4x1xf32> to vector<4x512xf32>
    %299 = arith.subf %285, %298 : vector<4x512xf32>
    %cst_231 = arith.constant 9.99999974E-6 : f32
    %300 = vector.broadcast %cst_231 : f32 to vector<4x1xf32>
    %301 = arith.addf %297, %300 : vector<4x1xf32>
    %302 = math.rsqrt %301 : vector<4x1xf32>
    %303 = vector.broadcast %302 : vector<4x1xf32> to vector<4x512xf32>
    %304 = arith.mulf %299, %303 : vector<4x512xf32>
    %305 = vector.extract_strided_slice %280 {offsets = [0, 1], sizes = [4, 1], strides = [1, 1]} : vector<4x3xf32> to vector<4x1xf32>
    %306 = vector.broadcast %305 : vector<4x1xf32> to vector<4x512xf32>
    %307 = arith.mulf %304, %306 : vector<4x512xf32>
    %308 = vector.extract_strided_slice %280 {offsets = [0, 2], sizes = [4, 1], strides = [1, 1]} : vector<4x3xf32> to vector<4x1xf32>
    %309 = vector.broadcast %308 : vector<4x1xf32> to vector<4x512xf32>
    %310 = arith.addf %307, %309 : vector<4x512xf32>
    %c0_232 = arith.constant 0 : index
    %c0_233 = arith.constant 0 : index
    %311 = vector.load %arg3[%c0_232, %c0_233] : memref<3x4xf32, #tpu.memory_space<vmem>>, vector<3x4xf32>
    %cst_234 = arith.constant dense<0.000000e+00> : vector<3x512xf32>
    %312 = tpu.matmul %311, %310, %cst_234 {dimension_numbers = #tpu.dot_dimension_numbers<[1], [0], [0], [1], [0, 0, 1, 1], [], []>} : vector<3x4xf32>, vector<4x512xf32>, vector<3x512xf32> -> vector<3x512xf32>
    %c0_235 = arith.constant 0 : index
    %c0_236 = arith.constant 0 : index
    %313 = vector.load %arg4[%c0_235, %c0_236] : memref<3x1xf32, #tpu.memory_space<vmem>>, vector<3x1xf32>
    %314 = vector.broadcast %313 : vector<3x1xf32> to vector<3x512xf32>
    %315 = arith.addf %312, %314 : vector<3x512xf32>
    %c0_237 = arith.constant 0 : index
    %c0_238 = arith.constant 0 : index
    %316 = vector.load %arg9[%c0_237, %c0_238] : memref<3x512xf32, #tpu.memory_space<vmem>>, vector<3x512xf32>
    tpu.vector_store %arg9[%c0_237, %c0_238], %315 {strides = array<i32>} : memref<3x512xf32, #tpu.memory_space<vmem>>, vector<3x512xf32>,
    return
  }
}

</mosaic_0001>

<bundles_post_ra>
// kernel: _lambda_.1
= control target key start
LH: loop header
LB: loop body
LE: loop exit
PB: predicated region body
PF: predicated region fallthrough
CT: control target
= control target key end

     0   :  { %14 = vsyncpa [#allocation3], 0  ;;  %s7890_s0 = inlined_call_operand.vmem [shape: f32[4,128], index: 0, kind: input, shape index: {}]   ;;  %s7891_s1 = inlined_call_operand.hbm [shape: f32[3,9,4,4], index: 1, kind: input, shape index: {}]   ;;  %s7892_s2 = inlined_call_operand.vmem [shape: f32[3,4,3], index: 2, kind: input, shape index: {}]   ;;  %s7893_s3 = inlined_call_operand.vmem [shape: f32[3,4], index: 3, kind: input, shape index: {}]   ;;  %s7894_s4 = inlined_call_operand.vmem [shape: f32[3,1], index: 4, kind: input, shape index: {}]   ;;  %s7895_s5 = inlined_call_operand.hbm [shape: f32[128,288], index: 5, kind: input, shape index: {}]   ;;  %s7896_s6 = inlined_call_operand.hbm [shape: f32[288,512], index: 6, kind: input, shape index: {}]   ;;  %s7897_s7 = inlined_call_operand.hbm [shape: f32[9,4,288], index: 7, kind: input, shape index: {}]   ;;  %s7898_s8 = inlined_call_operand.vmem [shape: f32[9,4,512], index: 8, kind: input, shape index: {}]   ;;  %s7899_s9 = inlined_call_operand.vmem [shape: f32[3,512], index: 9, kind: output, shape index: {}]  }
   0x1   :  { %15 = vsyncpa [#allocation5], 0 }
   0x2   :  { %16 = vsyncpa [#allocation8], 0  ;;  %s6689_s30 = smov [#allocation4]  }
   0x3   :  { %s42_s10 = sshll.u32 %s6689_s30, 4  ;;  %s43_s10 = int_to_ptr.vmem [resolvable:$true] %s42_s10 }
   0x4   :  { %s6611_s11 = scalar_lea.vmem %s43_s10, 6144  ;;  %p6616_p1 = scmp.lt.s32.totalorder %s43_s10, %s43_s10 }
   0x5   :  { %p6612_p0 = scmp.ne.s32.totalorder %s43_s10, %s6611_s11  ;;  %p6617_p2 = scmp.lt.s32.totalorder %s6611_s11, %s6611_s11 }
   0x7   :  { %p6618_p3 = por %p6617_p2, %p6616_p1 }
   0x9   :  { %p6619_p4 = pnand %p6618_p3, %p6612_p0 }
   0xb   :  { %6622 = shalt.err (!%p6619_p4)
}
   0xc   :  { %s6690_s12 = smov 384   ;;  %s6691_s13 = smov 24  }
   0xd   :  { %48 = dma.hbm_to_vmem [thread:$0]  %s7895_s5, 6144, %s43_s10, [#allocation5], %s6690_s12, %s6690_s12, %s6691_s13  }
   0xe   :  { %s6692_s16 = smov [#allocation2]  }
   0xf   :  { %s24_s17 = sshll.u32 %s6692_s16, 4  ;;  %s25_s17 = int_to_ptr.vmem [resolvable:$true] %s24_s17 }
  0x10   :  { %s6631_s18 = scalar_lea.vmem %s25_s17, 1728  ;;  %p6636_p6 = scmp.lt.s32.totalorder %s25_s17, %s25_s17 }
  0x11   :  { %p6632_p5 = scmp.ne.s32.totalorder %s25_s17, %s6631_s18  ;;  %p6637_p7 = scmp.lt.s32.totalorder %s6631_s18, %s6631_s18 }
  0x13   :  { %p6638_p8 = por %p6637_p7, %p6636_p6 }
  0x15   :  { %p6639_p9 = pnand %p6638_p8, %p6632_p5 }
  0x17   :  { %6642 = shalt.err (!%p6639_p9)
}
  0x18   :  { %s6693_s19 = smov 64   ;;  %s6694_s20 = smov 4  }
  0x19   :  { %30 = dma.hbm_to_vmem [thread:$0]  %s7891_s1, 1728, %s25_s17, [#allocation3], %s6693_s19, %s6693_s19, %s6694_s20  }
  0x1a   :  { %s6695_s23 = smov [#allocation6]  }
  0x1b   :  { %s54_s24 = sshll.u32 %s6695_s23, 4  ;;  %s55_s24 = int_to_ptr.vmem [resolvable:$true] %s54_s24 }
  0x1c   :  { %s6651_s5 = scalar_lea.vmem %s55_s24, 18432  ;;  %p6656_p11 = scmp.lt.s32.totalorder %s55_s24, %s55_s24 }
  0x1d   :  { %p6652_p10 = scmp.ne.s32.totalorder %s55_s24, %s6651_s5  ;;  %p6657_p12 = scmp.lt.s32.totalorder %s6651_s5, %s6651_s5 }
  0x1f   :  { %p6658_p13 = por %p6657_p12, %p6656_p11 }
  0x21   :  { %p6659_p0 = pnand %p6658_p13, %p6652_p10 }
  0x23   :  { %6662 = shalt.err (!%p6659_p0)
}
  0x24   :  { %s6696_s25 = smov 512   ;;  %s6697_s26 = smov 32  }
  0x25   :  { %60 = dma.hbm_to_vmem [thread:$0]  %s7896_s6, 18432, %s55_s24, [#allocation5], %s6696_s25, %s6696_s25, %s6697_s26  }
  0x26   :  { %s6698_s29 = smov [#allocation7]  }
  0x27   :  { %s66_s30 = sshll.u32 %s6698_s29, 4  ;;  %s67_s30 = int_to_ptr.vmem [resolvable:$true] %s66_s30 }
  0x28   :  { %s6671_s1 = scalar_lea.vmem %s67_s30, 1728  ;;  %p6676_p2 = scmp.lt.s32.totalorder %s67_s30, %s67_s30 }
  0x29   :  { %p6672_p1 = scmp.ne.s32.totalorder %s67_s30, %s6671_s1  ;;  %p6677_p3 = scmp.lt.s32.totalorder %s6671_s1, %s6671_s1 }
  0x2b   :  { %p6678_p4 = por %p6677_p3, %p6676_p2 }
  0x2d   :  { %p6679_p5 = pnand %p6678_p4, %p6672_p1 }
  0x2f   :  { %6682 = shalt.err (!%p6679_p5)
}
  0x30   :  { %s6699_s10 = smov 192   ;;  %s6700_s11 = smov 12  }
  0x31   :  { %72 = dma.hbm_to_vmem [thread:$0]  %s7897_s7, 1728, %s67_s30, [#allocation8], %s6699_s10, %s6699_s10, %s6700_s11  }
  0x32   :  { %6683 = dma.done.wait [#allocation3], 1728  }
  0x33   :  { %6684 = vsyncadd [#allocation3], 4294965568 }
  0x34   :  { %6685 = dma.done.wait [#allocation5], 24576  }
  0x35   :  { %6686 = vsyncadd [#allocation5], 4294942720 }
  0x36   :  { %6687 = dma.done.wait [#allocation8], 1728  }
  0x37   :  { %6688 = vsyncadd [#allocation8], 4294965568  ;;  %v7906_v0 = vmov 0.0   ;;  %vm6702_vm0 = vmmov 0   ;;  %v134_v1 = vld [vmem:[#allocation4 + $0x170] sm:$0xff]  ;;  %v135_v2 = vld [vmem:[#allocation4 + $0x178] sm:$0xff] }
  0x38   :  { %6439 = vmatprep.subr.mxu1 %v7906_v0  ;;  %6471 = vmatprep.mubr.msk.f32.mxu1 %vm6702_vm0, %v7906_v0  ;;  %v133_v3 = vld [vmem:[#allocation4 + $0x168] sm:$0xff]  ;;  %v131_v4 = vld [vmem:[#allocation4 + $0x158] sm:$0xff]  ;;  %v132_v5 = vld [vmem:[#allocation4 + $0x160] sm:$0xff]  ;;  %s6703_s15 = smov 1   ;;  %s6705_s16 = smov 2   ;;  %vm286_vm1 = vcmask 105472  }
  0x39   :  { %200 = vmatprep.mubr.f32.mxu0 %v7906_v0  ;;  %136 = vmatprep.subr.mxu0 %v134_v1  ;;  %v130_v6 = vld [vmem:[#allocation4 + $0x150] sm:$0xff]  ;;  %v128_v7 = vld [vmem:[#allocation4 + $0x140] sm:$0xff]  ;;  %v129_v8 = vld [vmem:[#allocation4 + $0x148] sm:$0xff]  ;;  %s6706_s17 = smov 14   ;;  %s6707_s18 = smov 25   ;;  %vm656_vm2 = vcmask 15360  }
  0x3a   :  { %6440 = vmatpush3.msra.mxu1 %v135_v2  ;;  %137 = vmatpush1.msra.mxu0 %v133_v3  ;;  %v127_v9 = vld [vmem:[#allocation4 + $0x138] sm:$0xff]  ;;  %v125_v10 = vld [vmem:[#allocation4 + $0x128] sm:$0xff]  ;;  %v126_v11 = vld [vmem:[#allocation4 + $0x130] sm:$0xff]  ;;  %s6708_s19 = smov 26   ;;  %vm316_vm3 = vcmask 7168   ;;  %vm293_vm4 = vcmask 367616  }
  0x3b   :  { %6441 = vmatprep.subr.mxu1 %v7906_v0  ;;  %138 = vmatprep.subr.mxu0 %v131_v4  ;;  %v124_v12 = vld [vmem:[#allocation4 + $0x120] sm:$0xff]  ;;  %v122_v13 = vld [vmem:[#allocation4 + $0x110] sm:$0xff]  ;;  %v123_v14 = vld [vmem:[#allocation4 + $0x118] sm:$0xff]  ;;  %s6710_s20 = smov 126   ;;  %s6711_s21 = smov 116   ;;  %vm844_vm5 = vcmask 97280  }
  0x3c   :  { %6442 = vmatpush3.msra.mxu1 %v132_v5  ;;  %139 = vmatpush1.msra.mxu0 %v130_v6  ;;  %v121_v15 = vld [vmem:[#allocation4 + $0x108] sm:$0xff]  ;;  %v119_v16 = vld [vmem:[#allocation4 + $0xf8] sm:$0xff]  ;;  %v120_v17 = vld [vmem:[#allocation4 + $0x100] sm:$0xff]  ;;  %s6712_s22 = smov 115   ;;  %vm1198_vm6 = vcmask 113664   ;;  %vm1386_vm7 = vcmask 195584  }
  0x3d   :  { %6443 = vmatprep.subr.mxu1 %v7906_v0  ;;  %140 = vmatprep.subr.mxu0 %v128_v7  ;;  %v118_v18 = vld [vmem:[#allocation4 + $0xf0] sm:$0xff]  ;;  %v116_v19 = vld [vmem:[#allocation4 + $0xe0] sm:$0xff]  ;;  %v117_v20 = vld [vmem:[#allocation4 + $0xe8] sm:$0xff]  ;;  %s6713_s23 = smov 114   ;;  %vm1574_vm8 = vcmask 203776   ;;  %s6714_s24 = smov 104  }
  0x3e   :  { %6444 = vmatpush3.msra.mxu1 %v129_v8  ;;  %141 = vmatpush1.msra.mxu0 %v127_v9  ;;  %v115_v21 = vld [vmem:[#allocation4 + $0xd8] sm:$0xff]  ;;  %v113_v22 = vld [vmem:[#allocation4 + $0xc8] sm:$0xff]  ;;  %v114_v23 = vld [vmem:[#allocation4 + $0xd0] sm:$0xff]  ;;  %s6715_s5 = smov 103   ;;  %vm1762_vm9 = vcmask 211968   ;;  %s6717_s25 = smov 102  }
  0x3f   :  { %6445 = vmatprep.subr.mxu1 %v7906_v0  ;;  %142 = vmatprep.subr.mxu0 %v125_v10  ;;  %v112_v24 = vld [vmem:[#allocation4 + $0xc0] sm:$0xff]  ;;  %v110_v25 = vld [vmem:[#allocation4 + $0xb0] sm:$0xff]  ;;  %v111_v26 = vld [vmem:[#allocation4 + $0xb8] sm:$0xff]  ;;  %vm343_vm10 = vcmask 1043456   ;;  %vm336_vm11 = vcmask 1039360   ;;  %vm339_vm12 = vcmask 31744  }
  0x40   :  { %6446 = vmatpush3.msra.mxu1 %v126_v11  ;;  %143 = vmatpush1.msra.mxu0 %v124_v12  ;;  %v109_v27 = vld [vmem:[#allocation4 + $0xa8] sm:$0xff]  ;;  %v107_v28 = vld [vmem:[#allocation4 + $0x98] sm:$0xff]  ;;  %v108_v29 = vld [vmem:[#allocation4 + $0xa0] sm:$0xff]  ;;  %vm676_vm13 = vcmask 1031168   ;;  %vm864_vm14 = vcmask 949248   ;;  %vm1030_vm15 = vcmask 941056  }
  0x41   :  { %6447 = vmatprep.subr.mxu1 %v7906_v0  ;;  %144 = vmatprep.subr.mxu0 %v122_v13  ;;  %v106_v30 = vld [vmem:[#allocation4 + $0x90] sm:$0xff]  ;;  %v104_v31 = vld [vmem:[#allocation4 + $0x80] sm:$0xff]  ;;  %v105_v32 = vld [vmem:[#allocation4 + $0x88] sm:$0xff]  ;;  %s6722_s30 = smov 33   ;;  %s6723_s12 = smov 34  }
  0x42   :  { %6448 = vmatpush3.msra.mxu1 %v123_v14  ;;  %145 = vmatpush1.msra.mxu0 %v121_v15  ;;  %v103_v33 = vld [vmem:[#allocation4 + $0x78] sm:$0xff]  ;;  %v101_v34 = vld [vmem:[#allocation4 + $0x68] sm:$0xff]  ;;  %v102_v35 = vld [vmem:[#allocation4 + $0x70] sm:$0xff]  ;;  %s6724_s7 = smov 17  }
  0x43   :  { %6449 = vmatprep.subr.mxu1 %v7906_v0  ;;  %146 = vmatprep.subr.mxu0 %v119_v16  ;;  %v100_v36 = vld [vmem:[#allocation4 + $0x60] sm:$0xff]  ;;  %v98_v37 = vld [vmem:[#allocation4 + $0x50] sm:$0xff]  ;;  %v99_v38 = vld [vmem:[#allocation4 + $0x58] sm:$0xff] }
  0x44   :  { %6450 = vmatpush3.msra.mxu1 %v120_v17  ;;  %147 = vmatpush1.msra.mxu0 %v118_v18  ;;  %v97_v39 = vld [vmem:[#allocation4 + $0x48] sm:$0xff]  ;;  %v95_v40 = vld [vmem:[#allocation4 + $0x38] sm:$0xff]  ;;  %v96_v41 = vld [vmem:[#allocation4 + $0x40] sm:$0xff] }
  0x45   :  { %6451 = vmatprep.subr.mxu1 %v7906_v0  ;;  %148 = vmatprep.subr.mxu0 %v116_v19  ;;  %v94_v42 = vld [vmem:[#allocation4 + $0x30] sm:$0xff]  ;;  %v92_v43 = vld [vmem:[#allocation4 + $0x20] sm:$0xff]  ;;  %v93_v44 = vld [vmem:[#allocation4 + $0x28] sm:$0xff] }
  0x46   :  { %6452 = vmatpush3.msra.mxu1 %v117_v20  ;;  %149 = vmatpush1.msra.mxu0 %v115_v21  ;;  %v91_v45 = vld [vmem:[#allocation4 + $0x18] sm:$0xff]  ;;  %v305_v46 = vld [vmem:[#allocation7 + $0xc] sm:$0xff]  ;;  %v88_v49 = vld [vmem:[#allocation4] sm:$0xff] }
  0x47   :  { %6453 = vmatprep.subr.mxu1 %v7906_v0  ;;  %150 = vmatprep.subr.mxu0 %v113_v22  ;;  %v89_v47 = vld [vmem:[#allocation4 + $0x8] sm:$0xff]  ;;  %v90_v48 = vld [vmem:[#allocation4 + $0x10] sm:$0xff]  ;;  %v309_v51 = vcombine.high %v305_v46, %v305_v46  ;;  %v645_v53 = vld [vmem:[#allocation7 + $0x18] sm:$0xff] }
  0x48   :  { %6454 = vmatpush3.msra.mxu1 %v114_v23  ;;  %151 = vmatpush1.msra.mxu0 %v112_v24  ;;  %v87_v50 = vld [vmem:[%s7890_s0] sm:$0xf]  ;;  %s6704_s0 = smov 13   ;;  %v649_v57 = vcombine.high %v645_v53, %v645_v53  ;;  %v833_v59 = vld [vmem:[#allocation7 + $0x24] sm:$0xff]  ;;  %v646_v60 = vld [vmem:[#allocation7 + $0x20] sm:$0xf] }
  0x49   :  { %6455 = vmatprep.subr.mxu1 %v7906_v0  ;;  %152 = vmatprep.subr.mxu0 %v110_v25  ;;  %v306_v52 = vld [vmem:[#allocation7 + $0x14] sm:$0xf]  ;;  %v834_v61 = vld [vmem:[#allocation7 + $0x2c] sm:$0xf]  ;;  %v1187_v62 = vld [vmem:[#allocation7 + $0x3c] sm:$0xff]  ;;  %v837_v63 = vcombine.high %v833_v59, %v833_v59 }
  0x4a   :  { %6456 = vmatpush3.msra.mxu1 %v111_v26  ;;  %153 = vmatpush1.msra.mxu0 %v109_v27  ;;  %v1191_v1 = vcombine.high %v1187_v62, %v1187_v62  ;;  %v1375_v2 = vld [vmem:[#allocation7 + $0x48] sm:$0xff]  ;;  %v1188_v3 = vld [vmem:[#allocation7 + $0x44] sm:$0xf]  ;;  %v1376_v4 = vld [vmem:[#allocation7 + $0x50] sm:$0xf] }
  0x4b   :  { %6457 = vmatprep.subr.mxu1 %v7906_v0  ;;  %154 = vmatprep.subr.mxu0 %v107_v28  ;;  %v1563_v5 = vld [vmem:[#allocation7 + $0x54] sm:$0xff]  ;;  %v1379_v6 = vcombine.high %v1375_v2, %v1375_v2  ;;  %v1751_v8 = vld [vmem:[#allocation7 + $0x60] sm:$0xff]  ;;  %v1564_v9 = vld [vmem:[#allocation7 + $0x5c] sm:$0xf] }
  0x4c   :  { %6458 = vmatpush3.msra.mxu1 %v108_v29  ;;  %155 = vmatpush1.msra.mxu0 %v106_v30  ;;  %v1567_v7 = vcombine.high %v1563_v5, %v1563_v5  ;;  %v1752_v10 = vld [vmem:[#allocation7 + $0x68] sm:$0xf]  ;;  %v1755_v11 = vcombine.high %v1751_v8, %v1751_v8 }
  0x4d   :  { %6459 = vmatprep.subr.mxu1 %v7906_v0  ;;  %156 = vmatprep.subr.mxu0 %v104_v31 }
  0x4e   :  { %6460 = vmatpush3.msra.mxu1 %v105_v32  ;;  %157 = vmatpush1.msra.mxu0 %v103_v33 }
  0x4f   :  { %6461 = vmatprep.subr.mxu1 %v7906_v0  ;;  %158 = vmatprep.subr.mxu0 %v101_v34 }
  0x50   :  { %6462 = vmatpush3.msra.mxu1 %v102_v35  ;;  %159 = vmatpush1.msra.mxu0 %v100_v36 }
  0x51   :  { %6463 = vmatprep.subr.mxu1 %v7906_v0  ;;  %160 = vmatprep.subr.mxu0 %v98_v37 }
  0x52   :  { %6464 = vmatpush3.msra.mxu1 %v99_v38  ;;  %161 = vmatpush1.msra.mxu0 %v97_v39 }
  0x53   :  { %6465 = vmatprep.subr.mxu1 %v7906_v0  ;;  %162 = vmatprep.subr.mxu0 %v95_v40 }
  0x54   :  { %6466 = vmatpush3.msra.mxu1 %v96_v41  ;;  %163 = vmatpush1.msra.mxu0 %v94_v42 }
  0x55   :  { %6467 = vmatprep.subr.mxu1 %v7906_v0  ;;  %164 = vmatprep.subr.mxu0 %v92_v43 }
  0x56   :  { %6468 = vmatpush3.msra.mxu1 %v93_v44  ;;  %165 = vmatpush1.msra.mxu0 %v91_v45 }
  0x57   :  { %6469 = vmatprep.subr.mxu1 %v7906_v0  ;;  %166 = vmatprep.subr.mxu0 %v89_v47 }
  0x58   :  { %6470 = vmatpush3.msra.mxu1 %v90_v48  ;;  %167 = vmatpush1.msra.mxu0 %v88_v49 }
  0x59   :  { %6472 = vmatmul.mubr.f32.vlgmr.msra.gmra.mxu1 %v87_v50  ;;  %201 = vmatmul.mubr.f32.vlgmr.msra.gmra.mxu0 %v87_v50 }
  0x5a   :  { %310 = vrot.lane.b32.xlu1 %v305_v46, %s6703_s15  ;;  %312 = vrot.lane.b32.xlu0 %v309_v51, %s6703_s15 }
  0x5b   :  { %6474 = vmatprep.subr.mxu1 %v7906_v0  ;;  %6476 = vmatprep.mubr.msk.f32.mxu1 %vm6702_vm0, %v7906_v0 }
  0x5c   :  { %414 = vmatprep.mubr.f32.mxu0 %v7906_v0 }
  0x5e   :  { %314 = vrot.lane.b32.xlu1 %v306_v52, %s6703_s15 }
  0xcc   :  { %v311_v12 = vpop.permute.xlu1 %310  ;;  %v313_v13 = vpop.permute.xlu0 %312 }
  0xcd   :  { %v317_v29 = vsel %vm316_vm3, %v311_v12, %v313_v13 }
  0xd0   :  { %v315_v14 = vpop.permute.xlu1 %314 }
  0xd1   :  { %v318_v34 = vsel %vm316_vm3, %v313_v13, %v315_v14  ;;  %v6893_v13 = vld [vmem:[%s7892_s2] sm:$0xf] }
 0x119   :  { %v273_v54 = vpop.f32.mrf.mxu1  ;;  %v202_v55 = vpop.f32.mrf.mxu0 }
 0x11a   :  { %284 = vrot.lane.b32.xlu0 %v273_v54, %s6704_s0  ;;  %280 = vrot.lane.b32.xlu1 %v202_v55, %s6704_s0 }
 0x11b   :  { %v6473_v56 = vpop.f32.mrf.mxu1  ;;  %v204_v58 = vpop.f32.mrf.mxu0 }
 0x11e   :  { %282 = vrot.lane.b32.xlu0 %v204_v58, %s6704_s0  ;;  %652 = vrot.lane.b32.xlu1 %v649_v57, %s6705_s16  ;;  %s6725_s0 = smov 111  }
 0x122   :  { %650 = vrot.lane.b32.xlu0 %v645_v53, %s6705_s16  ;;  %838 = vrot.lane.b32.xlu1 %v833_v59, %s6700_s11 }
 0x126   :  { %654 = vrot.lane.b32.xlu0 %v646_v60, %s6705_s16  ;;  %842 = vrot.lane.b32.xlu1 %v834_v61, %s6700_s11 }
 0x12a   :  { %840 = vrot.lane.b32.xlu0 %v837_v63, %s6700_s11  ;;  %1194 = vrot.lane.b32.xlu1 %v1191_v1, %s6706_s17 }
 0x12e   :  { %1192 = vrot.lane.b32.xlu0 %v1187_v62, %s6706_s17  ;;  %1380 = vrot.lane.b32.xlu1 %v1375_v2, %s6691_s13 }
 0x132   :  { %1196 = vrot.lane.b32.xlu0 %v1188_v3, %s6706_s17  ;;  %1384 = vrot.lane.b32.xlu1 %v1376_v4, %s6691_s13  ;;  %s6720_s17 = smov 16  }
 0x136   :  { %1382 = vrot.lane.b32.xlu0 %v1379_v6, %s6691_s13  ;;  %1570 = vrot.lane.b32.xlu1 %v1567_v7, %s6707_s18  ;;  %s6709_s13 = smov 127   ;;  %v7900_v6 = vmov 0  }
 0x137   :  { %6561 = vset.pattern.permute.xlu0 %v7900_v6  ;;  %6565 = vset.pattern.permute.xlu1 %v7900_v6 }
 0x13a   :  { %1568 = vrot.lane.b32.xlu0 %v1563_v5, %s6707_s18  ;;  %1756 = vrot.lane.b32.xlu1 %v1751_v8, %s6708_s19 }
 0x13e   :  { %1572 = vrot.lane.b32.xlu0 %v1564_v9, %s6707_s18  ;;  %1760 = vrot.lane.b32.xlu1 %v1752_v10, %s6708_s19  ;;  %s6727_s18 = smov 110  }
 0x142   :  { %1758 = vrot.lane.b32.xlu0 %v1755_v11, %s6708_s19  ;;  %s6728_s19 = smov 96  }
 0x18c   :  { %v285_v15 = vpop.permute.xlu0 %284  ;;  %v281_v16 = vpop.permute.xlu1 %280 }
 0x18d   :  { %v6835_v17 = vsel %vm286_vm1, 0.0, %v281_v16 }
 0x18e   :  { %v322_v18 = vmul.f32 %v311_v12, %v6835_v17 }
 0x190   :  { %v283_v19 = vpop.permute.xlu0 %282  ;;  %v653_v20 = vpop.permute.xlu1 %652  ;;  %330 = vrot.lane.b32.xlu0 %v322_v18, %s6709_s13 }
 0x191   :  { %v6843_v26 = vsel %vm286_vm1, %v281_v16, %v283_v19  ;;  %v288_v27 = vsel %vm286_vm1, %v283_v19, %v285_v15  ;;  %v295_v19 = vld [vmem:[#allocation7] sm:$0xff]  ;;  %vm1218_vm1 = vcmask 932864  }
 0x192   :  { %v6850_v32 = vsel %vm293_vm4, %v288_v27, 0.0  ;;  %v323_v33 = vmul.f32 %v317_v29, %v6843_v26  ;;  %vm1406_vm4 = vcmask 850944  }
 0x193   :  { %v324_v38 = vmul.f32 %v318_v34, %v6850_v32  ;;  %v303_v34 = vld [vmem:[#allocation2] sm:$0xf] }
 0x194   :  { %v651_v21 = vpop.permute.xlu0 %650  ;;  %v839_v23 = vpop.permute.xlu1 %838 }
 0x195   :  { %v662_v22 = vmul.f32 %v651_v21, %v6835_v17  ;;  %v657_v24 = vsel %vm656_vm2, %v651_v21, %v653_v20  ;;  %v850_v25 = vmul.f32 %v839_v23, %v6835_v17  ;;  %v296_v21 = vld [vmem:[#allocation7 + $0x8] sm:$0xf] }
 0x196   :  { %v663_v31 = vmul.f32 %v657_v24, %v6843_v26  ;;  %v326_v24 = vld [vmem:[#allocation2 + $0x4] sm:$0xf]  ;;  %v302_v29 = vmul.f32 %v296_v21, %v6850_v32 }
 0x197   :  { %670 = vrot.lane.b32.xlu1 %v662_v22, %s6710_s20  ;;  %858 = vrot.lane.b32.xlu0 %v850_v25, %s6711_s21  ;;  %v298_v22 = vcombine.high %v295_v19, %v295_v19 }
 0x198   :  { %v655_v28 = vpop.permute.xlu0 %654  ;;  %v843_v30 = vpop.permute.xlu1 %842 }
 0x199   :  { %v658_v42 = vsel %vm656_vm2, %v653_v20, %v655_v28 }
 0x19a   :  { %v664_v44 = vmul.f32 %v658_v42, %v6850_v32 }
 0x19b   :  { %672 = vrot.lane.b32.xlu1 %v663_v31, %s6710_s20  ;;  %332 = vrot.lane.b32.xlu0 %v323_v33, %s6709_s13  ;;  %v300_v33 = vmul.f32 %v295_v19, %v6835_v17 }
 0x19c   :  { %v841_v35 = vpop.permute.xlu0 %840  ;;  %v1195_v37 = vpop.permute.xlu1 %1194 }
 0x19d   :  { %v845_v36 = vsel %vm844_vm5, %v839_v23, %v841_v35  ;;  %v846_v45 = vsel %vm844_vm5, %v841_v35, %v843_v30  ;;  %v301_v30 = vmul.f32 %v298_v22, %v6843_v26  ;;  %vm1594_vm5 = vcmask 842752  }
 0x19e   :  { %v851_v39 = vmul.f32 %v845_v36, %v6843_v26  ;;  %v852_v49 = vmul.f32 %v846_v45, %v6850_v32 }
 0x19f   :  { %334 = vrot.lane.b32.xlu1 %v324_v38, %s6709_s13 }
 0x1a0   :  { %860 = vrot.lane.b32.xlu0 %v851_v39, %s6711_s21  ;;  %v1193_v40 = vpop.permute.xlu0 %1192  ;;  %v1381_v41 = vpop.permute.xlu1 %1380 }
 0x1a1   :  { %v1199_v46 = vsel %vm1198_vm6, %v1193_v40, %v1195_v37  ;;  %v1204_v54 = vmul.f32 %v1193_v40, %v6835_v17  ;;  %v1392_v63 = vmul.f32 %v1381_v41, %v6835_v17 }
 0x1a2   :  { %v1205_v51 = vmul.f32 %v1199_v46, %v6843_v26  ;;  %v1021_v46 = vld [vmem:[#allocation2 + $0x10] sm:$0xf] }
 0x1a3   :  { %1026 = vrot.lane.b32.xlu1 %v6843_v26, %s6712_s22 }
 0x1a4   :  { %1028 = vrot.lane.b32.xlu0 %v6850_v32, %s6712_s22  ;;  %v1197_v43 = vpop.permute.xlu0 %1196  ;;  %v1385_v47 = vpop.permute.xlu1 %1384 }
 0x1a5   :  { %v1200_v55 = vsel %vm1198_vm6, %v1195_v37, %v1197_v43  ;;  %vm1782_vm6 = vcmask 834560  }
 0x1a6   :  { %v1206_v58 = vmul.f32 %v1200_v55, %v6850_v32  ;;  %v1396_v55 = vld [vmem:[#allocation2 + $0x18] sm:$0xf] }
 0x1a7   :  { %1024 = vrot.lane.b32.xlu1 %v6835_v17, %s6712_s22  ;;  %s6730_s22 = smov 94  }
 0x1a8   :  { %674 = vrot.lane.b32.xlu0 %v664_v44, %s6710_s20  ;;  %v1383_v48 = vpop.permute.xlu0 %1382  ;;  %v1571_v56 = vpop.permute.xlu1 %1570 }
 0x1a9   :  { %v1387_v50 = vsel %vm1386_vm7, %v1381_v41, %v1383_v48  ;;  %v1388_v61 = vsel %vm1386_vm7, %v1383_v48, %v1385_v47  ;;  %v854_v41 = vld [vmem:[#allocation2 + $0xc] sm:$0xf]  ;;  %vm2448_vm7 = vcmask 138240  }
 0x1aa   :  { %v1393_v53 = vmul.f32 %v1387_v50, %v6843_v26  ;;  %v1394_v2 = vmul.f32 %v1388_v61, %v6850_v32  ;;  %v1584_v61 = vld [vmem:[#allocation2 + $0x1c] sm:$0xf] }
 0x1ab   :  { %862 = vrot.lane.b32.xlu1 %v852_v49, %s6711_s21  ;;  %s6729_s21 = smov 95  }
 0x1ac   :  { %1214 = vrot.lane.b32.xlu0 %v1205_v51, %s6713_s23  ;;  %v1569_v52 = vpop.permute.xlu0 %1568  ;;  %v1757_v62 = vpop.permute.xlu1 %1756  ;;  %v1208_v51 = vld [vmem:[#allocation2 + $0x14] sm:$0xf] }
 0x1ad   :  { %v1575_v57 = vsel %vm1574_vm8, %v1569_v52, %v1571_v56  ;;  %v1580_v7 = vmul.f32 %v1569_v52, %v6835_v17  ;;  %v1768_v12 = vmul.f32 %v1757_v62, %v6835_v17  ;;  %v666_v17 = vld [vmem:[#allocation2 + $0x8] sm:$0xf] }
 0x1ae   :  { %v1581_v60 = vmul.f32 %v1575_v57, %v6843_v26 }
 0x1af   :  { %1402 = vrot.lane.b32.xlu1 %v1393_v53, %s6714_s24 }
 0x1b0   :  { %1212 = vrot.lane.b32.xlu0 %v1204_v54, %s6713_s23  ;;  %v1573_v59 = vpop.permute.xlu0 %1572  ;;  %v1761_v4 = vpop.permute.xlu1 %1760 }
 0x1b1   :  { %v1576_v1 = vsel %vm1574_vm8, %v1571_v56, %v1573_v59  ;;  %vm3053_vm8 = vcmask 130048  }
 0x1b2   :  { %v1582_v5 = vmul.f32 %v1576_v1, %v6850_v32 }
 0x1b3   :  { %1216 = vrot.lane.b32.xlu1 %v1206_v58, %s6713_s23  ;;  %s6721_s23 = smov 18  }
 0x1b4   :  { %1590 = vrot.lane.b32.xlu0 %v1581_v60, %s6715_s5  ;;  %v1759_v3 = vpop.permute.xlu0 %1758 }
 0x1b5   :  { %v1763_v8 = vsel %vm1762_vm9, %v1757_v62, %v1759_v3  ;;  %v1764_v9 = vsel %vm1762_vm9, %v1759_v3, %v1761_v4  ;;  %vm3437_vm9 = vcmask 146432  }
 0x1b6   :  { %v1769_v10 = vmul.f32 %v1763_v8, %v6843_v26  ;;  %v1770_v11 = vmul.f32 %v1764_v9, %v6850_v32 }
 0x1b7   :  { %1400 = vrot.lane.b32.xlu1 %v1392_v63, %s6714_s24 }
 0x1b8   :  { %1404 = vrot.lane.b32.xlu0 %v1394_v2, %s6714_s24  ;;  %v1772_v2 = vld [vmem:[#allocation2 + $0x20] sm:$0xf] }
 0x1bb   :  { %1592 = vrot.lane.b32.xlu1 %v1582_v5, %s6715_s5 }
 0x1bc   :  { %1588 = vrot.lane.b32.xlu0 %v1580_v7, %s6715_s5 }
 0x1bf   :  { %1778 = vrot.lane.b32.xlu1 %v1769_v10, %s6717_s25 }
 0x1c0   :  { %1780 = vrot.lane.b32.xlu0 %v1770_v11, %s6717_s25 }
 0x1c3   :  { %1776 = vrot.lane.b32.xlu1 %v1768_v12, %s6717_s25 }
 0x1c4   :  { %1941 = vperm.xlu0 %6561, %v6893_v13  }
 0x202   :  { %v331_v14 = vpop.permute.xlu0 %330 }
 0x209   :  { %v671_v15 = vpop.permute.xlu1 %670  ;;  %v859_v16 = vpop.permute.xlu0 %858 }
 0x20d   :  { %v673_v18 = vpop.permute.xlu1 %672  ;;  %v333_v20 = vpop.permute.xlu0 %332 }
 0x20e   :  { %v337_v28 = vsel %vm336_vm11, %v331_v14, %v333_v20  ;;  %v677_v37 = vsel %vm676_vm13, %v671_v15, %v673_v18 }
 0x211   :  { %v335_v23 = vpop.permute.xlu1 %334 }
 0x212   :  { %6475 = vmatpush3.msk.msra.mxu1 %vm343_vm10, %v335_v23  ;;  %v861_v25 = vpop.permute.xlu0 %860  ;;  %v338_v27 = vsel %vm336_vm11, %v333_v20, %v335_v23 }
 0x213   :  { %6227 = vmatprep.subr.msk.mxu0 %vm343_vm10, %v338_v27  ;;  %6479 = vmatprep.subr.mxu1 %v7906_v0  ;;  %v865_v42 = vsel %vm864_vm14, %v859_v16, %v861_v25 }
 0x214   :  { %6228 = vmatpush1.msk.msra.mxu0 %vm343_vm10, %v337_v28  ;;  %6477 = vmatmul.mubr.msk.f32.vlgmr.msra.gmra.mxu1 %vm339_vm12, %v326_v24 }
 0x215   :  { %6480 = vmatpush3.msk.msra.mxu1 %vm343_vm10, %v302_v29  ;;  %v1027_v31 = vpop.permute.xlu1 %1026  ;;  %6229 = vmatmul.mubr.msk.f32.vlgmr.msra.gmra.mxu0 %vm339_vm12, %v326_v24 }
 0x216   :  { %6232 = vmatprep.subr.msk.mxu0 %vm343_vm10, %v301_v30  ;;  %v1029_v35 = vpop.permute.xlu0 %1028  ;;  %6481 = vmatprep.mubr.msk.f32.mxu1 %vm6702_vm0, %v7906_v0 }
 0x217   :  { %6233 = vmatpush1.msk.msra.mxu0 %vm343_vm10, %v300_v33  ;;  %567 = vmatprep.mubr.f32.mxu0 %v7906_v0  ;;  %v1032_v44 = vsel %vm1030_vm15, %v1027_v31, %v1029_v35 }
 0x218   :  { %6482 = vmatmul.mubr.msk.f32.vlgmr.msra.gmra.mxu1 %vm339_vm12, %v303_v34  ;;  %6484 = vmatprep.subr.mxu1 %v7906_v0 }
 0x219   :  { %v1025_v26 = vpop.permute.xlu1 %1024  ;;  %6234 = vmatmul.mubr.msk.f32.vlgmr.msra.gmra.mxu0 %vm339_vm12, %v303_v34  ;;  %6486 = vmatprep.mubr.msk.f32.mxu1 %vm6702_vm0, %v7906_v0 }
 0x21a   :  { %v675_v32 = vpop.permute.xlu0 %674  ;;  %752 = vmatprep.mubr.f32.mxu0 %v7906_v0  ;;  %v1031_v47 = vsel %vm1030_vm15, %v1025_v26, %v1027_v31  ;;  %vm4060_vm15 = vcmask 277504  }
 0x21b   :  { %6485 = vmatpush3.msk.msra.mxu1 %vm343_vm10, %v675_v32  ;;  %v678_v36 = vsel %vm676_vm13, %v673_v18, %v675_v32 }
 0x21c   :  { %6237 = vmatprep.subr.msk.mxu0 %vm343_vm10, %v678_v36  ;;  %6487 = vmatmul.mubr.msk.f32.vlgmr.msra.gmra.mxu1 %vm339_vm12, %v666_v17 }
 0x21d   :  { %v863_v38 = vpop.permute.xlu1 %862  ;;  %6238 = vmatpush1.msk.msra.mxu0 %vm343_vm10, %v677_v37  ;;  %6489 = vmatprep.subr.mxu1 %v7906_v0 }
 0x21e   :  { %6239 = vmatmul.mubr.msk.f32.vlgmr.msra.gmra.mxu0 %vm339_vm12, %v666_v17  ;;  %6490 = vmatpush3.msk.msra.mxu1 %vm343_vm10, %v863_v38  ;;  %v1215_v39 = vpop.permute.xlu0 %1214  ;;  %v866_v40 = vsel %vm864_vm14, %v861_v25, %v863_v38  ;;  %vm3852_vm14 = vcmask 269312  }
 0x21f   :  { %6242 = vmatprep.subr.msk.mxu0 %vm343_vm10, %v866_v40  ;;  %6491 = vmatprep.mubr.msk.f32.mxu1 %vm6702_vm0, %v7906_v0 }
 0x220   :  { %6494 = vmatprep.subr.mxu1 %v7906_v0  ;;  %6243 = vmatpush1.msk.msra.mxu0 %vm343_vm10, %v865_v42 }
 0x221   :  { %6492 = vmatmul.mubr.msk.f32.vlgmr.msra.gmra.mxu1 %vm339_vm12, %v854_v41  ;;  %v1403_v43 = vpop.permute.xlu1 %1402  ;;  %940 = vmatprep.mubr.f32.mxu0 %v7906_v0 }
 0x222   :  { %6495 = vmatpush3.msk.msra.mxu1 %vm343_vm10, %v1029_v35  ;;  %6247 = vmatprep.subr.msk.mxu0 %vm343_vm10, %v1032_v44  ;;  %v1213_v45 = vpop.permute.xlu0 %1212 }
 0x223   :  { %6244 = vmatmul.mubr.msk.f32.vlgmr.msra.gmra.mxu0 %vm339_vm12, %v854_v41  ;;  %6496 = vmatprep.mubr.msk.f32.mxu1 %vm6702_vm0, %v7906_v0  ;;  %v1219_v52 = vsel %vm1218_vm1, %v1213_v45, %v1215_v39 }
 0x224   :  { %6248 = vmatpush1.msk.msra.mxu0 %vm343_vm10, %v1031_v47  ;;  %1106 = vmatprep.mubr.f32.mxu0 %v7906_v0 }
 0x225   :  { %6497 = vmatmul.mubr.msk.f32.vlgmr.msra.gmra.mxu1 %vm339_vm12, %v1021_v46  ;;  %v1217_v48 = vpop.permute.xlu1 %1216  ;;  %6499 = vmatprep.subr.mxu1 %v7906_v0 }
 0x226   :  { %6500 = vmatpush3.msk.msra.mxu1 %vm343_vm10, %v1217_v48  ;;  %v1591_v49 = vpop.permute.xlu0 %1590  ;;  %v1220_v50 = vsel %vm1218_vm1, %v1215_v39, %v1217_v48  ;;  %6501 = vmatprep.mubr.msk.f32.mxu1 %vm6702_vm0, %v7906_v0  ;;  %vm3468_vm1 = vcmask 900096  }
 0x227   :  { %6249 = vmatmul.mubr.msk.f32.vlgmr.msra.gmra.mxu0 %vm339_vm12, %v1021_v46  ;;  %6252 = vmatprep.subr.msk.mxu0 %vm343_vm10, %v1220_v50 }
 0x228   :  { %6253 = vmatpush1.msk.msra.mxu0 %vm343_vm10, %v1219_v52  ;;  %1294 = vmatprep.mubr.f32.mxu0 %v7906_v0 }
 0x229   :  { %6502 = vmatmul.mubr.msk.f32.vlgmr.msra.gmra.mxu1 %vm339_vm12, %v1208_v51  ;;  %v1401_v53 = vpop.permute.xlu1 %1400  ;;  %6504 = vmatprep.subr.mxu1 %v7906_v0 }
 0x22a   :  { %v1405_v54 = vpop.permute.xlu0 %1404  ;;  %6506 = vmatprep.mubr.msk.f32.mxu1 %vm6702_vm0, %v7906_v0  ;;  %v1407_v57 = vsel %vm1406_vm4, %v1401_v53, %v1403_v43 }
 0x22b   :  { %6254 = vmatmul.mubr.msk.f32.vlgmr.msra.gmra.mxu0 %vm339_vm12, %v1208_v51  ;;  %6505 = vmatpush3.msk.msra.mxu1 %vm343_vm10, %v1405_v54  ;;  %v1408_v56 = vsel %vm1406_vm4, %v1403_v43, %v1405_v54  ;;  %vm3675_vm4 = vcmask 785408  }
 0x22c   :  { %6257 = vmatprep.subr.msk.mxu0 %vm343_vm10, %v1408_v56  ;;  %1482 = vmatprep.mubr.f32.mxu0 %v7906_v0 }
 0x22d   :  { %6507 = vmatmul.mubr.msk.f32.vlgmr.msra.gmra.mxu1 %vm339_vm12, %v1396_v55  ;;  %v1593_v58 = vpop.permute.xlu1 %1592  ;;  %6258 = vmatpush1.msk.msra.mxu0 %vm343_vm10, %v1407_v57 }
 0x22e   :  { %6509 = vmatprep.subr.mxu1 %v7906_v0  ;;  %v1589_v59 = vpop.permute.xlu0 %1588  ;;  %v1596_v60 = vsel %vm1594_vm5, %v1591_v49, %v1593_v58  ;;  %6511 = vmatprep.mubr.msk.f32.mxu1 %vm6702_vm0, %v7906_v0 }
 0x22f   :  { %6259 = vmatmul.mubr.msk.f32.vlgmr.msra.gmra.mxu0 %vm339_vm12, %v1396_v55  ;;  %6510 = vmatpush3.msk.msra.mxu1 %vm343_vm10, %v1593_v58  ;;  %v1595_v62 = vsel %vm1594_vm5, %v1589_v59, %v1591_v49  ;;  %vm3883_vm5 = vcmask 777216  }
 0x230   :  { %6262 = vmatprep.subr.msk.mxu0 %vm343_vm10, %v1596_v60  ;;  %1670 = vmatprep.mubr.f32.mxu0 %v7906_v0 }
 0x231   :  { %6263 = vmatpush1.msk.msra.mxu0 %vm343_vm10, %v1595_v62  ;;  %6512 = vmatmul.mubr.msk.f32.vlgmr.msra.gmra.mxu1 %vm339_vm12, %v1584_v61  ;;  %v1779_v63 = vpop.permute.xlu1 %1778 }
 0x232   :  { %6514 = vmatprep.subr.mxu1 %v7906_v0  ;;  %v1781_v1 = vpop.permute.xlu0 %1780  ;;  %6516 = vmatprep.mubr.msk.f32.mxu1 %vm6702_vm0, %v7906_v0  ;;  %vm1966_vm0 = vcmask 261120  }
 0x233   :  { %6264 = vmatmul.mubr.msk.f32.vlgmr.msra.gmra.mxu0 %vm339_vm12, %v1584_v61  ;;  %6515 = vmatpush3.msk.msra.mxu1 %vm343_vm10, %v1781_v1  ;;  %v1784_v3 = vsel %vm1782_vm6, %v1779_v63, %v1781_v1 }
 0x234   :  { %6267 = vmatprep.subr.msk.mxu0 %vm343_vm10, %v1784_v3  ;;  %1858 = vmatprep.mubr.f32.mxu0 %v7906_v0 }
 0x235   :  { %6517 = vmatmul.mubr.msk.f32.vlgmr.msra.gmra.mxu1 %vm339_vm12, %v1772_v2  ;;  %v1777_v4 = vpop.permute.xlu1 %1776 }
 0x236   :  { %v1783_v5 = vsel %vm1782_vm6, %v1777_v4, %v1779_v63  ;;  %2287 = vmatprep.mubr.f32.mxu1 %v7906_v0  ;;  %vm4091_vm6 = vcmask 769024  }
 0x237   :  { %6268 = vmatpush1.msk.msra.mxu0 %vm343_vm10, %v1783_v5 }
 0x238   :  { %6269 = vmatmul.mubr.msk.f32.vlgmr.msra.gmra.mxu0 %vm339_vm12, %v1772_v2 }
 0x23f   :  { %v1942_v58 = vpop.permute.xlu0 %1941 }
 0x2d4   :  { %v487_v7 = vpop.f32.mrf.mxu1 }
 0x2d5   :  { %v416_v8 = vpop.f32.mrf.mxu0 }
 0x2d6   :  { %v6478_v9 = vpop.f32.mrf.mxu1 }
 0x2d7   :  { %v418_v10 = vpop.f32.mrf.mxu0 }
 0x2d8   :  { %v640_v11 = vpop.f32.mrf.mxu1 }
 0x2d9   :  { %v569_v12 = vpop.f32.mrf.mxu0  ;;  %v641_v24 = vadd.f32 %v640_v11, %v487_v7 }
 0x2da   :  { %v6483_v14 = vpop.f32.mrf.mxu1  ;;  %v570_v34 = vadd.f32 %v569_v12, %v416_v8 }
 0x2db   :  { %v571_v15 = vpop.f32.mrf.mxu0 }
 0x2dc   :  { %v825_v16 = vpop.f32.mrf.mxu1  ;;  %v572_v32 = vadd.f32 %v571_v15, %v418_v10 }
 0x2dd   :  { %v831_v30 = vadd.f32 %v825_v16, %v641_v24 }
 0x2de   :  { %v754_v18 = vpop.f32.mrf.mxu0  ;;  %v6488_v19 = vpop.f32.mrf.mxu1 }
 0x2df   :  { %v829_v36 = vadd.f32 %v754_v18, %v570_v34  ;;  %v2058_v34 = vld [vmem:[#allocation6 + $0x1a8] sm:$0xff] }
 0x2e0   :  { %v756_v20 = vpop.f32.mrf.mxu0 }
 0x2e1   :  { %v1013_v21 = vpop.f32.mrf.mxu1  ;;  %v830_v40 = vadd.f32 %v756_v20, %v572_v32  ;;  %v2050_v32 = vld [vmem:[#allocation6 + $0x168] sm:$0xff] }
 0x2e2   :  { %v1019_v17 = vadd.f32 %v1013_v21, %v831_v30  ;;  %v2065_v30 = vld [vmem:[#allocation6 + $0x1e0] sm:$0xff] }
 0x2e3   :  { %v942_v22 = vpop.f32.mrf.mxu0  ;;  %v6493_v23 = vpop.f32.mrf.mxu1 }
 0x2e4   :  { %v1017_v41 = vadd.f32 %v942_v22, %v829_v36  ;;  %v2049_v36 = vld [vmem:[#allocation6 + $0x160] sm:$0xff] }
 0x2e5   :  { %v944_v25 = vpop.f32.mrf.mxu0  ;;  %v1179_v27 = vpop.f32.mrf.mxu1 }
 0x2e6   :  { %v1185_v39 = vadd.f32 %v1179_v27, %v1019_v17  ;;  %v1018_v45 = vadd.f32 %v944_v25, %v830_v40  ;;  %v2053_v17 = vld [vmem:[#allocation6 + $0x180] sm:$0xff] }
 0x2e7   :  { %v1108_v28 = vpop.f32.mrf.mxu0  ;;  %v6498_v29 = vpop.f32.mrf.mxu1  ;;  %v2041_v40 = vld [vmem:[#allocation6 + $0x120] sm:$0xff] }
 0x2e8   :  { %v1183_v46 = vadd.f32 %v1108_v28, %v1017_v41  ;;  %v7904_v28 = vmov 1   ;;  %v2066_v29 = vld [vmem:[#allocation6 + $0x1e8] sm:$0xff] }
 0x2e9   :  { %v1110_v31 = vpop.f32.mrf.mxu0  ;;  %v1367_v33 = vpop.f32.mrf.mxu1  ;;  %6562 = vset.pattern.permute.xlu0 %v7904_v28  ;;  %2152 = vmatprep.subr.mxu0 %v2066_v29  ;;  %v2038_v41 = vld [vmem:[#allocation6 + $0x108] sm:$0xff] }
 0x2ea   :  { %v1373_v44 = vadd.f32 %v1367_v33, %v1185_v39  ;;  %v1184_v50 = vadd.f32 %v1110_v31, %v1018_v45  ;;  %1992 = vperm.xlu0 %6562, %v6893_v13   ;;  %v2062_v31 = vld [vmem:[#allocation6 + $0x1c8] sm:$0xff]  ;;  %v2061_v33 = vld [vmem:[#allocation6 + $0x1c0] sm:$0xff]  ;;  %2153 = vmatpush1.msra.mxu0 %v2065_v30 }
 0x2eb   :  { %v1296_v35 = vpop.f32.mrf.mxu0  ;;  %v6503_v26 = vpop.f32.mrf.mxu1  ;;  %2154 = vmatprep.subr.mxu0 %v2062_v31  ;;  %v2042_v39 = vld [vmem:[#allocation6 + $0x128] sm:$0xff] }
 0x2ec   :  { %v1371_v51 = vadd.f32 %v1296_v35, %v1183_v46  ;;  %v2057_v35 = vld [vmem:[#allocation6 + $0x1a0] sm:$0xff]  ;;  %2155 = vmatpush1.msra.mxu0 %v2061_v33  ;;  %v2054_v26 = vld [vmem:[#allocation6 + $0x188] sm:$0xff] }
 0x2ed   :  { %v1298_v37 = vpop.f32.mrf.mxu0  ;;  %v1555_v38 = vpop.f32.mrf.mxu1  ;;  %2156 = vmatprep.subr.mxu0 %v2058_v34  ;;  %v2030_v45 = vld [vmem:[#allocation6 + $0xc8] sm:$0xff]  ;;  %v2029_v46 = vld [vmem:[#allocation6 + $0xc0] sm:$0xff] }
 0x2ee   :  { %v1561_v49 = vadd.f32 %v1555_v38, %v1373_v44  ;;  %v1372_v55 = vadd.f32 %v1298_v37, %v1184_v50  ;;  %6563 = vset.pattern.permute.xlu0 %v7900_v6  ;;  %2157 = vmatpush1.msra.mxu0 %v2057_v35  ;;  %v2046_v37 = vld [vmem:[#allocation6 + $0x148] sm:$0xff]  ;;  %v2045_v38 = vld [vmem:[#allocation6 + $0x140] sm:$0xff] }
 0x2ef   :  { %v1484_v42 = vpop.f32.mrf.mxu0  ;;  %v6508_v43 = vpop.f32.mrf.mxu1  ;;  %2158 = vmatprep.subr.mxu0 %v2054_v26  ;;  %v2033_v44 = vld [vmem:[#allocation6 + $0xe0] sm:$0xff]  ;;  %v2022_v50 = vld [vmem:[#allocation6 + $0x88] sm:$0xff] }
 0x2f0   :  { %v1559_v56 = vadd.f32 %v1484_v42, %v1371_v51  ;;  %2159 = vmatpush1.msra.mxu0 %v2053_v17  ;;  %v2037_v42 = vld [vmem:[#allocation6 + $0x100] sm:$0xff]  ;;  %v2034_v43 = vld [vmem:[#allocation6 + $0xe8] sm:$0xff] }
 0x2f1   :  { %v1486_v47 = vpop.f32.mrf.mxu0  ;;  %v1743_v48 = vpop.f32.mrf.mxu1  ;;  %2160 = vmatprep.subr.mxu0 %v2050_v32  ;;  %v2021_v51 = vld [vmem:[#allocation6 + $0x80] sm:$0xff]  ;;  %v2082_v26 = vld [vmem:[#allocation6 + $0x268] sm:$0xff] }
 0x2f2   :  { %v1749_v54 = vadd.f32 %v1743_v48, %v1561_v49  ;;  %v1560_v61 = vadd.f32 %v1486_v47, %v1372_v55  ;;  %2161 = vmatpush1.msra.mxu0 %v2049_v36  ;;  %v2026_v47 = vld [vmem:[#allocation6 + $0xa8] sm:$0xff]  ;;  %v2025_v49 = vld [vmem:[#allocation6 + $0xa0] sm:$0xff] }
 0x2f3   :  { %v1672_v52 = vpop.f32.mrf.mxu0  ;;  %v6513_v53 = vpop.f32.mrf.mxu1  ;;  %2162 = vmatprep.subr.mxu0 %v2046_v37  ;;  %v2146_v48 = vld [vmem:[#allocation6 + $0x468] sm:$0xff]  ;;  %v2013_v55 = vld [vmem:[#allocation6 + $0x40] sm:$0xff] }
 0x2f4   :  { %v1747_v62 = vadd.f32 %v1672_v52, %v1559_v56  ;;  %2163 = vmatpush1.msra.mxu0 %v2045_v38  ;;  %2247 = vmatprep.subr.mxu1 %v2146_v48  ;;  %v2018_v52 = vld [vmem:[#allocation6 + $0x68] sm:$0xff]  ;;  %v2017_v53 = vld [vmem:[#allocation6 + $0x60] sm:$0xff] }
 0x2f5   :  { %v1931_v57 = vpop.f32.mrf.mxu1  ;;  %v1674_v59 = vpop.f32.mrf.mxu0  ;;  %2164 = vmatprep.subr.mxu0 %v2042_v39  ;;  %v2010_v56 = vld [vmem:[#allocation6 + $0x28] sm:$0xff]  ;;  %v2145_v17 = vld [vmem:[#allocation6 + $0x460] sm:$0xff] }
 0x2f6   :  { %v1937_v60 = vadd.f32 %v1931_v57, %v1749_v54  ;;  %v1748_v3 = vadd.f32 %v1674_v59, %v1560_v61  ;;  %2165 = vmatpush1.msra.mxu0 %v2041_v40  ;;  %v2014_v54 = vld [vmem:[#allocation6 + $0x48] sm:$0xff]  ;;  %v2009_v57 = vld [vmem:[#allocation6 + $0x20] sm:$0xff]  ;;  %2248 = vmatpush1.msra.mxu1 %v2145_v17  ;;  %v2143_v17 = vld [vmem:[#allocation6 + $0x450] sm:$0xff] }
 0x2f7   :  { %v6518_v63 = vpop.f32.mrf.mxu1  ;;  %2166 = vmatprep.subr.mxu0 %v2038_v41  ;;  %v2005_v59 = vld [vmem:[#allocation6] sm:$0xff]  ;;  %v2142_v36 = vld [vmem:[#allocation6 + $0x448] sm:$0xff] }
 0x2f8   :  { %v1946_v1 = vadd.f32 %v1942_v58, %v1937_v60  ;;  %v1860_v2 = vpop.f32.mrf.mxu0  ;;  %2167 = vmatpush1.msra.mxu0 %v2037_v42  ;;  %v2130_v60 = vld [vmem:[#allocation6 + $0x3e8] sm:$0xff]  ;;  %v2129_v61 = vld [vmem:[#allocation6 + $0x3e0] sm:$0xff]  ;;  %2249 = vmatprep.subr.mxu1 %v2142_v36  ;;  %v2140_v36 = vld [vmem:[#allocation6 + $0x438] sm:$0xff] }
 0x2f9   :  { %v1935_v4 = vadd.f32 %v1860_v2, %v1747_v62  ;;  %2168 = vmatprep.subr.mxu0 %v2034_v43  ;;  %v2126_v62 = vld [vmem:[#allocation6 + $0x3c8] sm:$0xff]  ;;  %v2125_v63 = vld [vmem:[#allocation6 + $0x3c0] sm:$0xff] }
 0x2fa   :  { %v6983_v5 = vmax.f32 %v1946_v1, 0.0  ;;  %v1862_v7 = vpop.f32.mrf.mxu0  ;;  %2169 = vmatpush1.msra.mxu0 %v2033_v44  ;;  %v2122_v1 = vld [vmem:[#allocation6 + $0x3a8] sm:$0xff]  ;;  %v2121_v2 = vld [vmem:[#allocation6 + $0x3a0] sm:$0xff] }
 0x2fb   :  { %v1944_v8 = vadd.f32 %v1942_v58, %v1935_v4  ;;  %v1936_v9 = vadd.f32 %v1862_v7, %v1748_v3  ;;  %2170 = vmatprep.subr.mxu0 %v2030_v45  ;;  %v2118_v3 = vld [vmem:[#allocation6 + $0x388] sm:$0xff]  ;;  %v2117_v4 = vld [vmem:[#allocation6 + $0x380] sm:$0xff] }
 0x2fc   :  { %v1952_v10 = vmul.f32 %v6983_v5, %v6983_v5  ;;  %2171 = vmatpush1.msra.mxu0 %v2029_v46  ;;  %v2114_v7 = vld [vmem:[#allocation6 + $0x368] sm:$0xff]  ;;  %v2081_v32 = vld [vmem:[#allocation6 + $0x260] sm:$0xff] }
 0x2fd   :  { %v6987_v11 = vmax.f32 %v1944_v8, 0.0  ;;  %v1945_v12 = vadd.f32 %v1942_v58, %v1936_v9  ;;  %2172 = vmatprep.subr.mxu0 %v2026_v47  ;;  %v2006_v58 = vld [vmem:[#allocation6 + $0x8] sm:$0xff]  ;;  %v2113_v8 = vld [vmem:[#allocation6 + $0x360] sm:$0xff] }
 0x2fe   :  { %v1958_v16 = vrot.slane %v1952_v10, 4  ;;  %2173 = vmatpush1.msra.mxu0 %v2025_v49  ;;  %v2110_v9 = vld [vmem:[#allocation6 + $0x348] sm:$0xff]  ;;  %v2109_v10 = vld [vmem:[#allocation6 + $0x340] sm:$0xff]  ;;  %v7902_v49 = vmov 2  }
 0x2ff   :  { %v1950_v14 = vmul.f32 %v6987_v11, %v6987_v11  ;;  %v6991_v15 = vmax.f32 %v1945_v12, 0.0  ;;  %2174 = vmatprep.subr.mxu0 %v2022_v50  ;;  %v2106_v12 = vld [vmem:[#allocation6 + $0x328] sm:$0xff]  ;;  %v2141_v39 = vld [vmem:[#allocation6 + $0x440] sm:$0xff]  ;;  %v2068_v50 = vld [vmem:[#allocation6 + $0x1f8] sm:$0xff] }
 0x300   :  { %v1964_v21 = vsel %vm343_vm10, %v6983_v5, %v1958_v16  ;;  %2175 = vmatpush1.msra.mxu0 %v2021_v51  ;;  %v2102_v16 = vld [vmem:[#allocation6 + $0x308] sm:$0xff]  ;;  %v2077_v40 = vld [vmem:[#allocation6 + $0x240] sm:$0xff]  ;;  %2250 = vmatpush1.msra.mxu1 %v2141_v39  ;;  %v2148_v51 = vld [vmem:[#allocation6 + $0x478] sm:$0xff] }
 0x301   :  { %v1956_v18 = vrot.slane %v1950_v14, 4  ;;  %v1951_v19 = vmul.f32 %v6991_v15, %v6991_v15  ;;  %v1967_v25 = vsel %vm1966_vm0, %v1964_v21, 0.0  ;;  %2176 = vmatprep.subr.mxu0 %v2018_v52  ;;  %v2105_v14 = vld [vmem:[#allocation6 + $0x320] sm:$0xff]  ;;  %v2094_v21 = vld [vmem:[#allocation6 + $0x2c8] sm:$0xff]  ;;  %v2055_v39 = vld [vmem:[#allocation6 + $0x190] sm:$0xff] }
 0x302   :  { %2177 = vmatpush1.msra.mxu0 %v2017_v53  ;;  %v2078_v37 = vld [vmem:[#allocation6 + $0x248] sm:$0xff]  ;;  %v2137_v43 = vld [vmem:[#allocation6 + $0x420] sm:$0xff] }
 0x303   :  { %v1957_v20 = vrot.slane %v1951_v19, 4  ;;  %v1962_v22 = vsel %vm343_vm10, %v6987_v11, %v1956_v18  ;;  %2178 = vmatprep.subr.mxu0 %v2014_v54  ;;  %v2101_v18 = vld [vmem:[#allocation6 + $0x300] sm:$0xff]  ;;  %v2098_v19 = vld [vmem:[#allocation6 + $0x2e8] sm:$0xff]  ;;  %v6288_v54 = vld [vmem:[%s7898_s8 + $0x20] sm:$0xff] }
 0x304   :  { %2179 = vmatpush1.msra.mxu0 %v2013_v55  ;;  %v2138_v41 = vld [vmem:[#allocation6 + $0x428] sm:$0xff]  ;;  %v2073_v44 = vld [vmem:[#allocation6 + $0x220] sm:$0xff] }
 0x305   :  { %v1963_v23 = vsel %vm343_vm10, %v6991_v15, %v1957_v20  ;;  %2180 = vmatprep.subr.mxu0 %v2010_v56  ;;  %v2097_v20 = vld [vmem:[#allocation6 + $0x2e0] sm:$0xff]  ;;  %v2074_v42 = vld [vmem:[#allocation6 + $0x228] sm:$0xff]  ;;  %2251 = vmatprep.subr.mxu1 %v2138_v41  ;;  %v2052_v41 = vld [vmem:[#allocation6 + $0x178] sm:$0xff] }
 0x306   :  { %v1965_v24 = vadd.f32 %v1963_v23, %v1962_v22  ;;  %2181 = vmatpush1.msra.mxu0 %v2009_v57  ;;  %v2093_v22 = vld [vmem:[#allocation6 + $0x2c0] sm:$0xff]  ;;  %v2090_v23 = vld [vmem:[#allocation6 + $0x2a8] sm:$0xff]  ;;  %2252 = vmatpush1.msra.mxu1 %v2137_v43  ;;  %v2051_v43 = vld [vmem:[#allocation6 + $0x170] sm:$0xff] }
 0x307   :  { %2182 = vmatprep.subr.mxu0 %v2006_v58  ;;  %v2134_v45 = vld [vmem:[#allocation6 + $0x408] sm:$0xff]  ;;  %v2133_v47 = vld [vmem:[#allocation6 + $0x400] sm:$0xff]  ;;  %v2837_v58 = vcombine.high %v6288_v54, %v6288_v54 }
 0x308   :  { %v1968_v27 = vadd.f32 %v1967_v25, %v1965_v24  ;;  %2183 = vmatpush1.msra.mxu0 %v2005_v59  ;;  %v2089_v24 = vld [vmem:[#allocation6 + $0x2a0] sm:$0xff]  ;;  %v2086_v25 = vld [vmem:[#allocation6 + $0x288] sm:$0xff]  ;;  %2253 = vmatprep.subr.mxu1 %v2134_v45  ;;  %v2047_v45 = vld [vmem:[#allocation6 + $0x150] sm:$0xff] }
 0x309   :  { %2184 = vmatprep.subr.mxu0 %v2130_v60  ;;  %v2070_v46 = vld [vmem:[#allocation6 + $0x208] sm:$0xff]  ;;  %v2069_v48 = vld [vmem:[#allocation6 + $0x200] sm:$0xff]  ;;  %2254 = vmatpush1.msra.mxu1 %v2133_v47  ;;  %v2043_v47 = vld [vmem:[#allocation6 + $0x130] sm:$0xff] }
 0x30a   :  { %1969 = vadd.xlane.f32.xlu1 %v1968_v27  ;;  %2185 = vmatpush2.msra.mxu0 %v2129_v61  ;;  %v2085_v27 = vld [vmem:[#allocation6 + $0x280] sm:$0xff]  ;;  %v6297_v59 = vld [vmem:[%s7898_s8 + $0x38] sm:$0xff] }
 0x30b   :  { %2186 = vmatprep.subr.mxu0 %v2126_v62  ;;  %2294 = vmatprep.subr.mxu1 %v2068_v50  ;;  %v6274_v52 = vld [vmem:[%s7898_s8 + $0x10] sm:$0xff]  ;;  %v6289_v55 = vld [vmem:[%s7898_s8 + $0x28] sm:$0xff]  ;;  %v2039_v50 = vld [vmem:[#allocation6 + $0x110] sm:$0xff] }
 0x30c   :  { %2187 = vmatpush2.msra.mxu0 %v2125_v63  ;;  %v2478_v53 = vcombine.high %v6274_v52, %v6274_v52  ;;  %v6296_v57 = vld [vmem:[%s7898_s8 + $0x30] sm:$0xff]  ;;  %v2838_v60 = vcombine.high %v6289_v55, %v6289_v55  ;;  %v6311_v63 = vld [vmem:[%s7898_s8 + $0x58] sm:$0xff] }
 0x30d   :  { %2188 = vmatprep.subr.mxu0 %v2122_v1  ;;  %v6310_v61 = vld [vmem:[%s7898_s8 + $0x50] sm:$0xff]  ;;  %v3043_v62 = vcombine.high %v6296_v57, %v6296_v57  ;;  %v3044_v1 = vcombine.high %v6297_v59, %v6297_v59 }
 0x30e   :  { %2189 = vmatpush2.msra.mxu0 %v2121_v2  ;;  %v6318_v2 = vld [vmem:[%s7898_s8 + $0x60] sm:$0xff] }
 0x30f   :  { %2190 = vmatprep.subr.mxu0 %v2118_v3  ;;  %v3427_v3 = vcombine.high %v6310_v61, %v6310_v61 }
 0x310   :  { %2191 = vmatpush2.msra.mxu0 %v2117_v4  ;;  %v6319_v4 = vld [vmem:[%s7898_s8 + $0x68] sm:$0xff] }
 0x311   :  { %2192 = vmatprep.subr.mxu0 %v2114_v7  ;;  %v3428_v7 = vcombine.high %v6311_v63, %v6311_v63 }
 0x312   :  { %2193 = vmatpush2.msra.mxu0 %v2113_v8  ;;  %v7056_v8 = vld [vmem:[%s7898_s8 + $0x70] sm:$0xff] }
 0x313   :  { %2194 = vmatprep.subr.mxu0 %v2110_v9  ;;  %v3635_v9 = vcombine.high %v6318_v2, %v6318_v2 }
 0x314   :  { %2195 = vmatpush2.msra.mxu0 %v2109_v10  ;;  %v3636_v10 = vcombine.high %v6319_v4, %v6319_v4 }
 0x315   :  { %2196 = vmatprep.subr.mxu0 %v2106_v12 }
 0x316   :  { %2197 = vmatpush2.msra.mxu0 %v2105_v14 }
 0x317   :  { %2198 = vmatprep.subr.mxu0 %v2102_v16 }
 0x318   :  { %2199 = vmatpush2.msra.mxu0 %v2101_v18 }
 0x319   :  { %2200 = vmatprep.subr.mxu0 %v2098_v19 }
 0x31a   :  { %2201 = vmatpush2.msra.mxu0 %v2097_v20 }
 0x31b   :  { %2202 = vmatprep.subr.mxu0 %v2094_v21  ;;  %2480 = vrot.lane.b32.xlu1 %v6274_v52, %s6703_s15  ;;  %v2035_v52 = vld [vmem:[#allocation6 + $0xf0] sm:$0xff] }
 0x31c   :  { %2203 = vmatpush2.msra.mxu0 %v2093_v22 }
 0x31d   :  { %2204 = vmatprep.subr.mxu0 %v2090_v23 }
 0x31e   :  { %2205 = vmatpush2.msra.mxu0 %v2089_v24 }
 0x31f   :  { %2206 = vmatprep.subr.mxu0 %v2086_v25  ;;  %2839 = vrot.lane.b32.xlu1 %v6288_v54, %s6705_s16  ;;  %v2031_v54 = vld [vmem:[#allocation6 + $0xd0] sm:$0xff] }
 0x320   :  { %2207 = vmatpush2.msra.mxu0 %v2085_v27 }
 0x321   :  { %2208 = vmatprep.subr.mxu0 %v2082_v26  ;;  %v2063_v26 = vld [vmem:[#allocation6 + $0x1d0] sm:$0xff] }
 0x322   :  { %2209 = vmatpush2.msra.mxu0 %v2081_v32  ;;  %v2059_v32 = vld [vmem:[#allocation6 + $0x1b0] sm:$0xff] }
 0x323   :  { %2210 = vmatprep.subr.mxu0 %v2078_v37  ;;  %2843 = vrot.lane.b32.xlu1 %v6289_v55, %s6705_s16  ;;  %v2056_v37 = vld [vmem:[#allocation6 + $0x198] sm:$0xff]  ;;  %v2027_v55 = vld [vmem:[#allocation6 + $0xb0] sm:$0xff] }
 0x324   :  { %2211 = vmatpush2.msra.mxu0 %v2077_v40  ;;  %v2136_v40 = vld [vmem:[#allocation6 + $0x418] sm:$0xff] }
 0x325   :  { %2212 = vmatprep.subr.mxu0 %v2074_v42  ;;  %v2135_v42 = vld [vmem:[#allocation6 + $0x410] sm:$0xff] }
 0x326   :  { %2213 = vmatpush2.msra.mxu0 %v2073_v44  ;;  %v2048_v44 = vld [vmem:[#allocation6 + $0x158] sm:$0xff] }
 0x327   :  { %2214 = vmatprep.subr.mxu0 %v2070_v46  ;;  %3045 = vrot.lane.b32.xlu1 %v6296_v57, %s6720_s17  ;;  %v2044_v46 = vld [vmem:[#allocation6 + $0x138] sm:$0xff]  ;;  %v2023_v57 = vld [vmem:[#allocation6 + $0x90] sm:$0xff] }
 0x328   :  { %2215 = vmatpush2.msra.mxu0 %v2069_v48  ;;  %v2040_v48 = vld [vmem:[#allocation6 + $0x118] sm:$0xff] }
 0x329   :  { %2389 = vmatprep.subr.mxu0 %v2148_v51  ;;  %v2036_v51 = vld [vmem:[#allocation6 + $0xf8] sm:$0xff] }
 0x32b   :  { %3049 = vrot.lane.b32.xlu1 %v6297_v59, %s6720_s17  ;;  %v2019_v59 = vld [vmem:[#allocation6 + $0x70] sm:$0xff] }
 0x32f   :  { %3429 = vrot.lane.b32.xlu1 %v6310_v61, %s6721_s23  ;;  %v2015_v61 = vld [vmem:[#allocation6 + $0x50] sm:$0xff] }
 0x333   :  { %3433 = vrot.lane.b32.xlu1 %v6311_v63, %s6721_s23  ;;  %v2011_v63 = vld [vmem:[#allocation6 + $0x30] sm:$0xff] }
 0x337   :  { %3637 = vrot.lane.b32.xlu1 %v6318_v2, %s6697_s26  ;;  %v2007_v2 = vld [vmem:[#allocation6 + $0x10] sm:$0xff] }
 0x33b   :  { %3641 = vrot.lane.b32.xlu1 %v6319_v4, %s6697_s26  ;;  %v2131_v4 = vld [vmem:[#allocation6 + $0x3f0] sm:$0xff] }
 0x33f   :  { %3844 = vrot.lane.b32.xlu1 %v7056_v8, %s6722_s30 }
 0x365   :  { %v1993_v12 = vpop.permute.xlu0 %1992 }
 0x393   :  { %v1970_v29 = vpop.xlane.xlu1 %1969 }
 0x394   :  { %v7005_v30 = vmul.f32 0.0034722222, %v1970_v29 }
 0x396   :  { %v1972_v31 = vmul.f32 %v7005_v30, %v7005_v30  ;;  %v1977_v16 = vsub.f32 %v6987_v11, %v7005_v30  ;;  %v1978_v18 = vsub.f32 %v6991_v15, %v7005_v30  ;;  %v1979_v19 = vsub.f32 %v6983_v5, %v7005_v30  ;;  %v2064_v11 = vld [vmem:[#allocation6 + $0x1d8] sm:$0xff]  ;;  %v2147_v15 = vld [vmem:[#allocation6 + $0x470] sm:$0xff] }
 0x397   :  { %v2144_v5 = vld [vmem:[#allocation6 + $0x458] sm:$0xff] }
 0x398   :  { %v1974_v33 = vrot.slane %v1972_v31, 4 }
 0x39a   :  { %v1976_v34 = vsub.f32 %v7005_v30, %v1974_v33  ;;  %v2060_v30 = vld [vmem:[#allocation6 + $0x1b8] sm:$0xff] }
 0x39c   :  { %v1980_v35 = vadd.f32 1e-05, %v1976_v34 }
 0x39e   :  { %6597 = vrsqrt.f32 %v1980_v35  ;;  %v2067_v35 = vld [vmem:[#allocation6 + $0x1f0] sm:$0xff] }
 0x3ab   :  { %v6598_v38 = vpop.eup %6597 }
 0x3ac   :  { %1984 = vperm.xlu0 %6563, %v6598_v38   ;;  %v2139_v38 = vld [vmem:[#allocation6 + $0x430] sm:$0xff] }
 0x3b0   :  { %6564 = vset.pattern.permute.xlu0 %v7902_v49  ;;  %v7432_v49 = vld [vmem:[#allocation2 + $0x2c] sm:$0xf] }
 0x3b1   :  { %1999 = vperm.xlu0 %6564, %v6893_v13   ;;  %v6275_v13 = vld [vmem:[%s7898_s8 + $0x18] sm:$0xff] }
 0x3b2   :  { %v2479_v56 = vcombine.high %v6275_v13, %v6275_v13 }
 0x3b5   :  { %6572 = vset.pattern.permute.xlu0 %v7900_v6 }
 0x3b6   :  { %2482 = vrot.lane.b32.xlu0 %v2478_v53, %s6703_s15  ;;  %v2032_v53 = vld [vmem:[#allocation6 + $0xd8] sm:$0xff] }
 0x3ba   :  { %2484 = vrot.lane.b32.xlu0 %v6275_v13, %s6703_s15  ;;  %v2028_v13 = vld [vmem:[#allocation6 + $0xb8] sm:$0xff] }
 0x3be   :  { %2486 = vrot.lane.b32.xlu0 %v2479_v56, %s6703_s15  ;;  %v2024_v56 = vld [vmem:[#allocation6 + $0x98] sm:$0xff] }
 0x3c2   :  { %2841 = vrot.lane.b32.xlu0 %v2837_v58, %s6705_s16  ;;  %v2020_v58 = vld [vmem:[#allocation6 + $0x78] sm:$0xff] }
 0x3c6   :  { %2845 = vrot.lane.b32.xlu0 %v2838_v60, %s6705_s16  ;;  %v2016_v60 = vld [vmem:[#allocation6 + $0x58] sm:$0xff] }
 0x3ca   :  { %3047 = vrot.lane.b32.xlu0 %v3043_v62, %s6720_s17  ;;  %v2012_v62 = vld [vmem:[#allocation6 + $0x38] sm:$0xff] }
 0x3ce   :  { %3051 = vrot.lane.b32.xlu0 %v3044_v1, %s6720_s17  ;;  %v2008_v1 = vld [vmem:[#allocation6 + $0x18] sm:$0xff]  ;;  %s6726_s17 = smov 112  }
 0x3d2   :  { %3431 = vrot.lane.b32.xlu0 %v3427_v3, %s6721_s23  ;;  %v2132_v3 = vld [vmem:[#allocation6 + $0x3f8] sm:$0xff] }
 0x3d6   :  { %3435 = vrot.lane.b32.xlu0 %v3428_v7, %s6721_s23  ;;  %v2128_v7 = vld [vmem:[#allocation6 + $0x3d8] sm:$0xff] }
 0x3da   :  { %3639 = vrot.lane.b32.xlu0 %v3635_v9, %s6697_s26  ;;  %v2127_v9 = vld [vmem:[#allocation6 + $0x3d0] sm:$0xff] }
 0x3de   :  { %3643 = vrot.lane.b32.xlu0 %v3636_v10, %s6697_s26  ;;  %v2124_v10 = vld [vmem:[#allocation6 + $0x3b8] sm:$0xff] }
 0x427   :  { %v1985_v14 = vpop.permute.xlu0 %1984 }
 0x428   :  { %v1986_v20 = vrot.slane %v1985_v14, 4  ;;  %v2120_v14 = vld [vmem:[#allocation6 + $0x398] sm:$0xff] }
 0x42a   :  { %v1988_v21 = vmul.f32 %v1986_v20, %v1977_v16  ;;  %v1989_v22 = vmul.f32 %v1986_v20, %v1978_v18  ;;  %v1990_v23 = vmul.f32 %v1986_v20, %v1979_v19  ;;  %v2119_v16 = vld [vmem:[#allocation6 + $0x390] sm:$0xff]  ;;  %v2116_v18 = vld [vmem:[#allocation6 + $0x378] sm:$0xff] }
 0x42b   :  { %v2115_v19 = vld [vmem:[#allocation6 + $0x370] sm:$0xff]  ;;  %v2112_v20 = vld [vmem:[#allocation6 + $0x358] sm:$0xff] }
 0x42c   :  { %v1995_v24 = vmul.f32 %v1993_v12, %v1988_v21  ;;  %v1997_v25 = vmul.f32 %v1993_v12, %v1990_v23  ;;  %v2000_v27 = vpop.permute.xlu0 %1999  ;;  %v1996_v29 = vmul.f32 %v1993_v12, %v1989_v22  ;;  %v2123_v12 = vld [vmem:[#allocation6 + $0x3b0] sm:$0xff]  ;;  %v2108_v22 = vld [vmem:[#allocation6 + $0x338] sm:$0xff] }
 0x42d   :  { %v2111_v21 = vld [vmem:[#allocation6 + $0x350] sm:$0xff] }
 0x42e   :  { %v7068_v31 = vadd.f32 %v2000_v27, %v1995_v24  ;;  %v2004_v33 = vadd.f32 %v2000_v27, %v1997_v25  ;;  %v2003_v34 = vadd.f32 %v2000_v27, %v1996_v29  ;;  %v2107_v23 = vld [vmem:[#allocation6 + $0x330] sm:$0xff]  ;;  %v2104_v24 = vld [vmem:[#allocation6 + $0x318] sm:$0xff] }
 0x42f   :  { %v2103_v25 = vld [vmem:[#allocation6 + $0x310] sm:$0xff]  ;;  %v2100_v27 = vld [vmem:[#allocation6 + $0x2f8] sm:$0xff] }
 0x430   :  { %2216 = vmatprep.mubr.f32.mxu0 %v2003_v34  ;;  %6272 = vmatmul.mubr.msk.f32.vlgmr.msra.gmra.mxu1 %vm1966_vm0, %v2004_v33  ;;  %v2099_v29 = vld [vmem:[#allocation6 + $0x2f0] sm:$0xff] }
 0x431   :  { %2295 = vmatpush1.msra.mxu1 %v2067_v35  ;;  %2217 = vmatmul.mubr.f32.vlgmr.msra.gmra.mxu0 %v7068_v31  ;;  %v2092_v35 = vld [vmem:[#allocation6 + $0x2b8] sm:$0xff] }
 0x432   :  { %2296 = vmatprep.subr.mxu1 %v2064_v11  ;;  %2358 = vmatprep.mubr.f32.mxu1 %v2003_v34  ;;  %v2095_v34 = vld [vmem:[#allocation6 + $0x2d0] sm:$0xff] }
 0x433   :  { %2390 = vmatpush1.msra.mxu0 %v2147_v15  ;;  %2297 = vmatpush1.msra.mxu1 %v2063_v26  ;;  %v2091_v11 = vld [vmem:[#allocation6 + $0x2b0] sm:$0xff]  ;;  %v2088_v15 = vld [vmem:[#allocation6 + $0x298] sm:$0xff] }
 0x434   :  { %2391 = vmatprep.subr.mxu0 %v2144_v5  ;;  %2298 = vmatprep.subr.mxu1 %v2060_v30  ;;  %v2087_v26 = vld [vmem:[#allocation6 + $0x290] sm:$0xff]  ;;  %v2084_v5 = vld [vmem:[#allocation6 + $0x278] sm:$0xff] }
 0x435   :  { %2392 = vmatpush1.msra.mxu0 %v2143_v17  ;;  %2299 = vmatpush1.msra.mxu1 %v2059_v32  ;;  %v2083_v30 = vld [vmem:[#allocation6 + $0x270] sm:$0xff]  ;;  %v2080_v17 = vld [vmem:[#allocation6 + $0x258] sm:$0xff] }
 0x436   :  { %2393 = vmatprep.subr.mxu0 %v2140_v36  ;;  %2300 = vmatprep.subr.mxu1 %v2056_v37  ;;  %v2079_v32 = vld [vmem:[#allocation6 + $0x250] sm:$0xff]  ;;  %v2076_v36 = vld [vmem:[#allocation6 + $0x238] sm:$0xff] }
 0x437   :  { %2394 = vmatpush1.msra.mxu0 %v2139_v38  ;;  %2301 = vmatpush1.msra.mxu1 %v2055_v39  ;;  %v2075_v37 = vld [vmem:[#allocation6 + $0x230] sm:$0xff]  ;;  %v2072_v38 = vld [vmem:[#allocation6 + $0x218] sm:$0xff] }
 0x438   :  { %2395 = vmatprep.subr.mxu0 %v2136_v40  ;;  %2302 = vmatprep.subr.mxu1 %v2052_v41  ;;  %v2071_v39 = vld [vmem:[#allocation6 + $0x210] sm:$0xff] }
 0x439   :  { %2396 = vmatpush1.msra.mxu0 %v2135_v42  ;;  %2429 = vmatprep.mubr.f32.mxu0 %v7906_v0  ;;  %v6327_v40 = vld [vmem:[%s7898_s8 + $0x78] sm:$0xff]  ;;  %v6334_v41 = vld [vmem:[%s7898_s8 + $0x80] sm:$0xff]  ;;  %v6335_v42 = vld [vmem:[%s7898_s8 + $0x88] sm:$0xff] }
 0x43a   :  { %2303 = vmatpush1.msra.mxu1 %v2051_v43  ;;  %6273 = vmatmul.mubr.msk.f32.vlgmr.msra.gmra.mxu0 %vm1966_vm0, %v2004_v33  ;;  %v2096_v33 = vld [vmem:[#allocation6 + $0x2d8] sm:$0xff] }
 0x43b   :  { %2304 = vmatprep.subr.mxu1 %v2048_v44  ;;  %2597 = vmatprep.mubr.f32.mxu0 %v7906_v0 }
 0x43c   :  { %2305 = vmatpush1.msra.mxu1 %v2047_v45  ;;  %3848 = vrot.lane.b32.xlu1 %v6327_v40, %s6722_s30 }
 0x43d   :  { %2306 = vmatprep.subr.mxu1 %v2044_v46 }
 0x43e   :  { %2307 = vmatpush1.msra.mxu1 %v2043_v47 }
 0x43f   :  { %2308 = vmatprep.subr.mxu1 %v2040_v48  ;;  %v7091_v48 = vpop.permute.xlu0 %2482 }
 0x440   :  { %2309 = vmatpush1.msra.mxu1 %v2039_v50  ;;  %4052 = vrot.lane.b32.xlu1 %v6334_v41, %s6723_s12 }
 0x441   :  { %2310 = vmatprep.subr.mxu1 %v2036_v51 }
 0x442   :  { %2311 = vmatpush1.msra.mxu1 %v2035_v52 }
 0x443   :  { %2312 = vmatprep.subr.mxu1 %v2032_v53  ;;  %v7093_v50 = vpop.permute.xlu0 %2484 }
 0x444   :  { %2313 = vmatpush1.msra.mxu1 %v2031_v54  ;;  %4056 = vrot.lane.b32.xlu1 %v6335_v42, %s6723_s12 }
 0x445   :  { %2314 = vmatprep.subr.mxu1 %v2028_v13 }
 0x446   :  { %2315 = vmatpush1.msra.mxu1 %v2027_v55 }
 0x447   :  { %2316 = vmatprep.subr.mxu1 %v2024_v56  ;;  %v7095_v51 = vpop.permute.xlu0 %2486 }
 0x448   :  { %2317 = vmatpush1.msra.mxu1 %v2023_v57 }
 0x449   :  { %2318 = vmatprep.subr.mxu1 %v2020_v58  ;;  %v3842_v58 = vcombine.high %v7056_v8, %v7056_v8 }
 0x44a   :  { %2319 = vmatpush1.msra.mxu1 %v2019_v59  ;;  %v3843_v59 = vcombine.high %v6327_v40, %v6327_v40 }
 0x44b   :  { %2320 = vmatprep.subr.mxu1 %v2016_v60  ;;  %v7098_v57 = vpop.permute.xlu0 %2841 }
 0x44c   :  { %2321 = vmatpush1.msra.mxu1 %v2015_v61  ;;  %v4050_v61 = vcombine.high %v6334_v41, %v6334_v41 }
 0x44d   :  { %2322 = vmatprep.subr.mxu1 %v2012_v62 }
 0x44e   :  { %2323 = vmatpush1.msra.mxu1 %v2011_v63  ;;  %v4051_v63 = vcombine.high %v6335_v42, %v6335_v42 }
 0x44f   :  { %2324 = vmatprep.subr.mxu1 %v2008_v1  ;;  %v7104_v60 = vpop.permute.xlu0 %2845  ;;  %v7110_v1 = vpop.permute.xlu1 %2480 }
 0x450   :  { %2325 = vmatpush1.msra.mxu1 %v2007_v2 }
 0x451   :  { %2326 = vmatprep.subr.mxu1 %v2132_v3 }
 0x452   :  { %2327 = vmatpush2.msra.mxu1 %v2131_v4 }
 0x453   :  { %2328 = vmatprep.subr.mxu1 %v2128_v7  ;;  %v7107_v62 = vpop.permute.xlu0 %3047  ;;  %v7115_v2 = vpop.permute.xlu1 %2839 }
 0x454   :  { %2329 = vmatpush2.msra.mxu1 %v2127_v9 }
 0x455   :  { %2330 = vmatprep.subr.mxu1 %v2124_v10 }
 0x456   :  { %2331 = vmatpush2.msra.mxu1 %v2123_v12 }
 0x457   :  { %2332 = vmatprep.subr.mxu1 %v2120_v14  ;;  %v7113_v8 = vpop.permute.xlu0 %3051  ;;  %v7119_v4 = vpop.permute.xlu1 %2843 }
 0x458   :  { %2333 = vmatpush2.msra.mxu1 %v2119_v16 }
 0x459   :  { %2334 = vmatprep.subr.mxu1 %v2116_v18 }
 0x45a   :  { %2335 = vmatpush2.msra.mxu1 %v2115_v19 }
 0x45b   :  { %2336 = vmatprep.subr.mxu1 %v2112_v20  ;;  %v7117_v3 = vpop.permute.xlu0 %3431  ;;  %v7123_v9 = vpop.permute.xlu1 %3045 }
 0x45c   :  { %2337 = vmatpush2.msra.mxu1 %v2111_v21 }
 0x45d   :  { %2338 = vmatprep.subr.mxu1 %v2108_v22 }
 0x45e   :  { %2339 = vmatpush2.msra.mxu1 %v2107_v23 }
 0x45f   :  { %2340 = vmatprep.subr.mxu1 %v2104_v24  ;;  %v7121_v7 = vpop.permute.xlu0 %3435  ;;  %v7127_v12 = vpop.permute.xlu1 %3049 }
 0x460   :  { %2341 = vmatpush2.msra.mxu1 %v2103_v25 }
 0x461   :  { %2342 = vmatprep.subr.mxu1 %v2100_v27 }
 0x462   :  { %2343 = vmatpush2.msra.mxu1 %v2099_v29 }
 0x463   :  { %2344 = vmatprep.subr.mxu1 %v2096_v33  ;;  %v7125_v10 = vpop.permute.xlu0 %3639  ;;  %v7131_v16 = vpop.permute.xlu1 %3429 }
 0x464   :  { %2345 = vmatpush2.msra.mxu1 %v2095_v34  ;;  %v7164_v34 = vsel %vm656_vm2, %v7115_v2, %v7098_v57 }
 0x465   :  { %2346 = vmatprep.subr.mxu1 %v2092_v35  ;;  %v7169_v35 = vsel %vm316_vm3, %v7110_v1, %v7091_v48 }
 0x466   :  { %2347 = vmatpush2.msra.mxu1 %v2091_v11 }
 0x467   :  { %2348 = vmatprep.subr.mxu1 %v2088_v15  ;;  %v7129_v14 = vpop.permute.xlu0 %3643  ;;  %v7143_v22 = vpop.permute.xlu1 %3433  ;;  %v7177_v15 = vsel %vm3053_vm8, %v7123_v9, %v7107_v62 }
 0x468   :  { %2349 = vmatpush2.msra.mxu1 %v2087_v26 }
 0x469   :  { %2350 = vmatprep.subr.mxu1 %v2084_v5 }
 0x46a   :  { %2351 = vmatpush2.msra.mxu1 %v2083_v30 }
 0x46b   :  { %2352 = vmatprep.subr.mxu1 %v2080_v17  ;;  %v7156_v29 = vpop.permute.xlu1 %3637  ;;  %v7193_v17 = vsel %vm3437_vm9, %v7131_v16, %v7117_v3 }
 0x46c   :  { %2353 = vmatpush2.msra.mxu1 %v2079_v32  ;;  %v7185_v5 = vsel %vm1966_vm0, %v7156_v29, %v7125_v10 }
 0x46d   :  { %2354 = vmatprep.subr.mxu1 %v2076_v36 }
 0x46e   :  { %2355 = vmatpush2.msra.mxu1 %v2075_v37 }
 0x46f   :  { %2356 = vmatprep.subr.mxu1 %v2072_v38  ;;  %v7205_v38 = vsel %vm316_vm3, %v7091_v48, %v7093_v50  ;;  %v7210_v40 = vpop.permute.xlu1 %3641 }
 0x470   :  { %2357 = vmatpush2.msra.mxu1 %v2071_v39 }
 0x471   :  { %2359 = vmatmul.mubr.f32.vlgmr.msra.gmra.mxu1 %v7068_v31 }
 0x472   :  { %2668 = vmatprep.mubr.f32.mxu1 %v7906_v0 }
 0x4f0   :  { %v2289_v43 = vpop.f32.mrf.mxu1 }
 0x4f1   :  { %v2218_v44 = vpop.f32.mrf.mxu0 }
 0x4f2   :  { %v2290_v31 = vadd.f32 %v2289_v43, %v2218_v44  ;;  %v2291_v45 = vpop.f32.mrf.mxu1  ;;  %v7218_v43 = vsel %vm3053_vm8, %v7107_v62, %v7127_v12 }
 0x4f3   :  { %v2220_v46 = vpop.f32.mrf.mxu0 }
 0x4f4   :  { %2440 = vrot.lane.b32.xlu0 %v2290_v31, %s6724_s7  ;;  %v2292_v47 = vadd.f32 %v2291_v45, %v2220_v46  ;;  %v7222_v31 = vpop.permute.xlu1 %3844 }
 0x4f5   :  { %7920 = vst [vmem:[#allocation12_spill] sm:$0xff] %v7222_v31 }
 0x4f8   :  { %2442 = vrot.lane.b32.xlu0 %v2292_v47, %s6724_s7 }
 0x4fa   :  { %v2431_v52 = vpop.f32.mrf.mxu0 }
 0x4fc   :  { %v2433_v55 = vpop.f32.mrf.mxu0 }
 0x531   :  { %v2360_v53 = vpop.f32.mrf.mxu1 }
 0x532   :  { %v2432_v54 = vadd.f32 %v2431_v52, %v2360_v53  ;;  %v7240_v52 = vsel %vm3437_vm9, %v7117_v3, %v7143_v22  ;;  %v3849_v53 = vpop.permute.xlu1 %3848 }
 0x533   :  { %v2362_v13 = vpop.f32.mrf.mxu1 }
 0x534   :  { %2444 = vrot.lane.b32.xlu0 %v2432_v54, %s6724_s7  ;;  %v2434_v56 = vadd.f32 %v2433_v55, %v2362_v13 }
 0x538   :  { %2446 = vrot.lane.b32.xlu0 %v2434_v56, %s6724_s7  ;;  %v7255_v56 = vsel %vm656_vm2, %v7098_v57, %v7119_v4  ;;  %v7269_v57 = vsel %vm316_vm3, %v7093_v50, %v7095_v51  ;;  %vm3260_vm3 = vcmask 908288  }
 0x53c   :  { %3846 = vrot.lane.b32.xlu0 %v3842_v58, %s6722_s30 }
 0x540   :  { %3850 = vrot.lane.b32.xlu0 %v3843_v59, %s6722_s30 }
 0x544   :  { %4054 = vrot.lane.b32.xlu0 %v4050_v61, %s6723_s12 }
 0x548   :  { %4058 = vrot.lane.b32.xlu0 %v4051_v63, %s6723_s12  ;;  %v7271_v63 = vpop.permute.xlu1 %4052 }
 0x566   :  { %v2441_v18 = vpop.permute.xlu0 %2440 }
 0x567   :  { %v7134_v19 = vsel %vm2448_vm7, 0.0, %v2441_v18 }
 0x568   :  { %3250 = vrot.lane.b32.xlu0 %v7134_v19, %s6725_s0  ;;  %v2496_v20 = vmul.f32 %v7110_v1, %v7134_v19  ;;  %v2855_v21 = vmul.f32 %v7115_v2, %v7134_v19  ;;  %v3062_v24 = vmul.f32 %v7123_v9, %v7134_v19  ;;  %v3446_v27 = vmul.f32 %v7131_v16, %v7134_v19 }
 0x569   :  { %v3653_v33 = vmul.f32 %v7156_v29, %v7134_v19 }
 0x56a   :  { %2508 = vrot.lane.b32.xlu1 %v2496_v20, %s6709_s13  ;;  %v2443_v23 = vpop.permute.xlu0 %2442  ;;  %v7285_v20 = vsel %vm1966_vm0, %v7125_v10, %v7210_v40  ;;  %v7302_v10 = vsel %vm3053_vm8, %v7127_v12, %v7113_v8 }
 0x56b   :  { %v7150_v25 = vsel %vm2448_vm7, %v2441_v18, %v2443_v23 }
 0x56c   :  { %2867 = vrot.lane.b32.xlu0 %v2855_v21, %s6710_s20  ;;  %v2497_v11 = vmul.f32 %v7169_v35, %v7150_v25  ;;  %v2856_v26 = vmul.f32 %v7164_v34, %v7150_v25  ;;  %v3063_v30 = vmul.f32 %v7177_v15, %v7150_v25  ;;  %v3654_v32 = vmul.f32 %v7185_v5, %v7150_v25 }
 0x56d   :  { %v3447_v36 = vmul.f32 %v7193_v17, %v7150_v25 }
 0x56e   :  { %3074 = vrot.lane.b32.xlu1 %v3062_v24, %s6726_s17 }
 0x570   :  { %3252 = vrot.lane.b32.xlu0 %v7150_v25, %s6725_s0 }
 0x572   :  { %3458 = vrot.lane.b32.xlu1 %v3446_v27, %s6727_s18  ;;  %v3861_v27 = vmul.f32 %v7222_v31, %v7134_v19 }
 0x574   :  { %3665 = vrot.lane.b32.xlu0 %v3653_v33, %s6728_s19 }
 0x576   :  { %2510 = vrot.lane.b32.xlu1 %v2497_v11, %s6709_s13  ;;  %v7313_v11 = vsel %vm656_vm2, %v7119_v4, %v7104_v60  ;;  %vm3084_vm2 = vcmask 916480  }
 0x578   :  { %2869 = vrot.lane.b32.xlu0 %v2856_v26, %s6710_s20  ;;  %v4069_v26 = vmul.f32 %v7271_v63, %v7134_v19 }
 0x57a   :  { %3076 = vrot.lane.b32.xlu1 %v3063_v30, %s6726_s17  ;;  %v4057_v30 = vpop.permute.xlu1 %4056 }
 0x57c   :  { %3667 = vrot.lane.b32.xlu0 %v3654_v32, %s6728_s19  ;;  %v7324_v32 = vsel %vm3437_vm9, %v7143_v22, %v7121_v7 }
 0x57e   :  { %3460 = vrot.lane.b32.xlu1 %v3447_v36, %s6727_s18 }
 0x5a6   :  { %v2445_v37 = vpop.permute.xlu0 %2444 }
 0x5a7   :  { %v7208_v39 = vsel %vm2448_vm7, %v2443_v23, %v2445_v37 }
 0x5a8   :  { %v2498_v41 = vmul.f32 %v7205_v38, %v7208_v39  ;;  %v3064_v44 = vmul.f32 %v7218_v43, %v7208_v39  ;;  %v3448_v13 = vmul.f32 %v7240_v52, %v7208_v39  ;;  %v2857_v59 = vmul.f32 %v7255_v56, %v7208_v39 }
 0x5a9   :  { %v3655_v21 = vmul.f32 %v7285_v20, %v7208_v39 }
 0x5aa   :  { %2512 = vrot.lane.b32.xlu0 %v2498_v41, %s6709_s13  ;;  %v2447_v42 = vpop.permute.xlu0 %2446 }
 0x5ab   :  { %v7232_v48 = vsel %vm2448_vm7, %v2447_v42, 0.0  ;;  %v7262_v61 = vsel %vm2448_vm7, %v2445_v37, %v2447_v42 }
 0x5ac   :  { %v2499_v3 = vmul.f32 %v7269_v57, %v7262_v61  ;;  %v2500_v23 = vmul.f32 %v7095_v51, %v7232_v48  ;;  %v2859_v24 = vmul.f32 %v7104_v60, %v7232_v48  ;;  %v3065_v33 = vmul.f32 %v7302_v10, %v7262_v61 }
 0x5ad   :  { %v2858_v12 = vmul.f32 %v7313_v11, %v7262_v61  ;;  %v3066_v4 = vmul.f32 %v7113_v8, %v7232_v48  ;;  %v3449_v36 = vmul.f32 %v7324_v32, %v7262_v61  ;;  %v3657_v22 = vmul.f32 %v7129_v14, %v7232_v48 }
 0x5ae   :  { %3078 = vrot.lane.b32.xlu0 %v3064_v44, %s6726_s17  ;;  %v3847_v45 = vpop.permute.xlu0 %3846 }
 0x5af   :  { %v7227_v46 = vsel %vm3852_vm14, %v7222_v31, %v3847_v45  ;;  %v7247_v55 = vsel %vm3852_vm14, %v3847_v45, %v3849_v53  ;;  %v3450_v45 = vmul.f32 %v7121_v7, %v7232_v48 }
 0x5b0   :  { %7921 = vst [vmem:[#allocation13_spill] sm:$0xff] %v7227_v46  ;;  %v3862_v47 = vmul.f32 %v7227_v46, %v7150_v25  ;;  %v3863_v58 = vmul.f32 %v7247_v55, %v7208_v39 }
 0x5b2   :  { %3258 = vrot.lane.b32.xlu0 %v7232_v48, %s6725_s0  ;;  %3875 = vrot.lane.b32.xlu1 %v3862_v47, %s6729_s21  ;;  %v7242_v54 = vpop.permute.xlu0 %3850 }
 0x5b3   :  { %7922 = vst [vmem:[#allocation14_spill] sm:$0xff] %v7242_v54  ;;  %v7341_v42 = vsel %vm3852_vm14, %v3849_v53, %v7242_v54  ;;  %v7356_v53 = vsel %vm1966_vm0, %v7210_v40, %v7129_v14 }
 0x5b4   :  { %v3864_v44 = vmul.f32 %v7341_v42, %v7262_v61  ;;  %7925 = vst [vmem:[#allocation17_spill] sm:$0xff] %v7356_v53 }
 0x5b6   :  { %3462 = vrot.lane.b32.xlu0 %v3448_v13, %s6727_s18  ;;  %3254 = vrot.lane.b32.xlu1 %v7208_v39, %s6725_s0  ;;  %v4055_v62 = vpop.permute.xlu0 %4054 }
 0x5b7   :  { %v7277_v18 = vsel %vm4060_vm15, %v7271_v63, %v4055_v62  ;;  %v7331_v37 = vsel %vm4060_vm15, %v4055_v62, %v4057_v30 }
 0x5b8   :  { %v4070_v50 = vmul.f32 %v7277_v18, %v7150_v25  ;;  %7923 = vst [vmem:[#allocation15_spill] sm:$0xff] %v7331_v37  ;;  %v4071_v41 = vmul.f32 %v7331_v37, %v7208_v39 }
 0x5ba   :  { %3877 = vrot.lane.b32.xlu0 %v3863_v58, %s6729_s21  ;;  %2871 = vrot.lane.b32.xlu1 %v2857_v59, %s6710_s20  ;;  %v7349_v47 = vpop.permute.xlu0 %4058  ;;  %v3656_v58 = vmul.f32 %v7356_v53, %v7262_v61  ;;  %v3865_v59 = vmul.f32 %v7242_v54, %v7232_v48 }
 0x5bb   :  { %7924 = vst [vmem:[#allocation16_spill] sm:$0xff] %v7349_v47  ;;  %v4073_v13 = vmul.f32 %v7349_v47, %v7232_v48  ;;  %v7368_v62 = vsel %vm4060_vm15, %v4057_v30, %v7349_v47 }
 0x5bc   :  { %7926 = vst [vmem:[#allocation18_spill] sm:$0xff] %v7368_v62  ;;  %v4072_v40 = vmul.f32 %v7368_v62, %v7262_v61 }
 0x5be   :  { %2514 = vrot.lane.b32.xlu0 %v2499_v3, %s6709_s13  ;;  %3256 = vrot.lane.b32.xlu1 %v7262_v61, %s6725_s0  ;;  %v7377_v3 = vld [vmem:[%s7892_s2 + $0x4] sm:$0xf] }
 0x5c2   :  { %3669 = vrot.lane.b32.xlu1 %v3655_v21, %s6728_s19  ;;  %4083 = vrot.lane.b32.xlu0 %v4070_v50, %s6730_s22 }
 0x5c6   :  { %2516 = vrot.lane.b32.xlu1 %v2500_v23, %s6709_s13  ;;  %2875 = vrot.lane.b32.xlu0 %v2859_v24, %s6710_s20 }
 0x5ca   :  { %3873 = vrot.lane.b32.xlu1 %v3861_v27, %s6729_s21  ;;  %3080 = vrot.lane.b32.xlu0 %v3065_v33, %s6726_s17 }
 0x5ce   :  { %2873 = vrot.lane.b32.xlu1 %v2858_v12, %s6710_s20  ;;  %4081 = vrot.lane.b32.xlu0 %v4069_v26, %s6730_s22 }
 0x5d2   :  { %3082 = vrot.lane.b32.xlu1 %v3066_v4, %s6726_s17  ;;  %3464 = vrot.lane.b32.xlu0 %v3449_v36, %s6727_s18  ;;  %v7387_v4 = vld [vmem:[%s7898_s8] sm:$0xff] }
 0x5d3   :  { %7927 = vst [vmem:[#allocation19_spill] sm:$0xff] %v7387_v4 }
 0x5d6   :  { %4085 = vrot.lane.b32.xlu1 %v4071_v41, %s6730_s22  ;;  %3673 = vrot.lane.b32.xlu0 %v3657_v22, %s6728_s19  ;;  %v7391_v41 = vcombine.high %v7387_v4, %v7387_v4 }
 0x5d8   :  { %7928 = vst [vmem:[#allocation20_spill] sm:$0xff] %v7391_v41 }
 0x5da   :  { %3466 = vrot.lane.b32.xlu1 %v3450_v45, %s6727_s18  ;;  %3879 = vrot.lane.b32.xlu0 %v3864_v44, %s6729_s21  ;;  %v3251_v50 = vpop.permute.xlu0 %3250  ;;  %v7397_v45 = vld [vmem:[#allocation2 + $0x28] sm:$0xf] }
 0x5dc   :  { %v2509_v21 = vpop.permute.xlu1 %2508 }
 0x5de   :  { %3671 = vrot.lane.b32.xlu1 %v3656_v58, %s6728_s19  ;;  %4089 = vrot.lane.b32.xlu0 %v4073_v13, %s6730_s22  ;;  %v2868_v48 = vpop.permute.xlu0 %2867  ;;  %v2468_v58 = vmul.f32 %v7391_v41, %v7150_v25 }
 0x5e0   :  { %v3075_v24 = vpop.permute.xlu1 %3074 }
 0x5e2   :  { %3881 = vrot.lane.b32.xlu1 %v3865_v59, %s6729_s21  ;;  %v3253_v23 = vpop.permute.xlu0 %3252  ;;  %v2467_v59 = vmul.f32 %v7387_v4, %v7134_v19 }
 0x5e4   :  { %v3459_v33 = vpop.permute.xlu1 %3458 }
 0x5e6   :  { %4087 = vrot.lane.b32.xlu1 %v4072_v40, %s6730_s22  ;;  %v7380_v27 = vpop.permute.xlu0 %3665 }
 0x5e8   :  { %v2511_v12 = vpop.permute.xlu1 %2510 }
 0x5e9   :  { %v2518_v13 = vsel %vm336_vm11, %v2509_v21, %v2511_v12  ;;  %v7413_v21 = vld [vmem:[#allocation2 + $0x24] sm:$0xf] }
 0x5ea   :  { %4257 = vperm.xlu1 %6565, %v7377_v3   ;;  %v2870_v26 = vpop.permute.xlu0 %2869 }
 0x5eb   :  { %v2877_v28 = vsel %vm676_vm13, %v2868_v48, %v2870_v26 }
 0x5ec   :  { %v3077_v36 = vpop.permute.xlu1 %3076 }
 0x5ed   :  { %v3085_v4 = vsel %vm3084_vm2, %v3075_v24, %v3077_v36 }
 0x5ee   :  { %v7382_v30 = vpop.permute.xlu0 %3667 }
 0x5f0   :  { %v3461_v40 = vpop.permute.xlu1 %3460 }
 0x61c   :  { %v7393_v22 = vpop.permute.xlu0 %2512 }
 0x61d   :  { %v2519_v44 = vsel %vm336_vm11, %v2511_v12, %v7393_v22 }
 0x61e   :  { %6276 = vmatprep.subr.msk.mxu0 %vm343_vm10, %v2519_v44 }
 0x61f   :  { %6277 = vmatpush1.msk.msra.mxu0 %vm343_vm10, %v2518_v13 }
 0x620   :  { %6282 = vmatprep.subr.msk.mxu0 %vm343_vm10, %v2468_v58  ;;  %v7407_v6 = vpop.permute.xlu0 %3078  ;;  %6278 = vmatmul.mubr.msk.f32.vlgmr.msra.gmra.mxu0 %vm339_vm12, %v7397_v45 }
 0x621   :  { %6283 = vmatpush1.msk.msra.mxu0 %vm343_vm10, %v2467_v59  ;;  %2754 = vmatprep.mubr.f32.mxu0 %v7906_v0 }
 0x624   :  { %v7415_v25 = vpop.permute.xlu1 %3875  ;;  %v7417_v12 = vpop.permute.xlu0 %3258  ;;  %6284 = vmatmul.mubr.msk.f32.vlgmr.msra.gmra.mxu0 %vm339_vm12, %v7413_v21 }
 0x625   :  { %2956 = vmatprep.mubr.f32.mxu0 %v7906_v0  ;;  %v3086_v0 = vsel %vm3084_vm2, %v3077_v36, %v7407_v6 }
 0x628   :  { %v7422_v19 = vpop.permute.xlu1 %3254  ;;  %v7424_v44 = vpop.permute.xlu0 %3462 }
 0x629   :  { %v3262_v48 = vsel %vm3260_vm3, %v3253_v23, %v7422_v19  ;;  %v3470_v36 = vsel %vm3468_vm1, %v3461_v40, %v7424_v44 }
 0x62c   :  { %v7426_v13 = vpop.permute.xlu1 %2871  ;;  %v7428_v58 = vpop.permute.xlu0 %3877 }
 0x62d   :  { %v2878_v59 = vsel %vm676_vm13, %v2870_v26, %v7426_v13  ;;  %v7929_v26 = vmov 0.0  }
 0x62e   :  { %6290 = vmatprep.subr.msk.mxu0 %vm343_vm10, %v2878_v59  ;;  %v7449_v59 = vld [vmem:[#allocation2 + $0x30] sm:$0xf] }
 0x62f   :  { %6291 = vmatpush1.msk.msra.mxu0 %vm343_vm10, %v2877_v28  ;;  %v3261_v28 = vsel %vm3260_vm3, %v3251_v50, %v3253_v23  ;;  %v7468_v50 = vld [vmem:[%s7898_s8 + $0x8] sm:$0xff] }
 0x630   :  { %v7440_v41 = vpop.permute.xlu1 %3256  ;;  %6292 = vmatmul.mubr.msk.f32.vlgmr.msra.gmra.mxu0 %vm339_vm12, %v7432_v49  ;;  %6298 = vmatprep.subr.msk.mxu0 %vm343_vm10, %v3086_v0  ;;  %v2515_v62 = vpop.permute.xlu0 %2514  ;;  %7930 = vst [vmem:[#allocation21_spill] sm:$0xff] %v7468_v50  ;;  %v7473_v23 = vcombine.high %v7468_v50, %v7468_v50 }
 0x631   :  { %6299 = vmatpush1.msk.msra.mxu0 %vm343_vm10, %v3085_v4  ;;  %3164 = vmatprep.mubr.f32.mxu0 %v7929_v26  ;;  %v7463_v4 = vld [vmem:[#allocation2 + $0x34] sm:$0xf] }
 0x632   :  { %6304 = vmatprep.subr.msk.mxu0 %vm343_vm10, %v3262_v48  ;;  %7931 = vst [vmem:[#allocation22_spill] sm:$0xff] %v7473_v23  ;;  %v3469_v48 = vsel %vm3468_vm1, %v3459_v33, %v3461_v40  ;;  %v2470_v33 = vmul.f32 %v7473_v23, %v7262_v61  ;;  %v7490_v40 = vld [vmem:[#allocation2 + $0x38] sm:$0xf]  ;;  %v3659_v61 = vld [vmem:[#allocation2 + $0x3c] sm:$0xf] }
 0x634   :  { %v7453_v24 = vpop.permute.xlu1 %3669  ;;  %6300 = vmatmul.mubr.msk.f32.vlgmr.msra.gmra.mxu0 %vm339_vm12, %v7449_v59  ;;  %v7457_v0 = vpop.permute.xlu0 %4083 }
 0x635   :  { %6305 = vmatpush1.msk.msra.mxu0 %vm343_vm10, %v3261_v28  ;;  %3340 = vmatprep.mubr.f32.mxu0 %v7929_v26  ;;  %v3677_v54 = vsel %vm3675_vm4, %v7382_v30, %v7453_v24 }
 0x636   :  { %6312 = vmatprep.subr.msk.mxu0 %vm343_vm10, %v3470_v36  ;;  %v2520_v36 = vsel %vm336_vm11, %v7393_v22, %v2515_v62 }
 0x638   :  { %v2517_v37 = vpop.permute.xlu1 %2516  ;;  %6306 = vmatmul.mubr.msk.f32.vlgmr.msra.gmra.mxu0 %vm339_vm12, %v7463_v4  ;;  %v2876_v28 = vpop.permute.xlu0 %2875 }
 0x639   :  { %v2521_v31 = vsel %vm336_vm11, %v2515_v62, %v2517_v37  ;;  %6313 = vmatpush1.msk.msra.mxu0 %vm343_vm10, %v3469_v48  ;;  %3548 = vmatprep.mubr.f32.mxu0 %v7929_v26  ;;  %v2469_v37 = vmul.f32 %v7468_v50, %v7208_v39  ;;  %v3885_v39 = vsel %vm3883_vm5, %v7415_v25, %v7428_v58 }
 0x63a   :  { %6320 = vmatprep.subr.msk.mxu0 %vm343_vm10, %v3677_v54  ;;  %6279 = vmatprep.subr.msk.mxu1 %vm343_vm10, %v2521_v31  ;;  %v3676_v31 = vsel %vm3675_vm4, %v7380_v27, %v7382_v30 }
 0x63b   :  { %6280 = vmatpush1.msk.msra.mxu1 %vm343_vm10, %v2520_v36  ;;  %v3867_v36 = vld [vmem:[#allocation2 + $0x40] sm:$0xf] }
 0x63c   :  { %v3874_v48 = vpop.permute.xlu1 %3873  ;;  %6281 = vmatmul.mubr.msk.f32.vlgmr.msra.gmra.mxu1 %vm339_vm12, %v7397_v45  ;;  %6285 = vmatprep.subr.msk.mxu1 %vm343_vm10, %v2470_v33  ;;  %v3081_v54 = vpop.permute.xlu0 %3080  ;;  %v3264_v33 = vsel %vm3260_vm3, %v7440_v41, %v7417_v12  ;;  %v4075_v12 = vld [vmem:[#allocation2 + $0x44] sm:$0xf] }
 0x63d   :  { %6314 = vmatmul.mubr.msk.f32.vlgmr.msra.gmra.mxu0 %vm339_vm12, %v7490_v40  ;;  %6286 = vmatpush1.msk.msra.mxu1 %vm343_vm10, %v2469_v37  ;;  %v3884_v30 = vsel %vm3883_vm5, %v3874_v48, %v7415_v25 }
 0x63e   :  { %6321 = vmatpush1.msk.msra.mxu0 %vm343_vm10, %v3676_v31  ;;  %2825 = vmatprep.mubr.f32.mxu1 %v7929_v26 }
 0x63f   :  { %6328 = vmatprep.subr.msk.mxu0 %vm343_vm10, %v3885_v39  ;;  %3755 = vmatprep.mubr.f32.mxu0 %v7929_v26 }
 0x640   :  { %v2874_v62 = vpop.permute.xlu1 %2873  ;;  %6287 = vmatmul.mubr.msk.f32.vlgmr.msra.gmra.mxu1 %vm339_vm12, %v7413_v21  ;;  %v4082_v27 = vpop.permute.xlu0 %4081 }
 0x641   :  { %v2879_v22 = vsel %vm676_vm13, %v7426_v13, %v2874_v62  ;;  %v2880_v45 = vsel %vm676_vm13, %v2874_v62, %v2876_v28  ;;  %6322 = vmatmul.mubr.msk.f32.vlgmr.msra.gmra.mxu0 %vm339_vm12, %v3659_v61  ;;  %3027 = vmatprep.mubr.f32.mxu1 %v7929_v26  ;;  %v3087_v13 = vsel %vm3084_vm2, %v7407_v6, %v3081_v54 }
 0x642   :  { %6329 = vmatpush1.msk.msra.mxu0 %vm343_vm10, %v3884_v30  ;;  %6293 = vmatprep.subr.msk.mxu1 %vm343_vm10, %v2880_v45  ;;  %v4092_v48 = vsel %vm4091_vm6, %v4082_v27, %v7457_v0 }
 0x643   :  { %6294 = vmatpush1.msk.msra.mxu1 %vm343_vm10, %v2879_v22  ;;  %3963 = vmatprep.mubr.f32.mxu0 %v7929_v26 }
 0x644   :  { %v3083_v21 = vpop.permute.xlu1 %3082  ;;  %6295 = vmatmul.mubr.msk.f32.vlgmr.msra.gmra.mxu1 %vm339_vm12, %v7432_v49  ;;  %v3465_v28 = vpop.permute.xlu0 %3464  ;;  %v3263_v49 = vsel %vm3260_vm3, %v7422_v19, %v7440_v41 }
 0x645   :  { %v3088_v25 = vsel %vm3084_vm2, %v3081_v54, %v3083_v21  ;;  %6330 = vmatmul.mubr.msk.f32.vlgmr.msra.gmra.mxu0 %vm339_vm12, %v3867_v36  ;;  %3235 = vmatprep.mubr.f32.mxu1 %v7929_v26 }
 0x646   :  { %6301 = vmatprep.subr.msk.mxu1 %vm343_vm10, %v3088_v25  ;;  %4171 = vmatprep.mubr.f32.mxu0 %v7929_v26 }
 0x647   :  { %6302 = vmatpush1.msk.msra.mxu1 %vm343_vm10, %v3087_v13 }
 0x648   :  { %v4086_v37 = vpop.permute.xlu1 %4085  ;;  %6303 = vmatmul.mubr.msk.f32.vlgmr.msra.gmra.mxu1 %vm339_vm12, %v7449_v59  ;;  %6307 = vmatprep.subr.msk.mxu1 %vm343_vm10, %v3264_v33  ;;  %v3674_v41 = vpop.permute.xlu0 %3673 }
 0x649   :  { %v4093_v6 = vsel %vm4091_vm6, %v7457_v0, %v4086_v37  ;;  %6308 = vmatpush1.msk.msra.mxu1 %vm343_vm10, %v3263_v49  ;;  %3411 = vmatprep.mubr.f32.mxu1 %v7929_v26  ;;  %v3471_v0 = vsel %vm3468_vm1, %v7424_v44, %v3465_v28 }
 0x64a   :  { %6336 = vmatprep.subr.msk.mxu0 %vm343_vm10, %v4093_v6 }
 0x64b   :  { %6337 = vmatpush1.msk.msra.mxu0 %vm343_vm10, %v4092_v48 }
 0x64c   :  { %v3467_v19 = vpop.permute.xlu1 %3466  ;;  %6309 = vmatmul.mubr.msk.f32.vlgmr.msra.gmra.mxu1 %vm339_vm12, %v7463_v4  ;;  %6338 = vmatmul.mubr.msk.f32.vlgmr.msra.gmra.mxu0 %vm339_vm12, %v4075_v12  ;;  %v3880_v39 = vpop.permute.xlu0 %3879 }
 0x64d   :  { %v3472_v59 = vsel %vm3468_vm1, %v3465_v28, %v3467_v19  ;;  %3619 = vmatprep.mubr.f32.mxu1 %v7929_v26  ;;  %4460 = vmatprep.mubr.f32.mxu0 %v7929_v26 }
 0x64e   :  { %6315 = vmatprep.subr.msk.mxu1 %vm343_vm10, %v3472_v59 }
 0x64f   :  { %6316 = vmatpush1.msk.msra.mxu1 %vm343_vm10, %v3471_v0 }
 0x650   :  { %v3672_v54 = vpop.permute.xlu1 %3671  ;;  %6317 = vmatmul.mubr.msk.f32.vlgmr.msra.gmra.mxu1 %vm339_vm12, %v7490_v40  ;;  %v3886_v40 = vsel %vm3883_vm5, %v7428_v58, %v3880_v39 }
 0x651   :  { %v3678_v4 = vsel %vm3675_vm4, %v7453_v24, %v3672_v54  ;;  %v3679_v31 = vsel %vm3675_vm4, %v3672_v54, %v3674_v41  ;;  %3826 = vmatprep.mubr.f32.mxu1 %v7929_v26  ;;  %v4090_v24 = vpop.permute.xlu0 %4089 }
 0x652   :  { %6323 = vmatprep.subr.msk.mxu1 %vm343_vm10, %v3679_v31 }
 0x653   :  { %6324 = vmatpush1.msk.msra.mxu1 %vm343_vm10, %v3678_v4 }
 0x654   :  { %v3882_v44 = vpop.permute.xlu1 %3881  ;;  %6325 = vmatmul.mubr.msk.f32.vlgmr.msra.gmra.mxu1 %vm339_vm12, %v3659_v61 }
 0x655   :  { %v3887_v62 = vsel %vm3883_vm5, %v3880_v39, %v3882_v44  ;;  %4034 = vmatprep.mubr.f32.mxu1 %v7929_v26 }
 0x656   :  { %6331 = vmatprep.subr.msk.mxu1 %vm343_vm10, %v3887_v62 }
 0x657   :  { %6332 = vmatpush1.msk.msra.mxu1 %vm343_vm10, %v3886_v40 }
 0x658   :  { %v4088_v27 = vpop.permute.xlu1 %4087  ;;  %6333 = vmatmul.mubr.msk.f32.vlgmr.msra.gmra.mxu1 %vm339_vm12, %v3867_v36 }
 0x659   :  { %v4094_v30 = vsel %vm4091_vm6, %v4086_v37, %v4088_v27  ;;  %v4095_v22 = vsel %vm4091_vm6, %v4088_v27, %v4090_v24  ;;  %4242 = vmatprep.mubr.f32.mxu1 %v7929_v26 }
 0x65a   :  { %6339 = vmatprep.subr.msk.mxu1 %vm343_vm10, %v4095_v22 }
 0x65b   :  { %6340 = vmatpush1.msk.msra.mxu1 %vm343_vm10, %v4094_v30 }
 0x65c   :  { %6341 = vmatmul.mubr.msk.f32.vlgmr.msra.gmra.mxu1 %vm339_vm12, %v4075_v12 }
 0x65d   :  { %4531 = vmatprep.mubr.f32.mxu1 %v7929_v26 }
 0x665   :  { %v4258_v46 = vpop.permute.xlu1 %4257 }
 0x6e0   :  { %v2599_v58 = vpop.f32.mrf.mxu0 }
 0x6e2   :  { %v2601_v61 = vpop.f32.mrf.mxu0 }
 0x6e4   :  { %v2756_v45 = vpop.f32.mrf.mxu0 }
 0x6e5   :  { %v2757_v33 = vadd.f32 %v2756_v45, %v2599_v58 }
 0x6e6   :  { %v2758_v21 = vpop.f32.mrf.mxu0 }
 0x6e7   :  { %v2759_v49 = vadd.f32 %v2758_v21, %v2601_v61 }
 0x6f0   :  { %v2958_v25 = vpop.f32.mrf.mxu0 }
 0x6f1   :  { %v3034_v48 = vadd.f32 %v2958_v25, %v2757_v33 }
 0x6f2   :  { %v2960_v36 = vpop.f32.mrf.mxu0 }
 0x6f3   :  { %v3035_v41 = vadd.f32 %v2960_v36, %v2759_v49 }
 0x6f4   :  { %v3166_v13 = vpop.f32.mrf.mxu0 }
 0x6f5   :  { %v3242_v12 = vadd.f32 %v3166_v13, %v3034_v48 }
 0x6f6   :  { %v3168_v28 = vpop.f32.mrf.mxu0 }
 0x6f7   :  { %v3243_v54 = vadd.f32 %v3168_v28, %v3035_v41 }
 0x6f8   :  { %v3342_v37 = vpop.f32.mrf.mxu0 }
 0x6f9   :  { %v3418_v62 = vadd.f32 %v3342_v37, %v3242_v12 }
 0x6fa   :  { %v3344_v6 = vpop.f32.mrf.mxu0 }
 0x6fb   :  { %v3419_v40 = vadd.f32 %v3344_v6, %v3243_v54 }
 0x6fc   :  { %v2670_v19 = vpop.f32.mrf.mxu1 }
 0x6fd   :  { %v3550_v59 = vpop.f32.mrf.mxu0 }
 0x6fe   :  { %v2672_v0 = vpop.f32.mrf.mxu1  ;;  %v3626_v58 = vadd.f32 %v3550_v59, %v3418_v62 }
 0x6ff   :  { %v3552_v4 = vpop.f32.mrf.mxu0 }
 0x700   :  { %v2827_v31 = vpop.f32.mrf.mxu1  ;;  %v3627_v61 = vadd.f32 %v3552_v4, %v3419_v40 }
 0x701   :  { %v3757_v39 = vpop.f32.mrf.mxu0  ;;  %v2828_v50 = vadd.f32 %v2827_v31, %v2670_v19 }
 0x702   :  { %v2829_v44 = vpop.f32.mrf.mxu1  ;;  %v3833_v36 = vadd.f32 %v3757_v39, %v3626_v58 }
 0x703   :  { %v3759_v24 = vpop.f32.mrf.mxu0  ;;  %v2830_v12 = vadd.f32 %v2829_v44, %v2672_v0 }
 0x704   :  { %v3029_v27 = vpop.f32.mrf.mxu1  ;;  %v3834_v33 = vadd.f32 %v3759_v24, %v3627_v61 }
 0x705   :  { %v3965_v30 = vpop.f32.mrf.mxu0  ;;  %v3036_v54 = vadd.f32 %v3029_v27, %v2828_v50 }
 0x706   :  { %v3031_v22 = vpop.f32.mrf.mxu1  ;;  %v4041_v23 = vadd.f32 %v3965_v30, %v3833_v36 }
 0x707   :  { %v3967_v21 = vpop.f32.mrf.mxu0  ;;  %v3037_v4 = vadd.f32 %v3031_v22, %v2830_v12 }
 0x708   :  { %v3237_v45 = vpop.f32.mrf.mxu1  ;;  %v4042_v28 = vadd.f32 %v3967_v21, %v3834_v33 }
 0x709   :  { %v3244_v62 = vadd.f32 %v3237_v45, %v3036_v54 }
 0x70a   :  { %v3239_v25 = vpop.f32.mrf.mxu1 }
 0x70b   :  { %v3245_v39 = vadd.f32 %v3239_v25, %v3037_v4 }
 0x70c   :  { %v3413_v49 = vpop.f32.mrf.mxu1  ;;  %v4173_v13 = vpop.f32.mrf.mxu0 }
 0x70d   :  { %v4249_v26 = vadd.f32 %v4173_v13, %v4041_v23  ;;  %v3420_v24 = vadd.f32 %v3413_v49, %v3244_v62 }
 0x70e   :  { %v3415_v48 = vpop.f32.mrf.mxu1  ;;  %v4175_v41 = vpop.f32.mrf.mxu0 }
 0x70f   :  { %v4250_v37 = vadd.f32 %v4175_v41, %v4042_v28  ;;  %v4260_v58 = vadd.f32 %v4258_v46, %v4249_v26  ;;  %v3421_v21 = vadd.f32 %v3415_v48, %v3245_v39 }
 0x710   :  { %v3621_v6 = vpop.f32.mrf.mxu1 }
 0x711   :  { %v4261_v40 = vadd.f32 %v4258_v46, %v4250_v37  ;;  %v3628_v47 = vadd.f32 %v3621_v6, %v3420_v24  ;;  %v4264_v31 = vmax.f32 %v4260_v58, 0.0 }
 0x712   :  { %v3623_v59 = vpop.f32.mrf.mxu1 }
 0x713   :  { %v4265_v33 = vmax.f32 %v4261_v40, 0.0  ;;  %v3629_v30 = vadd.f32 %v3623_v59, %v3421_v21  ;;  %v4268_v22 = vmul.f32 %v4264_v31, %v4264_v31 }
 0x714   :  { %v3828_v53 = vpop.f32.mrf.mxu1 }
 0x715   :  { %v3835_v36 = vadd.f32 %v3828_v53, %v3628_v47  ;;  %v4269_v50 = vmul.f32 %v4265_v33, %v4265_v33  ;;  %v4276_v41 = vrot.slane %v4268_v22, 4 }
 0x716   :  { %v3830_v61 = vpop.f32.mrf.mxu1 }
 0x717   :  { %v3836_v23 = vadd.f32 %v3830_v61, %v3629_v30  ;;  %v4277_v25 = vrot.slane %v4269_v50, 4  ;;  %v4284_v59 = vsel %vm343_vm10, %v4264_v31, %v4276_v41  ;;  %v7932_v50 = vmov 1  }
 0x718   :  { %v4036_v19 = vpop.f32.mrf.mxu1 }
 0x719   :  { %v4043_v44 = vadd.f32 %v4036_v19, %v3835_v36  ;;  %v4285_v6 = vsel %vm343_vm10, %v4265_v33, %v4277_v25 }
 0x71a   :  { %v4038_v0 = vpop.f32.mrf.mxu1  ;;  %v4288_v4 = vadd.f32 %v4285_v6, %v4284_v59 }
 0x71b   :  { %v4044_v45 = vadd.f32 %v4038_v0, %v3836_v23  ;;  %v7933_v23 = vmov 2  }
 0x71c   :  { %v4244_v27 = vpop.f32.mrf.mxu1 }
 0x71d   :  { %v4251_v13 = vadd.f32 %v4244_v27, %v4043_v44  ;;  %v7934_v44 = vmov 0  }
 0x71e   :  { %v4246_v28 = vpop.f32.mrf.mxu1 }
 0x71f   :  { %v4262_v49 = vadd.f32 %v4258_v46, %v4251_v13  ;;  %v4252_v26 = vadd.f32 %v4246_v28, %v4044_v45 }
 0x721   :  { %v4266_v48 = vmax.f32 %v4262_v49, 0.0  ;;  %v4263_v37 = vadd.f32 %v4258_v46, %v4252_v26 }
 0x723   :  { %v4270_v12 = vmul.f32 %v4266_v48, %v4266_v48  ;;  %v4267_v54 = vmax.f32 %v4263_v37, 0.0 }
 0x725   :  { %v4278_v47 = vrot.slane %v4270_v12, 4  ;;  %v4271_v53 = vmul.f32 %v4267_v54, %v4267_v54 }
 0x727   :  { %v4279_v62 = vrot.slane %v4271_v53, 4  ;;  %v4286_v40 = vsel %vm343_vm10, %v4266_v48, %v4278_v47 }
 0x728   :  { %v4289_v39 = vadd.f32 %v4288_v4, %v4286_v40 }
 0x729   :  { %v4287_v24 = vsel %vm343_vm10, %v4267_v54, %v4279_v62 }
 0x72a   :  { %v4290_v58 = vadd.f32 %v4289_v39, %v4287_v24 }
 0x72c   :  { %4291 = vadd.xlane.f32.xlu0 %v4290_v58 }
 0x7b5   :  { %v4292_v61 = vpop.xlane.xlu0 %4291 }
 0x7b6   :  { %v4293_v21 = vmul.f32 0.001953125, %v4292_v61 }
 0x7b8   :  { %v4294_v46 = vmul.f32 %v4293_v21, %v4293_v21  ;;  %v4299_v45 = vsub.f32 %v4264_v31, %v4293_v21  ;;  %v4300_v25 = vsub.f32 %v4265_v33, %v4293_v21  ;;  %v4301_v37 = vsub.f32 %v4266_v48, %v4293_v21 }
 0x7b9   :  { %v4302_v53 = vsub.f32 %v4267_v54, %v4293_v21 }
 0x7ba   :  { %v4296_v19 = vrot.slane %v4294_v46, 4 }
 0x7bc   :  { %v4298_v30 = vsub.f32 %v4293_v21, %v4296_v19 }
 0x7be   :  { %v4303_v36 = vadd.f32 1e-05, %v4298_v30 }
 0x7c0   :  { %6599 = vrsqrt.f32 %v4303_v36 }
 0x7cd   :  { %v6600_v0 = vpop.eup %6599 }
 0x7ce   :  { %4307 = vperm.xlu1 %6565, %v6600_v0  }
 0x7d2   :  { %6566 = vset.pattern.permute.xlu1 %v7932_v50 }
 0x7d3   :  { %4316 = vperm.xlu1 %6566, %v7377_v3  }
 0x7d7   :  { %6567 = vset.pattern.permute.xlu1 %v7933_v23 }
 0x7d8   :  { %4324 = vperm.xlu1 %6567, %v7377_v3  }
 0x7dc   :  { %6568 = vset.pattern.permute.xlu1 %v7934_v44 }
 0x849   :  { %v4308_v27 = vpop.permute.xlu1 %4307 }
 0x84a   :  { %v4309_v22 = vrot.slane %v4308_v27, 4  ;;  %v7935_v27 = vld [vmem:[#allocation16_spill] sm:$0xff] }
 0x84c   :  { %v4311_v13 = vmul.f32 %v4309_v22, %v4299_v45  ;;  %v4312_v49 = vmul.f32 %v4309_v22, %v4300_v25  ;;  %v4313_v12 = vmul.f32 %v4309_v22, %v4301_v37  ;;  %v4314_v3 = vmul.f32 %v4309_v22, %v4302_v53  ;;  %v7936_v22 = vld [vmem:[#allocation17_spill] sm:$0xff] }
 0x84d   :  { %v7937_v45 = vld [vmem:[#allocation13_spill] sm:$0xff] }
 0x84e   :  { %v4317_v28 = vpop.permute.xlu1 %4316 }
 0x84f   :  { %v4319_v26 = vmul.f32 %v4317_v28, %v4311_v13  ;;  %v4320_v47 = vmul.f32 %v4317_v28, %v4312_v49  ;;  %v4321_v4 = vmul.f32 %v4317_v28, %v4313_v12  ;;  %v4322_v31 = vmul.f32 %v4317_v28, %v4314_v3  ;;  %v7939_v28 = vld [vmem:[#allocation14_spill] sm:$0xff]  ;;  %v7940_v49 = vld [vmem:[#allocation15_spill] sm:$0xff] }
 0x853   :  { %v4325_v41 = vpop.permute.xlu1 %4324 }
 0x854   :  { %v4327_v6 = vadd.f32 %v4325_v41, %v4319_v26  ;;  %v4328_v59 = vadd.f32 %v4325_v41, %v4320_v47  ;;  %v4329_v62 = vadd.f32 %v4325_v41, %v4321_v4  ;;  %v4330_v33 = vadd.f32 %v4325_v41, %v4322_v31  ;;  %v7941_v41 = vld [vmem:[#allocation18_spill] sm:$0xff] }
 0x856   :  { %4335 = vrot.lane.b32.xlu1 %v4327_v6, %s6724_s7  ;;  %v7730_v6 = vld [vmem:[%s7892_s2 + $0x8] sm:$0xf] }
 0x85a   :  { %4337 = vrot.lane.b32.xlu1 %v4328_v59, %s6724_s7 }
 0x85e   :  { %4339 = vrot.lane.b32.xlu1 %v4329_v62, %s6724_s7 }
 0x862   :  { %4341 = vrot.lane.b32.xlu1 %v4330_v33, %s6724_s7 }
 0x8c8   :  { %v4336_v40 = vpop.permute.xlu1 %4335 }
 0x8c9   :  { %v7603_v24 = vsel %vm2448_vm7, 0.0, %v4336_v40 }
 0x8ca   :  { %v4695_v36 = vmul.f32 %v7603_v24, %v7115_v2  ;;  %v4359_v0 = vmul.f32 %v7603_v24, %v7110_v1 }
 0x8cc   :  { %v4338_v48 = vpop.permute.xlu1 %4337 }
 0x8cd   :  { %v7598_v39 = vsel %vm2448_vm7, %v4336_v40, %v4338_v48 }
 0x8ce   :  { %5067 = vrot.lane.b32.xlu0 %v7598_v39, %s6725_s0  ;;  %v4360_v30 = vmul.f32 %v7598_v39, %v7169_v35 }
 0x8d0   :  { %v4340_v54 = vpop.permute.xlu1 %4339 }
 0x8d1   :  { %v7606_v58 = vsel %vm2448_vm7, %v4338_v48, %v4340_v54  ;;  %v4365_v48 = vld [vmem:[#allocation2 + $0x4c] sm:$0xf] }
 0x8d2   :  { %5065 = vrot.lane.b32.xlu0 %v7603_v24, %s6725_s0  ;;  %5069 = vrot.lane.b32.xlu1 %v7606_v58, %s6725_s0  ;;  %v4361_v19 = vmul.f32 %v7606_v58, %v7205_v38  ;;  %v4880_v2 = vmul.f32 %v7606_v58, %v7218_v43  ;;  %v5238_v43 = vmul.f32 %v7606_v58, %v7240_v52 }
 0x8d3   :  { %v5420_v52 = vmul.f32 %v7598_v39, %v7185_v5  ;;  %v5787_v26 = vmul.f32 %v7606_v58, %v7940_v49 }
 0x8d4   :  { %v4342_v61 = vpop.permute.xlu1 %4341 }
 0x8d5   :  { %v7613_v21 = vsel %vm2448_vm7, %v4340_v54, %v4342_v61  ;;  %v7616_v46 = vsel %vm2448_vm7, %v4342_v61, 0.0  ;;  %v7942_v61 = vld [vmem:[#allocation20_spill] sm:$0xff] }
 0x8d6   :  { %5073 = vrot.lane.b32.xlu0 %v7616_v46, %s6725_s0  ;;  %5071 = vrot.lane.b32.xlu1 %v7613_v21, %s6725_s0  ;;  %v4699_v38 = vmul.f32 %v7616_v46, %v7104_v60  ;;  %v4362_v35 = vmul.f32 %v7613_v21, %v7269_v57  ;;  %v4363_v1 = vmul.f32 %v7616_v46, %v7095_v51 }
 0x8d7   :  { %v4881_v60 = vmul.f32 %v7613_v21, %v7302_v10  ;;  %v4696_v57 = vmul.f32 %v7598_v39, %v7164_v34  ;;  %v4697_v51 = vmul.f32 %v7606_v58, %v7255_v56  ;;  %v5239_v10 = vmul.f32 %v7613_v21, %v7324_v32 }
 0x8d8   :  { %v4698_v34 = vmul.f32 %v7613_v21, %v7313_v11  ;;  %v4879_v56 = vmul.f32 %v7598_v39, %v7177_v15  ;;  %v5419_v32 = vmul.f32 %v7603_v24, %v7156_v29  ;;  %v4878_v11 = vmul.f32 %v7603_v24, %v7123_v9 }
 0x8d9   :  { %v5423_v5 = vmul.f32 %v7616_v46, %v7129_v14  ;;  %v4882_v15 = vmul.f32 %v7616_v46, %v7113_v8  ;;  %v5604_v29 = vmul.f32 %v7606_v58, %v7247_v55  ;;  %v5237_v9 = vmul.f32 %v7598_v39, %v7193_v17 }
 0x8da   :  { %4375 = vrot.lane.b32.xlu0 %v4361_v19, %s6709_s13  ;;  %4373 = vrot.lane.b32.xlu1 %v4360_v30, %s6709_s13  ;;  %v5605_v14 = vmul.f32 %v7613_v21, %v7341_v42  ;;  %v5236_v8 = vmul.f32 %v7603_v24, %v7131_v16  ;;  %v5786_v55 = vmul.f32 %v7598_v39, %v7277_v18  ;;  %v7943_v19 = vld [vmem:[#allocation19_spill] sm:$0xff] }
 0x8db   :  { %v5240_v17 = vmul.f32 %v7616_v46, %v7121_v7  ;;  %v5785_v42 = vmul.f32 %v7603_v24, %v7271_v63  ;;  %v5421_v16 = vmul.f32 %v7606_v58, %v7285_v20  ;;  %v5789_v18 = vmul.f32 %v7616_v46, %v7935_v27  ;;  %v7938_v20 = vld [vmem:[#allocation12_spill] sm:$0xff] }
 0x8dc   :  { %v5422_v7 = vmul.f32 %v7613_v21, %v7936_v22  ;;  %v5603_v63 = vmul.f32 %v7598_v39, %v7937_v45  ;;  %v5602_v13 = vmul.f32 %v7603_v24, %v7938_v20  ;;  %v5606_v25 = vmul.f32 %v7616_v46, %v7939_v28  ;;  %v5062_v22 = vld [vmem:[#allocation2 + $0x58] sm:$0xf] }
 0x8dd   :  { %v5788_v37 = vmul.f32 %v7613_v21, %v7941_v41  ;;  %v4354_v46 = vmul.f32 %v7598_v39, %v7942_v61  ;;  %v4353_v30 = vmul.f32 %v7603_v24, %v7943_v19 }
 0x8de   :  { %4707 = vrot.lane.b32.xlu0 %v4695_v36, %s6710_s20  ;;  %4371 = vrot.lane.b32.xlu1 %v4359_v0, %s6709_s13 }
 0x8e2   :  { %4715 = vrot.lane.b32.xlu0 %v4699_v38, %s6710_s20  ;;  %4377 = vrot.lane.b32.xlu1 %v4362_v35, %s6709_s13  ;;  %v7944_v38 = vmov 0.0   ;;  %v4358_v35 = vld [vmem:[#allocation2 + $0x48] sm:$0xf] }
 0x8e6   :  { %4894 = vrot.lane.b32.xlu0 %v4880_v2, %s6726_s17  ;;  %4379 = vrot.lane.b32.xlu1 %v4363_v1, %s6709_s13 }
 0x8ea   :  { %4896 = vrot.lane.b32.xlu0 %v4881_v60, %s6726_s17  ;;  %4709 = vrot.lane.b32.xlu1 %v4696_v57, %s6710_s20  ;;  %v7945_v60 = vld [vmem:[#allocation22_spill] sm:$0xff] }
 0x8eb   :  { %v4356_v57 = vmul.f32 %v7613_v21, %v7945_v60 }
 0x8ee   :  { %5252 = vrot.lane.b32.xlu0 %v5238_v43, %s6727_s18  ;;  %4711 = vrot.lane.b32.xlu1 %v4697_v51, %s6710_s20  ;;  %v7946_v43 = vld [vmem:[#allocation21_spill] sm:$0xff] }
 0x8ef   :  { %v4355_v51 = vmul.f32 %v7606_v58, %v7946_v43 }
 0x8f2   :  { %5254 = vrot.lane.b32.xlu0 %v5239_v10, %s6727_s18  ;;  %4713 = vrot.lane.b32.xlu1 %v4698_v34, %s6710_s20 }
 0x8f6   :  { %5433 = vrot.lane.b32.xlu0 %v5420_v52, %s6728_s19  ;;  %4892 = vrot.lane.b32.xlu1 %v4879_v56, %s6726_s17  ;;  %v4701_v56 = vld [vmem:[#allocation2 + $0x50] sm:$0xf] }
 0x8fa   :  { %5431 = vrot.lane.b32.xlu0 %v5419_v32, %s6728_s19  ;;  %4890 = vrot.lane.b32.xlu1 %v4878_v11, %s6726_s17 }
 0x8fe   :  { %5439 = vrot.lane.b32.xlu0 %v5423_v5, %s6728_s19  ;;  %4898 = vrot.lane.b32.xlu1 %v4882_v15, %s6726_s17 }
 0x902   :  { %5618 = vrot.lane.b32.xlu0 %v5604_v29, %s6729_s21  ;;  %5250 = vrot.lane.b32.xlu1 %v5237_v9, %s6727_s18 }
 0x906   :  { %5620 = vrot.lane.b32.xlu0 %v5605_v14, %s6729_s21  ;;  %5248 = vrot.lane.b32.xlu1 %v5236_v8, %s6727_s18 }
 0x90a   :  { %5799 = vrot.lane.b32.xlu0 %v5786_v55, %s6730_s22  ;;  %5256 = vrot.lane.b32.xlu1 %v5240_v17, %s6727_s18  ;;  %v4884_v55 = vld [vmem:[#allocation2 + $0x54] sm:$0xf] }
 0x90e   :  { %5797 = vrot.lane.b32.xlu0 %v5785_v42, %s6730_s22  ;;  %5435 = vrot.lane.b32.xlu1 %v5421_v16, %s6728_s19 }
 0x912   :  { %5805 = vrot.lane.b32.xlu0 %v5789_v18, %s6730_s22  ;;  %5437 = vrot.lane.b32.xlu1 %v5422_v7, %s6728_s19 }
 0x916   :  { %5616 = vrot.lane.b32.xlu1 %v5603_v63, %s6729_s21 }
 0x91a   :  { %5614 = vrot.lane.b32.xlu1 %v5602_v13, %s6729_s21 }
 0x91e   :  { %5622 = vrot.lane.b32.xlu1 %v5606_v25, %s6729_s21 }
 0x922   :  { %5801 = vrot.lane.b32.xlu1 %v5787_v26, %s6730_s22  ;;  %v5242_v26 = vld [vmem:[#allocation2 + $0x5c] sm:$0xf] }
 0x926   :  { %5803 = vrot.lane.b32.xlu1 %v5788_v37, %s6730_s22 }
 0x92a   :  { %5972 = vperm.xlu1 %6568, %v7730_v6  }
 0x940   :  { %v7733_v12 = vpop.permute.xlu0 %5067 }
 0x944   :  { %v7735_v47 = vpop.permute.xlu0 %5065  ;;  %v7737_v53 = vpop.permute.xlu1 %5069 }
 0x945   :  { %v5076_v42 = vsel %vm3260_vm3, %v7733_v12, %v7737_v53  ;;  %v5075_v27 = vsel %vm3260_vm3, %v7735_v47, %v7733_v12 }
 0x948   :  { %v7739_v59 = vpop.permute.xlu0 %5073  ;;  %v7741_v3 = vpop.permute.xlu1 %5071 }
 0x949   :  { %v5078_v63 = vsel %vm3260_vm3, %v7741_v3, %v7739_v59  ;;  %v5077_v20 = vsel %vm3260_vm3, %v7737_v53, %v7741_v3 }
 0x94c   :  { %v4376_v4 = vpop.permute.xlu0 %4375  ;;  %v4374_v62 = vpop.permute.xlu1 %4373 }
 0x94d   :  { %v4382_v31 = vsel %vm336_vm11, %v4374_v62, %v4376_v4 }
 0x94e   :  { %6343 = vmatprep.subr.msk.mxu0 %vm343_vm10, %v4382_v31 }
 0x950   :  { %v4708_v33 = vpop.permute.xlu0 %4707  ;;  %v4372_v40 = vpop.permute.xlu1 %4371 }
 0x951   :  { %v4381_v54 = vsel %vm336_vm11, %v4372_v40, %v4374_v62  ;;  %v5425_v62 = vld [vmem:[#allocation2 + $0x60] sm:$0xf] }
 0x952   :  { %6344 = vmatpush1.msk.msra.mxu0 %vm343_vm10, %v4381_v54 }
 0x953   :  { %6349 = vmatprep.subr.msk.mxu0 %vm343_vm10, %v4354_v46  ;;  %6345 = vmatmul.mubr.msk.f32.vlgmr.msra.gmra.mxu0 %vm339_vm12, %v4365_v48 }
 0x954   :  { %v4716_v36 = vpop.permute.xlu0 %4715  ;;  %6350 = vmatpush1.msk.msra.mxu0 %vm343_vm10, %v4353_v30  ;;  %v4378_v0 = vpop.permute.xlu1 %4377  ;;  %4617 = vmatprep.mubr.f32.mxu0 %v7944_v38 }
 0x955   :  { %v4383_v24 = vsel %vm336_vm11, %v4376_v4, %v4378_v0 }
 0x957   :  { %6351 = vmatmul.mubr.msk.f32.vlgmr.msra.gmra.mxu0 %vm339_vm12, %v4358_v35 }
 0x958   :  { %v4895_v2 = vpop.permute.xlu0 %4894  ;;  %v4380_v39 = vpop.permute.xlu1 %4379  ;;  %4796 = vmatprep.mubr.f32.mxu0 %v7944_v38 }
 0x959   :  { %v4384_v1 = vsel %vm336_vm11, %v4378_v0, %v4380_v39 }
 0x95a   :  { %6346 = vmatprep.subr.msk.mxu1 %vm343_vm10, %v4384_v1 }
 0x95b   :  { %6347 = vmatpush1.msk.msra.mxu1 %vm343_vm10, %v4383_v24 }
 0x95c   :  { %v4897_v10 = vpop.permute.xlu0 %4896  ;;  %6352 = vmatprep.subr.msk.mxu1 %vm343_vm10, %v4356_v57  ;;  %v4710_v34 = vpop.permute.xlu1 %4709  ;;  %6348 = vmatmul.mubr.msk.f32.vlgmr.msra.gmra.mxu1 %vm339_vm12, %v4365_v48  ;;  %v5791_v57 = vld [vmem:[#allocation2 + $0x68] sm:$0xf] }
 0x95d   :  { %6353 = vmatpush1.msk.msra.mxu1 %vm343_vm10, %v4355_v51  ;;  %4688 = vmatprep.mubr.f32.mxu1 %v7944_v38  ;;  %v4717_v58 = vsel %vm676_vm13, %v4708_v33, %v4710_v34  ;;  %v4902_v45 = vsel %vm3084_vm2, %v4895_v2, %v4897_v10 }
 0x960   :  { %v4712_v52 = vpop.permute.xlu1 %4711  ;;  %6354 = vmatmul.mubr.msk.f32.vlgmr.msra.gmra.mxu1 %vm339_vm12, %v4358_v35  ;;  %v5253_v32 = vpop.permute.xlu0 %5252 }
 0x961   :  { %v4718_v21 = vsel %vm676_vm13, %v4710_v34, %v4712_v52  ;;  %4867 = vmatprep.mubr.f32.mxu1 %v7944_v38 }
 0x962   :  { %6355 = vmatprep.subr.msk.mxu0 %vm343_vm10, %v4718_v21 }
 0x963   :  { %6356 = vmatpush1.msk.msra.mxu0 %vm343_vm10, %v4717_v58 }
 0x964   :  { %v4714_v11 = vpop.permute.xlu1 %4713  ;;  %6357 = vmatmul.mubr.msk.f32.vlgmr.msra.gmra.mxu0 %vm339_vm12, %v4701_v56  ;;  %v5255_v29 = vpop.permute.xlu0 %5254 }
 0x965   :  { %v4719_v5 = vsel %vm676_vm13, %v4712_v52, %v4714_v11  ;;  %v4720_v15 = vsel %vm676_vm13, %v4714_v11, %v4716_v36  ;;  %4979 = vmatprep.mubr.f32.mxu0 %v7944_v38  ;;  %v5260_v53 = vsel %vm3468_vm1, %v5253_v32, %v5255_v29  ;;  %v5608_v36 = vld [vmem:[#allocation2 + $0x64] sm:$0xf] }
 0x966   :  { %6358 = vmatprep.subr.msk.mxu1 %vm343_vm10, %v4720_v15 }
 0x967   :  { %6359 = vmatpush1.msk.msra.mxu1 %vm343_vm10, %v4719_v5 }
 0x968   :  { %v4893_v9 = vpop.permute.xlu1 %4892  ;;  %6360 = vmatmul.mubr.msk.f32.vlgmr.msra.gmra.mxu1 %vm339_vm12, %v4701_v56  ;;  %v5434_v16 = vpop.permute.xlu0 %5433 }
 0x969   :  { %v4901_v14 = vsel %vm3084_vm2, %v4893_v9, %v4895_v2  ;;  %5050 = vmatprep.mubr.f32.mxu1 %v7944_v38 }
 0x96a   :  { %6361 = vmatprep.subr.msk.mxu0 %vm343_vm10, %v4901_v14 }
 0x96c   :  { %v4891_v8 = vpop.permute.xlu1 %4890  ;;  %v5432_v13 = vpop.permute.xlu0 %5431 }
 0x96d   :  { %v4900_v17 = vsel %vm3084_vm2, %v4891_v8, %v4893_v9  ;;  %v5441_v31 = vsel %vm3675_vm4, %v5432_v13, %v5434_v16 }
 0x96e   :  { %6362 = vmatpush1.msk.msra.mxu0 %vm343_vm10, %v4900_v17 }
 0x96f   :  { %6367 = vmatprep.subr.msk.mxu0 %vm343_vm10, %v5076_v42  ;;  %6363 = vmatmul.mubr.msk.f32.vlgmr.msra.gmra.mxu0 %vm339_vm12, %v4884_v55 }
 0x970   :  { %6368 = vmatpush1.msk.msra.mxu0 %vm343_vm10, %v5075_v27  ;;  %v4899_v18 = vpop.permute.xlu1 %4898  ;;  %5154 = vmatprep.mubr.f32.mxu0 %v7944_v38  ;;  %v5440_v37 = vpop.permute.xlu0 %5439 }
 0x971   :  { %v4903_v7 = vsel %vm3084_vm2, %v4897_v10, %v4899_v18 }
 0x972   :  { %6364 = vmatprep.subr.msk.mxu1 %vm343_vm10, %v4903_v7 }
 0x973   :  { %6365 = vmatpush1.msk.msra.mxu1 %vm343_vm10, %v4902_v45  ;;  %6369 = vmatmul.mubr.msk.f32.vlgmr.msra.gmra.mxu0 %vm339_vm12, %v5062_v22 }
 0x974   :  { %6370 = vmatprep.subr.msk.mxu1 %vm343_vm10, %v5078_v63  ;;  %v5251_v28 = vpop.permute.xlu1 %5250  ;;  %6366 = vmatmul.mubr.msk.f32.vlgmr.msra.gmra.mxu1 %vm339_vm12, %v4884_v55  ;;  %v5619_v59 = vpop.permute.xlu0 %5618 }
 0x975   :  { %v5259_v25 = vsel %vm3468_vm1, %v5251_v28, %v5253_v32  ;;  %6371 = vmatpush1.msk.msra.mxu1 %vm343_vm10, %v5077_v20  ;;  %5225 = vmatprep.mubr.f32.mxu1 %v7944_v38 }
 0x976   :  { %6373 = vmatprep.subr.msk.mxu0 %vm343_vm10, %v5259_v25  ;;  %5337 = vmatprep.mubr.f32.mxu0 %v7944_v38 }
 0x978   :  { %v5249_v49 = vpop.permute.xlu1 %5248  ;;  %6372 = vmatmul.mubr.msk.f32.vlgmr.msra.gmra.mxu1 %vm339_vm12, %v5062_v22  ;;  %v5621_v54 = vpop.permute.xlu0 %5620 }
 0x979   :  { %v5258_v41 = vsel %vm3468_vm1, %v5249_v49, %v5251_v28  ;;  %5408 = vmatprep.mubr.f32.mxu1 %v7944_v38  ;;  %v5626_v39 = vsel %vm3883_vm5, %v5619_v59, %v5621_v54 }
 0x97a   :  { %6374 = vmatpush1.msk.msra.mxu0 %vm343_vm10, %v5258_v41 }
 0x97b   :  { %6375 = vmatmul.mubr.msk.f32.vlgmr.msra.gmra.mxu0 %vm339_vm12, %v5242_v26 }
 0x97c   :  { %v5257_v12 = vpop.permute.xlu1 %5256  ;;  %5520 = vmatprep.mubr.f32.mxu0 %v7944_v38  ;;  %v5800_v19 = vpop.permute.xlu0 %5799 }
 0x97d   :  { %v5261_v47 = vsel %vm3468_vm1, %v5255_v29, %v5257_v12 }
 0x97e   :  { %6376 = vmatprep.subr.msk.mxu1 %vm343_vm10, %v5261_v47 }
 0x97f   :  { %6377 = vmatpush1.msk.msra.mxu1 %vm343_vm10, %v5260_v53 }
 0x980   :  { %v5436_v3 = vpop.permute.xlu1 %5435  ;;  %6378 = vmatmul.mubr.msk.f32.vlgmr.msra.gmra.mxu1 %vm339_vm12, %v5242_v26  ;;  %v5798_v1 = vpop.permute.xlu0 %5797 }
 0x981   :  { %v5442_v4 = vsel %vm3675_vm4, %v5434_v16, %v5436_v3  ;;  %5591 = vmatprep.mubr.f32.mxu1 %v7944_v38  ;;  %v5807_v43 = vsel %vm4091_vm6, %v5798_v1, %v5800_v19 }
 0x982   :  { %6379 = vmatprep.subr.msk.mxu0 %vm343_vm10, %v5442_v4 }
 0x983   :  { %6380 = vmatpush1.msk.msra.mxu0 %vm343_vm10, %v5441_v31 }
 0x984   :  { %6381 = vmatmul.mubr.msk.f32.vlgmr.msra.gmra.mxu0 %vm339_vm12, %v5425_v62  ;;  %v5438_v33 = vpop.permute.xlu1 %5437  ;;  %v5806_v51 = vpop.permute.xlu0 %5805 }
 0x985   :  { %v5443_v40 = vsel %vm3675_vm4, %v5436_v3, %v5438_v33  ;;  %v5444_v48 = vsel %vm3675_vm4, %v5438_v33, %v5440_v37  ;;  %5703 = vmatprep.mubr.f32.mxu0 %v7944_v38 }
 0x986   :  { %6382 = vmatprep.subr.msk.mxu1 %vm343_vm10, %v5444_v48 }
 0x987   :  { %6383 = vmatpush1.msk.msra.mxu1 %vm343_vm10, %v5443_v40 }
 0x988   :  { %6384 = vmatmul.mubr.msk.f32.vlgmr.msra.gmra.mxu1 %vm339_vm12, %v5425_v62  ;;  %v5617_v61 = vpop.permute.xlu1 %5616 }
 0x989   :  { %v5625_v46 = vsel %vm3883_vm5, %v5617_v61, %v5619_v59  ;;  %5774 = vmatprep.mubr.f32.mxu1 %v7944_v38 }
 0x98a   :  { %6385 = vmatprep.subr.msk.mxu0 %vm343_vm10, %v5625_v46 }
 0x98c   :  { %v5615_v30 = vpop.permute.xlu1 %5614 }
 0x98d   :  { %v5624_v0 = vsel %vm3883_vm5, %v5615_v30, %v5617_v61 }
 0x98e   :  { %6386 = vmatpush1.msk.msra.mxu0 %vm343_vm10, %v5624_v0 }
 0x98f   :  { %6387 = vmatmul.mubr.msk.f32.vlgmr.msra.gmra.mxu0 %vm339_vm12, %v5608_v36 }
 0x990   :  { %v5623_v35 = vpop.permute.xlu1 %5622  ;;  %5886 = vmatprep.mubr.f32.mxu0 %v7944_v38 }
 0x991   :  { %v5627_v2 = vsel %vm3883_vm5, %v5621_v54, %v5623_v35 }
 0x992   :  { %6388 = vmatprep.subr.msk.mxu1 %vm343_vm10, %v5627_v2 }
 0x993   :  { %6389 = vmatpush1.msk.msra.mxu1 %vm343_vm10, %v5626_v39 }
 0x994   :  { %6390 = vmatmul.mubr.msk.f32.vlgmr.msra.gmra.mxu1 %vm339_vm12, %v5608_v36  ;;  %v5802_v24 = vpop.permute.xlu1 %5801 }
 0x995   :  { %v5808_v60 = vsel %vm4091_vm6, %v5800_v19, %v5802_v24  ;;  %5957 = vmatprep.mubr.f32.mxu1 %v7944_v38 }
 0x996   :  { %6391 = vmatprep.subr.msk.mxu0 %vm343_vm10, %v5808_v60 }
 0x997   :  { %6392 = vmatpush1.msk.msra.mxu0 %vm343_vm10, %v5807_v43 }
 0x998   :  { %6393 = vmatmul.mubr.msk.f32.vlgmr.msra.gmra.mxu0 %vm339_vm12, %v5791_v57  ;;  %v5804_v10 = vpop.permute.xlu1 %5803 }
 0x999   :  { %v5809_v34 = vsel %vm4091_vm6, %v5802_v24, %v5804_v10  ;;  %v5810_v52 = vsel %vm4091_vm6, %v5804_v10, %v5806_v51  ;;  %6132 = vmatprep.mubr.f32.mxu0 %v7944_v38 }
 0x99a   :  { %6394 = vmatprep.subr.msk.mxu1 %vm343_vm10, %v5810_v52 }
 0x99b   :  { %6395 = vmatpush1.msk.msra.mxu1 %vm343_vm10, %v5809_v34 }
 0x99c   :  { %6396 = vmatmul.mubr.msk.f32.vlgmr.msra.gmra.mxu1 %vm339_vm12, %v5791_v57 }
 0x99d   :  { %6203 = vmatprep.mubr.f32.mxu1 %v7944_v38 }
 0x9a5   :  { %v5973_v57 = vpop.permute.xlu1 %5972 }
 0xa13   :  { %v4462_v21 = vpop.f32.mrf.mxu0 }
 0xa15   :  { %v4464_v56 = vpop.f32.mrf.mxu0 }
 0xa17   :  { %v4619_v32 = vpop.f32.mrf.mxu0 }
 0xa18   :  { %v4620_v38 = vadd.f32 %v4619_v32, %v4462_v21 }
 0xa19   :  { %v4621_v5 = vpop.f32.mrf.mxu0 }
 0xa1a   :  { %v4622_v45 = vadd.f32 %v4621_v5, %v4464_v56 }
 0xa1c   :  { %v4533_v58 = vpop.f32.mrf.mxu1 }
 0xa1e   :  { %v4535_v11 = vpop.f32.mrf.mxu1 }
 0xa20   :  { %v4690_v15 = vpop.f32.mrf.mxu1 }
 0xa21   :  { %v4691_v13 = vadd.f32 %v4690_v15, %v4533_v58 }
 0xa22   :  { %v4692_v9 = vpop.f32.mrf.mxu1 }
 0xa23   :  { %v4693_v25 = vadd.f32 %v4692_v9, %v4535_v11 }
 0xa24   :  { %v4798_v29 = vpop.f32.mrf.mxu0 }
 0xa25   :  { %v4874_v28 = vadd.f32 %v4798_v29, %v4620_v38 }
 0xa26   :  { %v4800_v14 = vpop.f32.mrf.mxu0 }
 0xa27   :  { %v4875_v49 = vadd.f32 %v4800_v14, %v4622_v45 }
 0xa28   :  { %v4869_v8 = vpop.f32.mrf.mxu1 }
 0xa29   :  { %v4876_v37 = vadd.f32 %v4869_v8, %v4691_v13 }
 0xa2a   :  { %v4871_v17 = vpop.f32.mrf.mxu1 }
 0xa2b   :  { %v4877_v53 = vadd.f32 %v4871_v17, %v4693_v25 }
 0xa2f   :  { %v4981_v55 = vpop.f32.mrf.mxu0 }
 0xa30   :  { %v5057_v12 = vadd.f32 %v4981_v55, %v4874_v28 }
 0xa31   :  { %v4983_v42 = vpop.f32.mrf.mxu0 }
 0xa32   :  { %v5058_v59 = vadd.f32 %v4983_v42, %v4875_v49 }
 0xa33   :  { %v5156_v27 = vpop.f32.mrf.mxu0 }
 0xa34   :  { %v5052_v16 = vpop.f32.mrf.mxu1  ;;  %v5232_v62 = vadd.f32 %v5156_v27, %v5057_v12 }
 0xa35   :  { %v5158_v22 = vpop.f32.mrf.mxu0  ;;  %v5059_v4 = vadd.f32 %v5052_v16, %v4876_v37 }
 0xa36   :  { %v5054_v18 = vpop.f32.mrf.mxu1  ;;  %v5233_v48 = vadd.f32 %v5158_v22, %v5058_v59 }
 0xa37   :  { %v5060_v40 = vadd.f32 %v5054_v18, %v4877_v53 }
 0xa38   :  { %v5227_v7 = vpop.f32.mrf.mxu1 }
 0xa39   :  { %v5234_v61 = vadd.f32 %v5227_v7, %v5059_v4 }
 0xa3a   :  { %v5229_v20 = vpop.f32.mrf.mxu1 }
 0xa3b   :  { %v5339_v63 = vpop.f32.mrf.mxu0  ;;  %v5235_v30 = vadd.f32 %v5229_v20, %v5060_v40  ;;  %v6047_v40 = vld [vmem:[%s7894_s4] sm:$0x7] }
 0xa3c   :  { %v5415_v46 = vadd.f32 %v5339_v63, %v5232_v62 }
 0xa3d   :  { %v5341_v26 = vpop.f32.mrf.mxu0 }
 0xa3e   :  { %v5416_v36 = vadd.f32 %v5341_v26, %v5233_v48 }
 0xa40   :  { %v5410_v41 = vpop.f32.mrf.mxu1 }
 0xa41   :  { %v5417_v39 = vadd.f32 %v5410_v41, %v5234_v61 }
 0xa42   :  { %v5412_v3 = vpop.f32.mrf.mxu1 }
 0xa43   :  { %v5418_v43 = vadd.f32 %v5412_v3, %v5235_v30 }
 0xa44   :  { %v5522_v47 = vpop.f32.mrf.mxu0 }
 0xa45   :  { %v5598_v0 = vadd.f32 %v5522_v47, %v5415_v46 }
 0xa46   :  { %v5524_v31 = vpop.f32.mrf.mxu0 }
 0xa47   :  { %v5599_v1 = vadd.f32 %v5524_v31, %v5416_v36 }
 0xa48   :  { %v5593_v33 = vpop.f32.mrf.mxu1 }
 0xa49   :  { %v5600_v51 = vadd.f32 %v5593_v33, %v5417_v39 }
 0xa4a   :  { %v5595_v19 = vpop.f32.mrf.mxu1 }
 0xa4b   :  { %v5601_v56 = vadd.f32 %v5595_v19, %v5418_v43 }
 0xa4f   :  { %v5705_v54 = vpop.f32.mrf.mxu0 }
 0xa50   :  { %v5781_v24 = vadd.f32 %v5705_v54, %v5598_v0 }
 0xa51   :  { %v5707_v35 = vpop.f32.mrf.mxu0 }
 0xa52   :  { %v5782_v10 = vadd.f32 %v5707_v35, %v5599_v1 }
 0xa54   :  { %v5776_v2 = vpop.f32.mrf.mxu1 }
 0xa55   :  { %v5783_v58 = vadd.f32 %v5776_v2, %v5600_v51  ;;  %v6046_v51 = vld [vmem:[%s7893_s3] sm:$0x7] }
 0xa56   :  { %v5778_v52 = vpop.f32.mrf.mxu1 }
 0xa57   :  { %v5784_v15 = vadd.f32 %v5778_v52, %v5601_v56 }
 0xa58   :  { %v5888_v60 = vpop.f32.mrf.mxu0 }
 0xa59   :  { %v5964_v34 = vadd.f32 %v5888_v60, %v5781_v24 }
 0xa5a   :  { %v5890_v21 = vpop.f32.mrf.mxu0 }
 0xa5b   :  { %v5965_v32 = vadd.f32 %v5890_v21, %v5782_v10  ;;  %v5975_v11 = vadd.f32 %v5973_v57, %v5964_v34 }
 0xa5c   :  { %v5959_v5 = vpop.f32.mrf.mxu1 }
 0xa5d   :  { %v5976_v29 = vadd.f32 %v5973_v57, %v5965_v32  ;;  %v5979_v9 = vmax.f32 %v5975_v11, 0.0  ;;  %v5966_v14 = vadd.f32 %v5959_v5, %v5783_v58 }
 0xa5e   :  { %v5961_v8 = vpop.f32.mrf.mxu1 }
 0xa5f   :  { %v5980_v55 = vmax.f32 %v5976_v29, 0.0  ;;  %v5983_v17 = vmul.f32 %v5979_v9, %v5979_v9  ;;  %v5977_v42 = vadd.f32 %v5973_v57, %v5966_v14  ;;  %v5967_v16 = vadd.f32 %v5961_v8, %v5784_v15 }
 0xa61   :  { %v5984_v27 = vmul.f32 %v5980_v55, %v5980_v55  ;;  %v5991_v18 = vrot.slane %v5983_v17, 4  ;;  %v5981_v22 = vmax.f32 %v5977_v42, 0.0  ;;  %v5978_v7 = vadd.f32 %v5973_v57, %v5967_v16 }
 0xa63   :  { %v5992_v38 = vrot.slane %v5984_v27, 4  ;;  %v5985_v45 = vmul.f32 %v5981_v22, %v5981_v22  ;;  %v5982_v63 = vmax.f32 %v5978_v7, 0.0  ;;  %v5999_v28 = vsel %vm343_vm10, %v5979_v9, %v5991_v18 }
 0xa65   :  { %v5993_v20 = vrot.slane %v5985_v45, 4  ;;  %v5986_v13 = vmul.f32 %v5982_v63, %v5982_v63  ;;  %v6000_v25 = vsel %vm343_vm10, %v5980_v55, %v5992_v38 }
 0xa66   :  { %v6003_v49 = vadd.f32 %v6000_v25, %v5999_v28 }
 0xa67   :  { %v5994_v26 = vrot.slane %v5986_v13, 4  ;;  %v6001_v41 = vsel %vm343_vm10, %v5981_v22, %v5993_v20 }
 0xa68   :  { %v6004_v37 = vadd.f32 %v6003_v49, %v6001_v41 }
 0xa69   :  { %v6002_v12 = vsel %vm343_vm10, %v5982_v63, %v5994_v26 }
 0xa6a   :  { %v6005_v47 = vadd.f32 %v6004_v37, %v6002_v12 }
 0xa6c   :  { %6006 = vadd.xlane.f32.xlu0 %v6005_v47 }
 0xaf5   :  { %v6007_v53 = vpop.xlane.xlu0 %6006 }
 0xaf6   :  { %v6008_v59 = vmul.f32 0.001953125, %v6007_v53 }
 0xaf8   :  { %v6009_v3 = vmul.f32 %v6008_v59, %v6008_v59  ;;  %v6014_v61 = vsub.f32 %v5979_v9, %v6008_v59  ;;  %v6015_v46 = vsub.f32 %v5980_v55, %v6008_v59  ;;  %v6016_v19 = vsub.f32 %v5981_v22, %v6008_v59 }
 0xaf9   :  { %v6017_v30 = vsub.f32 %v5982_v63, %v6008_v59 }
 0xafa   :  { %v6011_v4 = vrot.slane %v6009_v3, 4 }
 0xafc   :  { %v6013_v62 = vsub.f32 %v6008_v59, %v6011_v4 }
 0xafe   :  { %v6018_v31 = vadd.f32 1e-05, %v6013_v62 }
 0xb00   :  { %6601 = vrsqrt.f32 %v6018_v31 }
 0xb0d   :  { %v6602_v33 = vpop.eup %6601 }
 0xb0e   :  { %6022 = vperm.xlu1 %6568, %v6602_v33  }
 0xb12   :  { %6569 = vset.pattern.permute.xlu1 %v7932_v50 }
 0xb13   :  { %6031 = vperm.xlu1 %6569, %v7730_v6  }
 0xb17   :  { %6570 = vset.pattern.permute.xlu1 %v7933_v23 }
 0xb18   :  { %6039 = vperm.xlu1 %6570, %v7730_v6  }
 0xb1c   :  { %6571 = vset.pattern.permute.xlu1 %v7934_v44 }
 0xb1d   :  { %6050 = vperm.xlu1 %6571, %v6047_v40  }
 0xb89   :  { %v6023_v48 = vpop.permute.xlu1 %6022 }
 0xb8a   :  { %v6024_v54 = vrot.slane %v6023_v48, 4 }
 0xb8c   :  { %v6026_v50 = vmul.f32 %v6024_v54, %v6014_v61  ;;  %v6027_v36 = vmul.f32 %v6024_v54, %v6015_v46  ;;  %v6028_v0 = vmul.f32 %v6024_v54, %v6016_v19  ;;  %v6029_v35 = vmul.f32 %v6024_v54, %v6017_v30 }
 0xb8e   :  { %v6032_v23 = vpop.permute.xlu1 %6031 }
 0xb8f   :  { %v6034_v2 = vmul.f32 %v6032_v23, %v6026_v50  ;;  %v6035_v6 = vmul.f32 %v6032_v23, %v6027_v36  ;;  %v6036_v39 = vmul.f32 %v6032_v23, %v6028_v0  ;;  %v6037_v1 = vmul.f32 %v6032_v23, %v6029_v35 }
 0xb93   :  { %v6040_v24 = vpop.permute.xlu1 %6039 }
 0xb94   :  { %v6042_v60 = vadd.f32 %v6040_v24, %v6034_v2  ;;  %v6043_v57 = vadd.f32 %v6040_v24, %v6035_v6  ;;  %v6044_v44 = vadd.f32 %v6040_v24, %v6036_v39  ;;  %v6045_v43 = vadd.f32 %v6040_v24, %v6037_v1 }
 0xb96   :  { %6398 = vmatprep.subr.msk.mxu0 %vm343_vm10, %v6043_v57  ;;  %6401 = vmatprep.subr.msk.mxu1 %vm343_vm10, %v6045_v43 }
 0xb97   :  { %6399 = vmatpush1.msk.msra.mxu0 %vm343_vm10, %v6042_v60  ;;  %6402 = vmatpush1.msk.msra.mxu1 %vm343_vm10, %v6044_v44 }
 0xb98   :  { %6400 = vmatmul.mubr.msk.f32.vlgmr.msra.gmra.mxu0 %vm339_vm12, %v6046_v51  ;;  %6403 = vmatmul.mubr.msk.f32.vlgmr.msra.gmra.mxu1 %vm339_vm12, %v6046_v51  ;;  %v6051_v10 = vpop.permute.xlu1 %6050 }
 0xc58   :  { %v6134_v34 = vpop.f32.mrf.mxu0  ;;  %v6205_v52 = vpop.f32.mrf.mxu1 }
 0xc59   :  { %v6135_v58 = vadd.f32 %v6134_v34, %v6051_v10  ;;  %v6206_v11 = vadd.f32 %v6205_v52, %v6051_v10 }
 0xc5a   :  { %v6136_v21 = vpop.f32.mrf.mxu0  ;;  %v6207_v56 = vpop.f32.mrf.mxu1 }
 0xc5b   :  { %v6137_v32 = vadd.f32 %v6136_v21, %v6051_v10  ;;  %v6208_v5 = vadd.f32 %v6207_v56, %v6051_v10 }
 0xc5d   :  { %v6214_v15 = vcombine.low %v6135_v58, %v6137_v32  ;;  %v6215_v29 = vcombine.low %v6206_v11, %v6208_v5 }
 0xc5f   :  { %6218 = vst [vmem:[%s7899_s9] sm:$0x77] %v6214_v15  ;;  %6219 = vst [vmem:[%s7899_s9 + $0x8] sm:$0x77] %v6215_v29 }
 0xc60   :  { %6224 = vsyncpa [#allocation3], 1 }
 0xc61   :  { %6225 = vsyncpa [#allocation5], 1 }
 0xc62   :  { %6226 = vsyncpa [#allocation8], 1 }

</bundles_post_ra>
